<compile_context>
chip_gen: v5e
topology: v5e:2x2
jax: 0.10.0
libtpu: 0.0.40
codegen_flags: <defaults>
</compile_context>

<pallas_src>
import math
import functools
from dataclasses import dataclass
from typing import Optional

import jax
import jax.numpy as jnp
from jax import lax
from jax.experimental import pallas as pl
from jax.experimental.pallas import tpu as pltpu


@dataclass
class Config:
    # Small but (8,128)-aligned shapes: head_dim=128, dim/vocab multiples of 128.
    dim: int = 256                     # == hidden_dim in the torch Config
    n_heads: int = 2
    n_kv_heads: Optional[int] = 1
    vocab_size: int = 256
    n_layers: int = 2
    multiple_of: int = 128
    ffn_dim_multiplier: Optional[float] = None
    norm_eps: float = 1e-5
    rope_theta: float = 500000.0
    max_batch_size: int = 4
    max_seq_len: int = 32


# ----------------------------- tiling helpers ------------------------------

def _fit_tile(dim: int, target: int) -> int:
    """Largest divisor of `dim` that is <= target (keeps grids exact)."""
    t = min(dim, target)
    while dim % t:
        t -= 1
    return t


# Tile targets sized so double-buffered bf16 weight blocks + f32 resident
# output blocks stay within the 32 MiB scoped-VMEM default on v7x (64 MiB
# physical) while staying large enough to amortize the ~0.35 us/grid-step
# overhead on v5e/v6e.
_TM_TARGET = 256
_TN_TARGET = 256
_TK_TARGET = 512


# ----------------------------- Pallas kernels ------------------------------

def _rmsnorm_matmul_kernel(x_ref, nw_ref, w_ref, o_ref, xn_ref, *, eps):
    """out = rmsnorm(x) @ W. The normed activations are computed once per
    M-tile (j==0) into a bf16 VMEM scratch and reused for every N tile."""
    @pl.when(pl.program_id(1) == 0)
    def _():
        x = x_ref[...].astype(jnp.float32)                      # (tm, K)
        ms = jnp.mean(x * x, axis=-1, keepdims=True)
        xn_ref[...] = (x * jax.lax.rsqrt(ms + eps) * nw_ref[...]).astype(jnp.bfloat16)

    o_ref[...] = jnp.dot(xn_ref[...], w_ref[...],
                         preferred_element_type=jnp.float32).astype(o_ref.dtype)


def rmsnorm_matmul(x2d, norm_w, w, eps, out_dtype=jnp.float32):
    """x2d: [M, K] f32, norm_w: [K] f32, w: [K, N] bf16 -> [M, N]."""
    M, K = x2d.shape
    _, N = w.shape
    tm = _fit_tile(M, _TM_TARGET)
    tn = _fit_tile(N, _TN_TARGET)
    return pl.pallas_call(
        functools.partial(_rmsnorm_matmul_kernel, eps=eps),
        out_shape=jax.ShapeDtypeStruct((M, N), out_dtype),
        grid=(M // tm, N // tn),
        in_specs=[
            pl.BlockSpec((tm, K), lambda i, j: (i, 0)),
            pl.BlockSpec((1, K), lambda i, j: (0, 0)),
            pl.BlockSpec((K, tn), lambda i, j: (0, j)),
        ],
        out_specs=pl.BlockSpec((tm, tn), lambda i, j: (i, j)),
        scratch_shapes=[pltpu.VMEM((tm, K), jnp.bfloat16)],
        # j must be "arbitrary": the xn scratch caching relies on j==0 running
        # first for each i on the same core.
        compiler_params=pltpu.CompilerParams(
            dimension_semantics=("parallel", "arbitrary")),
    )(x2d, norm_w.reshape(1, K), w)


def _matmul_residual_kernel(x_ref, w_ref, res_ref, o_ref):
    """o = residual + x @ W, accumulating directly into the VMEM-resident
    f32 output block (no separate scratch, residual add fused)."""
    @pl.when(pl.program_id(2) == 0)
    def _():
        o_ref[...] = res_ref[...].astype(o_ref.dtype)
    o_ref[...] += jnp.dot(x_ref[...].astype(jnp.bfloat16), w_ref[...],
                          preferred_element_type=jnp.float32)


def linear_residual(x2d, w, res2d):
    """res2d [M, N] f32 + (x2d [M, K] @ w [K, N] bf16) -> [M, N] f32."""
    M, K = x2d.shape
    _, N = w.shape
    tm = _fit_tile(M, _TM_TARGET)
    tn = _fit_tile(N, _TN_TARGET)
    tk = _fit_tile(K, _TK_TARGET)
    return pl.pallas_call(
        _matmul_residual_kernel,
        out_shape=jax.ShapeDtypeStruct((M, N), jnp.float32),
        grid=(M // tm, N // tn, K // tk),
        in_specs=[
            pl.BlockSpec((tm, tk), lambda i, j, k: (i, k)),
            pl.BlockSpec((tk, tn), lambda i, j, k: (k, j)),
            pl.BlockSpec((tm, tn), lambda i, j, k: (i, j)),
        ],
        out_specs=pl.BlockSpec((tm, tn), lambda i, j, k: (i, j)),
        compiler_params=pltpu.CompilerParams(
            dimension_semantics=("parallel", "parallel", "arbitrary")),
    )(x2d, w, res2d)


def _ffn_kernel(x_ref, nw_ref, w1_ref, w3_ref, w2_ref, o_ref, xn_ref, *, eps):
    """o = x + (silu(rmsnorm(x) @ w1) * (rmsnorm(x) @ w3)) @ w2, tiled over the
    hidden dim.  RMSNorm is hoisted to j==0 (bf16 scratch); the residual is the
    accumulator init; accumulation happens directly in the resident o_ref."""
    @pl.when(pl.program_id(1) == 0)
    def _():
        x = x_ref[...].astype(jnp.float32)
        ms = jnp.mean(x * x, axis=-1, keepdims=True)
        xn_ref[...] = (x * jax.lax.rsqrt(ms + eps) * nw_ref[...]).astype(jnp.bfloat16)
        o_ref[...] = x                       # fused residual add

    xn = xn_ref[...]
    a = jnp.dot(xn, w1_ref[...], preferred_element_type=jnp.float32)
    act = a * jax.nn.sigmoid(a)                                   # SiLU in f32
    g = act * jnp.dot(xn, w3_ref[...], preferred_element_type=jnp.float32)
    o_ref[...] += jnp.dot(g.astype(jnp.bfloat16), w2_ref[...],
                          preferred_element_type=jnp.float32)


def feed_forward(x2d, norm_w, w1, w3, w2, eps):
    """x2d: [M, D] f32; w1/w3: [D, Hh] bf16; w2: [Hh, D] bf16 -> [M, D] f32
    (output already contains the residual x2d)."""
    M, D = x2d.shape
    Hh = w1.shape[1]
    tm = _fit_tile(M, _TM_TARGET)
    th = _fit_tile(Hh, _TN_TARGET)
    return pl.pallas_call(
        functools.partial(_ffn_kernel, eps=eps),
        out_shape=jax.ShapeDtypeStruct((M, D), jnp.float32),
        grid=(M // tm, Hh // th),
        in_specs=[
            pl.BlockSpec((tm, D), lambda i, j: (i, 0)),
            pl.BlockSpec((1, D), lambda i, j: (0, 0)),
            pl.BlockSpec((D, th), lambda i, j: (0, j)),
            pl.BlockSpec((D, th), lambda i, j: (0, j)),
            pl.BlockSpec((th, D), lambda i, j: (j, 0)),
        ],
        out_specs=pl.BlockSpec((tm, D), lambda i, j: (i, 0)),
        scratch_shapes=[pltpu.VMEM((tm, D), jnp.bfloat16)],
        compiler_params=pltpu.CompilerParams(
            dimension_semantics=("parallel", "arbitrary")),
    )(x2d, norm_w.reshape(1, D), w1, w3, w2)


def _attn_kernel(q_ref, k_ref, v_ref, o_ref, *, start_pos):
    """softmax(QK^T + causal mask) V for one (batch, kv_head), with all n_rep
    query heads that share this KV head folded into the row dimension of the
    score matmul (better MXU row occupancy).  1/sqrt(hd) is folded into wq."""
    _, n_rep, S, hd = q_ref.shape
    q = q_ref[0].reshape(n_rep * S, hd)                           # bf16, free view
    k = k_ref[0]                                                  # (T, hd) bf16
    v = v_ref[0]
    # NT matmul on the MXU: contract last dims of q and k (no K transpose).
    s = lax.dot_general(q, k, (((1,), (1,)), ((), ())),
                        preferred_element_type=jnp.float32)       # (n_rep*S, T)
    R, T = s.shape
    # Causal mask generated in-kernel; row r belongs to query position r % S.
    qpos = start_pos + (jax.lax.broadcasted_iota(jnp.int32, (R, T), 0) % S)
    kpos = jax.lax.broadcasted_iota(jnp.int32, (R, T), 1)
    s = jnp.where(kpos > qpos, -jnp.inf, s)
    s = s - jnp.max(s, axis=-1, keepdims=True)
    p = jnp.exp(s)
    p = p / jnp.sum(p, axis=-1, keepdims=True)                    # exact softmax
    o = jnp.dot(p.astype(v.dtype), v, preferred_element_type=jnp.float32)
    o_ref[...] = o.reshape(1, n_rep, S, hd).astype(o_ref.dtype)


def attention_core(q4, k3, v3, head_dim, start_pos):
    """q4: [B, H, S, hd] bf16, k3/v3: [B, T, n_kv*hd] bf16 -> [B, H, S, hd] bf16.

    GQA handled entirely by the grid/index_map: grid is (B, n_kv_heads), the
    query block covers the n_rep heads sharing one KV head (no repeat_kv copy).
    # TODO(synk): for long contexts add a KV-tile grid axis with online-softmax
    # scratch (flash pattern); here the full [T, hd] per kv-head fits in VMEM.
    """
    B, H, S, hd = q4.shape
    _, T, KD = k3.shape
    n_kv = KD // head_dim
    n_rep = H // n_kv
    kv_map = lambda b, g: (b, 0, g)
    return pl.pallas_call(
        functools.partial(_attn_kernel, start_pos=start_pos),
        out_shape=jax.ShapeDtypeStruct((B, H, S, hd), jnp.bfloat16),
        grid=(B, n_kv),
        in_specs=[
            pl.BlockSpec((1, n_rep, S, hd), lambda b, g: (b, g, 0, 0)),
            pl.BlockSpec((1, T, head_dim), kv_map),
            pl.BlockSpec((1, T, head_dim), kv_map),
        ],
        out_specs=pl.BlockSpec((1, n_rep, S, hd), lambda b, g: (b, g, 0, 0)),
        compiler_params=pltpu.CompilerParams(
            dimension_semantics=("parallel", "parallel")),
    )(q4, k3, v3)


# ------------------------------ JAX glue -----------------------------------

def precompute_freqs_cis(dim, end, theta):
    freqs = 1.0 / (theta ** (jnp.arange(0, dim, 2)[: dim // 2].astype(jnp.float32) / dim))
    t = jnp.arange(end, dtype=jnp.float32)
    ang = jnp.outer(t, freqs)
    return jnp.cos(ang), jnp.sin(ang)            # each [end, dim//2]


def apply_rotary_emb(xq, xk, cos, sin):
    # TODO(synk): RoPE rotation kept in plain JAX glue (fused by XLA under jit);
    # an in-kernel pltpu.roll even/odd swizzle epilogue would avoid the
    # strided interleave entirely.
    def rot(x):
        B, S, H, D = x.shape
        xr = x.astype(jnp.float32).reshape(B, S, H, D // 2, 2)
        re, im = xr[..., 0], xr[..., 1]
        c = cos.reshape(1, S, 1, -1)
        s = sin.reshape(1, S, 1, -1)
        out_re = re * c - im * s
        out_im = re * s + im * c
        return jnp.stack([out_re, out_im], axis=-1).reshape(B, S, H, D)
    return rot(xq), rot(xk)


def attn_block(lp, x, start_pos, cos, sin, cfg, cache_k, cache_v):
    B, S, D = x.shape
    H = cfg.n_heads
    n_kv = cfg.n_kv_heads if cfg.n_kv_heads is not None else H
    hd = D // H

    x2d = x.reshape(B * S, D)
    # Fused RMSNorm + (wq|wk|wv) projection; bf16 output halves the writeback.
    qkv = rmsnorm_matmul(x2d, lp['attn_norm'], lp['wqkv'], cfg.norm_eps,
                         out_dtype=jnp.bfloat16)
    q_end = H * hd
    k_end = q_end + n_kv * hd
    xq = qkv[:, :q_end].reshape(B, S, H, hd)
    xk = qkv[:, q_end:k_end].reshape(B, S, n_kv, hd)
    xv = qkv[:, k_end:].reshape(B, S, n_kv, hd)

    xq, xk = apply_rotary_emb(xq, xk, cos, sin)       # rotation in f32
    xq = xq.astype(jnp.bfloat16)
    xk = xk.astype(jnp.bfloat16)

    # TODO(synk): an aliased Pallas cache write (input_output_aliases) would
    # avoid relying on XLA donation for the in-place cache update.
    cache_k = jax.lax.dynamic_update_slice(cache_k, xk, (0, start_pos, 0, 0))
    cache_v = jax.lax.dynamic_update_slice(cache_v, xv, (0, start_pos, 0, 0))

    T = start_pos + S                                 # static (start_pos is static under jit)
    keys = cache_k[:B, :T]                            # [B, T, n_kv, hd] bf16
    values = cache_v[:B, :T]

    # Head-major query layout for GQA folding; KV reshapes are free views.
    q4 = jnp.transpose(xq, (0, 2, 1, 3))              # [B, H, S, hd]
    k3 = keys.reshape(B, T, n_kv * hd)
    v3 = values.reshape(B, T, n_kv * hd)

    attn4 = attention_core(q4, k3, v3, hd, start_pos)             # [B, H, S, hd]
    attn2d = jnp.transpose(attn4, (0, 2, 1, 3)).reshape(B * S, H * hd)

    # wo projection with the residual add fused into the accumulator init.
    h = linear_residual(attn2d, lp['wo'], x2d).reshape(B, S, D)   # x + attn@wo
    return h, cache_k, cache_v


def transformer_forward(params, cfg, tokens, start_pos, caches):
    """Returns (logits, updated_caches). `caches` is a per-layer list of (k, v).
    `start_pos` must be a static Python int (jit static_argnums) so that the
    KV-cache slice length T = start_pos + S stays a static shape."""
    B, S = tokens.shape

    # TODO(synk): embedding gather kept in plain JAX (no clean tiny-scale Pallas gather).
    h = params['tok_emb'][tokens].astype(jnp.float32)             # [B, S, D]

    cos = params['rope_cos'][start_pos:start_pos + S]
    sin = params['rope_sin'][start_pos:start_pos + S]

    new_caches = []
    for lp, (cache_k, cache_v) in zip(params['layers'], caches):
        # attn_block output already includes the residual (h + attn_out).
        h, cache_k, cache_v = attn_block(
            lp, h, start_pos, cos, sin, cfg, cache_k, cache_v)
        # feed_forward output already includes the residual (h + ffn_out).
        h = feed_forward(h.reshape(B * S, -1), lp['ffn_norm'],
                         lp['w1'], lp['w3'], lp['w2'], cfg.norm_eps).reshape(B, S, -1)
        new_caches.append((cache_k, cache_v))

    # Final RMSNorm + lm-head fused.  Full-sequence logits to match the spec.
    # TODO(synk): for pure generation, slice h to the last position first.
    logits = rmsnorm_matmul(h.reshape(B * S, -1), params['final_norm'],
                            params['out_w'], cfg.norm_eps)
    return logits.reshape(B, S, cfg.vocab_size), new_caches


# --------------------------- parameter init --------------------------------

def init_params(cfg, key):
    hd = cfg.dim // cfg.n_heads
    n_kv = cfg.n_kv_heads if cfg.n_kv_heads is not None else cfg.n_heads

    # FFN hidden dim exactly as in the torch FeedForward.__init__
    hidden = 4 * cfg.dim
    hidden = int(2 * hidden / 3)
    if cfg.ffn_dim_multiplier is not None:
        hidden = int(cfg.ffn_dim_multiplier * hidden)
    hidden = cfg.multiple_of * ((hidden + cfg.multiple_of - 1) // cfg.multiple_of)

    def nrm(k, shape, scale=0.02):
        return scale * jax.random.normal(k, shape, dtype=jnp.float32)

    keys = jax.random.split(key, 2 + cfg.n_layers)
    cos, sin = precompute_freqs_cis(hd, cfg.max_seq_len * 2, cfg.rope_theta)
    params = {
        'tok_emb': nrm(keys[0], (cfg.vocab_size, cfg.dim)),
        'out_w': nrm(keys[1], (cfg.dim, cfg.vocab_size)).astype(jnp.bfloat16),
        'final_norm': jnp.ones((cfg.dim,), jnp.float32),
        'rope_cos': cos,
        'rope_sin': sin,
        'layers': [],
    }
    # NOTE: 1/sqrt(head_dim) is folded into wq here (rotation commutes with a
    # scalar scale); unscaled checkpoints must be rescaled before loading.
    qscale = 1.0 / math.sqrt(hd)
    for li in range(cfg.n_layers):
        lk = jax.random.split(keys[2 + li], 7)
        wq = nrm(lk[0], (cfg.dim, cfg.n_heads * hd)) * qscale
        wk = nrm(lk[1], (cfg.dim, n_kv * hd))
        wv = nrm(lk[2], (cfg.dim, n_kv * hd))
        params['layers'].append({
            'wqkv': jnp.concatenate([wq, wk, wv], axis=1).astype(jnp.bfloat16),
            'wo': nrm(lk[3], (cfg.n_heads * hd, cfg.dim)).astype(jnp.bfloat16),
            'w1': nrm(lk[4], (cfg.dim, hidden)).astype(jnp.bfloat16),
            'w2': nrm(lk[5], (hidden, cfg.dim)).astype(jnp.bfloat16),
            'w3': nrm(lk[6], (cfg.dim, hidden)).astype(jnp.bfloat16),
            'attn_norm': jnp.ones((cfg.dim,), jnp.float32),
            'ffn_norm': jnp.ones((cfg.dim,), jnp.float32),
        })
    return params


def init_caches(cfg):
    hd = cfg.dim // cfg.n_heads
    n_kv = cfg.n_kv_heads if cfg.n_kv_heads is not None else cfg.n_heads
    shape = (cfg.max_batch_size, cfg.max_seq_len, n_kv, hd)
    return [(jnp.zeros(shape, jnp.bfloat16), jnp.zeros(shape, jnp.bfloat16))
            for _ in range(cfg.n_layers)]


if __name__ == "__main__":
    cfg = Config()
    key = jax.random.PRNGKey(0)
    pkey, tkey = jax.random.split(key)
    params = init_params(cfg, pkey)
    caches = init_caches(cfg)

    # jit the whole forward: start_pos is static (keeps cache slices static-
    # shaped), the KV caches are donated so the update is in-place.
    fwd = jax.jit(
        lambda p, toks, sp, c: transformer_forward(p, cfg, toks, sp, c),
        static_argnums=(2,), donate_argnums=(3,))

    B, S = 2, 16
    tokens = jax.random.randint(tkey, (B, S), 0, cfg.vocab_size)

    # Prefill.
    logits, caches = fwd(params, tokens, 0, caches)
    jax.block_until_ready(logits)
    assert logits.shape == (B, S, cfg.vocab_size)
    assert logits.dtype == jnp.float32
    assert bool(jnp.all(jnp.isfinite(logits)))

    # One incremental-decode step using the updated KV caches.
    next_tok = jnp.argmax(logits[:, -1, :], axis=-1)[:, None]
    logits2, caches = fwd(params, next_tok, S, caches)
    jax.block_until_ready(logits2)
    assert logits2.shape == (B, 1, cfg.vocab_size)
    assert bool(jnp.all(jnp.isfinite(logits2)))

    print("KERNEL_OK")
</pallas_src>

<mosaic_0001>
module attributes {stable_mosaic.version = 11 : i64} {
  func.func @_rmsnorm_matmul_kernel(%arg0: i32, %arg1: i32, %arg2: memref<32x256xf32, #tpu.memory_space<vmem>>, %arg3: memref<1x256xf32, #tpu.memory_space<vmem>>, %arg4: memref<256x256xbf16, #tpu.memory_space<vmem>>, %arg5: memref<32x256xbf16, #tpu.memory_space<vmem>>, %arg6: memref<32x256xbf16, #tpu.memory_space<vmem>>) attributes {dimension_semantics = [#tpu.dimension_semantics<parallel>, #tpu.dimension_semantics<arbitrary>], iteration_bounds = array<i64: 1, 2>, scalar_prefetch = 0 : i64, scratch_operands = 1 : i64, tpu.core_type = #tpu.core_type<tc>, window_params = [{transform_indices = @transform_0, window_bounds = array<i64: 32, 256>}, {pipeline_mode = #tpu.pipeline_mode<synchronous>, transform_indices = @transform_1, window_bounds = array<i64: 1, 256>}, {transform_indices = @transform_2, window_bounds = array<i64: 256, 256>}, {transform_indices = @transform_3, window_bounds = array<i64: 32, 256>}]} {
    %c0_i32 = arith.constant 0 : i32
    %0 = arith.cmpi eq, %arg1, %c0_i32 : i32
    %1 = arith.extui %0 : i1 to i32
    %c0_i32_0 = arith.constant 0 : i32
    %2 = arith.cmpi ne, %1, %c0_i32_0 : i32
    scf.if %2 {
      %c0_6 = arith.constant 0 : index
      %c0_7 = arith.constant 0 : index
      %8 = vector.load %arg2[%c0_6, %c0_7] : memref<32x256xf32, #tpu.memory_space<vmem>>, vector<32x256xf32>
      %9 = arith.mulf %8, %8 : vector<32x256xf32>
      %cst_8 = arith.constant dense<0.000000e+00> : vector<32xf32>
      %10 = vector.multi_reduction <add>, %9, %cst_8 [1] : vector<32x256xf32> to vector<32xf32>
      %11 = vector.shape_cast %10 : vector<32xf32> to vector<32x1xf32>
      %cst_9 = arith.constant 2.560000e+02 : f32
      %12 = vector.broadcast %cst_9 : f32 to vector<32x1xf32>
      %13 = arith.divf %11, %12 : vector<32x1xf32>
      %cst_10 = arith.constant 9.99999974E-6 : f32
      %14 = vector.broadcast %cst_10 : f32 to vector<32x1xf32>
      %15 = arith.addf %13, %14 : vector<32x1xf32>
      %16 = math.rsqrt %15 : vector<32x1xf32>
      %17 = vector.broadcast %16 : vector<32x1xf32> to vector<32x256xf32>
      %18 = arith.mulf %8, %17 : vector<32x256xf32>
      %c0_11 = arith.constant 0 : index
      %c0_12 = arith.constant 0 : index
      %19 = vector.load %arg3[%c0_11, %c0_12] : memref<1x256xf32, #tpu.memory_space<vmem>>, vector<1x256xf32>
      %20 = vector.broadcast %19 : vector<1x256xf32> to vector<32x256xf32>
      %21 = arith.mulf %18, %20 : vector<32x256xf32>
      %22 = arith.truncf %21 : vector<32x256xf32> to vector<32x256xbf16>
      %c0_13 = arith.constant 0 : index
      %c0_14 = arith.constant 0 : index
      %23 = vector.load %arg6[%c0_13, %c0_14] : memref<32x256xbf16, #tpu.memory_space<vmem>>, vector<32x256xbf16>
      tpu.vector_store %arg6[%c0_13, %c0_14], %22 {strides = array<i32>} : memref<32x256xbf16, #tpu.memory_space<vmem>>, vector<32x256xbf16>,
    } else {
    }
    %c0 = arith.constant 0 : index
    %c0_1 = arith.constant 0 : index
    %3 = vector.load %arg6[%c0, %c0_1] : memref<32x256xbf16, #tpu.memory_space<vmem>>, vector<32x256xbf16>
    %c0_2 = arith.constant 0 : index
    %c0_3 = arith.constant 0 : index
    %4 = vector.load %arg4[%c0_2, %c0_3] : memref<256x256xbf16, #tpu.memory_space<vmem>>, vector<256x256xbf16>
    %cst = arith.constant dense<0.000000e+00> : vector<32x256xf32>
    %5 = tpu.matmul %3, %4, %cst {dimension_numbers = #tpu.dot_dimension_numbers<[1], [0], [0], [1], [0, 0, 1, 1], [], []>} : vector<32x256xbf16>, vector<256x256xbf16>, vector<32x256xf32> -> vector<32x256xf32>
    %6 = arith.truncf %5 : vector<32x256xf32> to vector<32x256xbf16>
    %c0_4 = arith.constant 0 : index
    %c0_5 = arith.constant 0 : index
    %7 = vector.load %arg5[%c0_4, %c0_5] : memref<32x256xbf16, #tpu.memory_space<vmem>>, vector<32x256xbf16>
    tpu.vector_store %arg5[%c0_4, %c0_5], %6 {strides = array<i32>} : memref<32x256xbf16, #tpu.memory_space<vmem>>, vector<32x256xbf16>,
    return
  }
  func.func @transform_0(%arg0: i32, %arg1: i32) -> (i32, i32) {
    %c0_i32 = arith.constant 0 : i32
    %c0_i32_0 = arith.constant 0 : i32
    return %arg0, %c0_i32 : i32, i32
  }
  func.func @transform_1(%arg0: i32, %arg1: i32) -> (i32, i32) {
    %c0_i32 = arith.constant 0 : i32
    %c0_i32_0 = arith.constant 0 : i32
    %c0_i32_1 = arith.constant 0 : i32
    return %c0_i32, %c0_i32_0 : i32, i32
  }
  func.func @transform_2(%arg0: i32, %arg1: i32) -> (i32, i32) {
    %c0_i32 = arith.constant 0 : i32
    %c0_i32_0 = arith.constant 0 : i32
    return %c0_i32, %arg1 : i32, i32
  }
  func.func @transform_3(%arg0: i32, %arg1: i32) -> (i32, i32) {
    %c0_i32 = arith.constant 0 : i32
    return %arg0, %arg1 : i32, i32
  }
}

module attributes {stable_mosaic.version = 11 : i64} {
  func.func @_attn_kernel(%arg0: i32, %arg1: i32, %arg2: memref<1x2x16x128xbf16, #tpu.memory_space<vmem>>, %arg3: memref<1x16x128xbf16, #tpu.memory_space<vmem>>, %arg4: memref<1x16x128xbf16, #tpu.memory_space<vmem>>, %arg5: memref<1x2x16x128xbf16, #tpu.memory_space<vmem>>) attributes {dimension_semantics = [#tpu.dimension_semantics<parallel>, #tpu.dimension_semantics<parallel>], iteration_bounds = array<i64: 2, 1>, scalar_prefetch = 0 : i64, scratch_operands = 0 : i64, tpu.core_type = #tpu.core_type<tc>, window_params = [{transform_indices = @transform_0, window_bounds = array<i64: 1, 2, 16, 128>}, {transform_indices = @transform_1, window_bounds = array<i64: 1, 16, 128>}, {transform_indices = @transform_2, window_bounds = array<i64: 1, 16, 128>}, {transform_indices = @transform_3, window_bounds = array<i64: 1, 2, 16, 128>}]} {
    %c0 = arith.constant 0 : index
    %c0_0 = arith.constant 0 : index
    %c0_1 = arith.constant 0 : index
    %c0_2 = arith.constant 0 : index
    %0 = vector.load %arg2[%c0, %c0_0, %c0_1, %c0_2] : memref<1x2x16x128xbf16, #tpu.memory_space<vmem>>, vector<1x2x16x128xbf16>
    %1 = vector.shape_cast %0 : vector<1x2x16x128xbf16> to vector<2x16x128xbf16>
    %2 = vector.shape_cast %1 : vector<2x16x128xbf16> to vector<32x128xbf16>
    %c0_3 = arith.constant 0 : index
    %c0_4 = arith.constant 0 : index
    %c0_5 = arith.constant 0 : index
    %3 = vector.load %arg3[%c0_3, %c0_4, %c0_5] : memref<1x16x128xbf16, #tpu.memory_space<vmem>>, vector<1x16x128xbf16>
    %4 = vector.shape_cast %3 : vector<1x16x128xbf16> to vector<16x128xbf16>
    %c0_6 = arith.constant 0 : index
    %c0_7 = arith.constant 0 : index
    %c0_8 = arith.constant 0 : index
    %5 = vector.load %arg4[%c0_6, %c0_7, %c0_8] : memref<1x16x128xbf16, #tpu.memory_space<vmem>>, vector<1x16x128xbf16>
    %6 = vector.shape_cast %5 : vector<1x16x128xbf16> to vector<16x128xbf16>
    %cst = arith.constant dense<0.000000e+00> : vector<32x16xf32>
    %7 = tpu.matmul %2, %4, %cst {dimension_numbers = #tpu.dot_dimension_numbers<[1], [1], [0], [0], [0, 0, 1, 0], [], []>} : vector<32x128xbf16>, vector<16x128xbf16>, vector<32x16xf32> -> vector<32x16xf32>
    %8 = tpu.iota {dimensions = array<i32: 0>} : vector<32x16xi32>
    %c16_i32 = arith.constant 16 : i32
    %c0_i32 = arith.constant 0 : i32
    %9 = arith.cmpi eq, %c16_i32, %c0_i32 : i32
    %c1_i32 = arith.constant 1 : i32
    %10 = arith.select %9, %c1_i32, %c16_i32 : i32
    %11 = vector.broadcast %10 : i32 to vector<32x16xi32>
    %12 = arith.remsi %8, %11 : vector<32x16xi32>
    %c0_i32_9 = arith.constant 0 : i32
    %13 = vector.broadcast %c0_i32_9 : i32 to vector<32x16xi32>
    %14 = arith.cmpi ne, %12, %13 : vector<32x16xi32>
    %c0_i32_10 = arith.constant 0 : i32
    %15 = vector.broadcast %c0_i32_10 : i32 to vector<32x16xi32>
    %16 = arith.cmpi slt, %12, %15 : vector<32x16xi32>
    %c0_i32_11 = arith.constant 0 : i32
    %17 = arith.cmpi slt, %10, %c0_i32_11 : i32
    %18 = vector.broadcast %17 : i1 to vector<32x16xi1>
    %19 = vector.broadcast %18 : vector<32x16xi1> to vector<32x16xi1>
    %20 = arith.xori %16, %19 : vector<32x16xi1>
    %21 = arith.andi %20, %14 : vector<32x16xi1>
    %22 = vector.broadcast %10 : i32 to vector<32x16xi32>
    %23 = arith.addi %12, %22 : vector<32x16xi32>
    %24 = arith.select %21, %23, %12 : vector<32x16xi1>, vector<32x16xi32>
    %c0_i32_12 = arith.constant 0 : i32
    %25 = vector.broadcast %c0_i32_12 : i32 to vector<32x16xi32>
    %26 = arith.addi %25, %24 : vector<32x16xi32>
    %27 = tpu.iota {dimensions = array<i32: 1>} : vector<32x16xi32>
    %28 = arith.cmpi sgt, %27, %26 : vector<32x16xi32>
    %cst_13 = arith.constant 0xFF800000 : f32
    %29 = vector.broadcast %cst_13 : f32 to vector<32x16xf32>
    %30 = arith.select %28, %29, %7 : vector<32x16xi1>, vector<32x16xf32>
    %cst_14 = arith.constant dense<0xFF800000> : vector<32xf32>
    %31 = vector.multi_reduction <maximumf>, %30, %cst_14 [1] : vector<32x16xf32> to vector<32xf32>
    %32 = vector.shape_cast %31 : vector<32xf32> to vector<32x1xf32>
    %33 = vector.broadcast %32 : vector<32x1xf32> to vector<32x16xf32>
    %34 = arith.subf %30, %33 : vector<32x16xf32>
    %35 = math.exp %34 : vector<32x16xf32>
    %cst_15 = arith.constant dense<0.000000e+00> : vector<32xf32>
    %36 = vector.multi_reduction <add>, %35, %cst_15 [1] : vector<32x16xf32> to vector<32xf32>
    %37 = vector.shape_cast %36 : vector<32xf32> to vector<32x1xf32>
    %38 = vector.broadcast %37 : vector<32x1xf32> to vector<32x16xf32>
    %39 = arith.divf %35, %38 : vector<32x16xf32>
    %40 = arith.truncf %39 : vector<32x16xf32> to vector<32x16xbf16>
    %cst_16 = arith.constant dense<0.000000e+00> : vector<32x128xf32>
    %41 = tpu.matmul %40, %6, %cst_16 {dimension_numbers = #tpu.dot_dimension_numbers<[1], [0], [0], [1], [0, 0, 1, 1], [], []>} : vector<32x16xbf16>, vector<16x128xbf16>, vector<32x128xf32> -> vector<32x128xf32>
    %42 = vector.shape_cast %41 : vector<32x128xf32> to vector<1x2x16x128xf32>
    %43 = arith.truncf %42 : vector<1x2x16x128xf32> to vector<1x2x16x128xbf16>
    %c0_17 = arith.constant 0 : index
    %c0_18 = arith.constant 0 : index
    %c0_19 = arith.constant 0 : index
    %c0_20 = arith.constant 0 : index
    %44 = vector.load %arg5[%c0_17, %c0_18, %c0_19, %c0_20] : memref<1x2x16x128xbf16, #tpu.memory_space<vmem>>, vector<1x2x16x128xbf16>
    tpu.vector_store %arg5[%c0_17, %c0_18, %c0_19, %c0_20], %43 {strides = array<i32>} : memref<1x2x16x128xbf16, #tpu.memory_space<vmem>>, vector<1x2x16x128xbf16>,
    return
  }
  func.func @transform_0(%arg0: i32, %arg1: i32) -> (i32, i32, i32, i32) {
    %c0_i32 = arith.constant 0 : i32
    %c0_i32_0 = arith.constant 0 : i32
    %c0_i32_1 = arith.constant 0 : i32
    return %arg0, %arg1, %c0_i32, %c0_i32_0 : i32, i32, i32, i32
  }
  func.func @transform_1(%arg0: i32, %arg1: i32) -> (i32, i32, i32) {
    %c0_i32 = arith.constant 0 : i32
    %c0_i32_0 = arith.constant 0 : i32
    return %arg0, %c0_i32, %arg1 : i32, i32, i32
  }
  func.func @transform_2(%arg0: i32, %arg1: i32) -> (i32, i32, i32) {
    %c0_i32 = arith.constant 0 : i32
    %c0_i32_0 = arith.constant 0 : i32
    return %arg0, %c0_i32, %arg1 : i32, i32, i32
  }
  func.func @transform_3(%arg0: i32, %arg1: i32) -> (i32, i32, i32, i32) {
    %c0_i32 = arith.constant 0 : i32
    %c0_i32_0 = arith.constant 0 : i32
    %c0_i32_1 = arith.constant 0 : i32
    return %arg0, %arg1, %c0_i32, %c0_i32_0 : i32, i32, i32, i32
  }
}

module attributes {stable_mosaic.version = 11 : i64} {
  func.func @_matmul_residual_kernel(%arg0: i32, %arg1: i32, %arg2: i32, %arg3: memref<32x256xbf16, #tpu.memory_space<vmem>>, %arg4: memref<256x256xbf16, #tpu.memory_space<vmem>>, %arg5: memref<32x256xf32, #tpu.memory_space<vmem>>, %arg6: memref<32x256xf32, #tpu.memory_space<vmem>>) attributes {dimension_semantics = [#tpu.dimension_semantics<parallel>, #tpu.dimension_semantics<parallel>, #tpu.dimension_semantics<arbitrary>], iteration_bounds = array<i64: 1, 1, 1>, scalar_prefetch = 0 : i64, scratch_operands = 0 : i64, tpu.core_type = #tpu.core_type<tc>, window_params = [{transform_indices = @transform_0, window_bounds = array<i64: 32, 256>}, {transform_indices = @transform_1, window_bounds = array<i64: 256, 256>}, {transform_indices = @transform_2, window_bounds = array<i64: 32, 256>}, {transform_indices = @transform_3, window_bounds = array<i64: 32, 256>}]} {
    %c0_i32 = arith.constant 0 : i32
    %0 = arith.cmpi eq, %arg2, %c0_i32 : i32
    %1 = arith.extui %0 : i1 to i32
    %c0_i32_0 = arith.constant 0 : i32
    %2 = arith.cmpi ne, %1, %c0_i32_0 : i32
    scf.if %2 {
      %c0_8 = arith.constant 0 : index
      %c0_9 = arith.constant 0 : index
      %9 = vector.load %arg5[%c0_8, %c0_9] : memref<32x256xf32, #tpu.memory_space<vmem>>, vector<32x256xf32>
      %c0_10 = arith.constant 0 : index
      %c0_11 = arith.constant 0 : index
      %10 = vector.load %arg6[%c0_10, %c0_11] : memref<32x256xf32, #tpu.memory_space<vmem>>, vector<32x256xf32>
      tpu.vector_store %arg6[%c0_10, %c0_11], %9 {strides = array<i32>} : memref<32x256xf32, #tpu.memory_space<vmem>>, vector<32x256xf32>,
    } else {
    }
    %c0 = arith.constant 0 : index
    %c0_1 = arith.constant 0 : index
    %3 = vector.load %arg6[%c0, %c0_1] : memref<32x256xf32, #tpu.memory_space<vmem>>, vector<32x256xf32>
    %c0_2 = arith.constant 0 : index
    %c0_3 = arith.constant 0 : index
    %4 = vector.load %arg3[%c0_2, %c0_3] : memref<32x256xbf16, #tpu.memory_space<vmem>>, vector<32x256xbf16>
    %c0_4 = arith.constant 0 : index
    %c0_5 = arith.constant 0 : index
    %5 = vector.load %arg4[%c0_4, %c0_5] : memref<256x256xbf16, #tpu.memory_space<vmem>>, vector<256x256xbf16>
    %cst = arith.constant dense<0.000000e+00> : vector<32x256xf32>
    %6 = tpu.matmul %4, %5, %cst {dimension_numbers = #tpu.dot_dimension_numbers<[1], [0], [0], [1], [0, 0, 1, 1], [], []>} : vector<32x256xbf16>, vector<256x256xbf16>, vector<32x256xf32> -> vector<32x256xf32>
    %7 = arith.addf %3, %6 : vector<32x256xf32>
    %c0_6 = arith.constant 0 : index
    %c0_7 = arith.constant 0 : index
    %8 = vector.load %arg6[%c0_6, %c0_7] : memref<32x256xf32, #tpu.memory_space<vmem>>, vector<32x256xf32>
    tpu.vector_store %arg6[%c0_6, %c0_7], %7 {strides = array<i32>} : memref<32x256xf32, #tpu.memory_space<vmem>>, vector<32x256xf32>,
    return
  }
  func.func @transform_0(%arg0: i32, %arg1: i32, %arg2: i32) -> (i32, i32) {
    %c0_i32 = arith.constant 0 : i32
    return %arg0, %arg2 : i32, i32
  }
  func.func @transform_1(%arg0: i32, %arg1: i32, %arg2: i32) -> (i32, i32) {
    %c0_i32 = arith.constant 0 : i32
    return %arg2, %arg1 : i32, i32
  }
  func.func @transform_2(%arg0: i32, %arg1: i32, %arg2: i32) -> (i32, i32) {
    %c0_i32 = arith.constant 0 : i32
    return %arg0, %arg1 : i32, i32
  }
  func.func @transform_3(%arg0: i32, %arg1: i32, %arg2: i32) -> (i32, i32) {
    %c0_i32 = arith.constant 0 : i32
    return %arg0, %arg1 : i32, i32
  }
}

module attributes {stable_mosaic.version = 11 : i64} {
  func.func @_rmsnorm_matmul_kernel(%arg0: i32, %arg1: i32, %arg2: memref<32x256xf32, #tpu.memory_space<vmem>>, %arg3: memref<1x256xf32, #tpu.memory_space<vmem>>, %arg4: memref<256x256xbf16, #tpu.memory_space<vmem>>, %arg5: memref<32x256xf32, #tpu.memory_space<vmem>>, %arg6: memref<32x256xbf16, #tpu.memory_space<vmem>>) attributes {dimension_semantics = [#tpu.dimension_semantics<parallel>, #tpu.dimension_semantics<arbitrary>], iteration_bounds = array<i64: 1, 1>, scalar_prefetch = 0 : i64, scratch_operands = 1 : i64, tpu.core_type = #tpu.core_type<tc>, window_params = [{transform_indices = @transform_0, window_bounds = array<i64: 32, 256>}, {pipeline_mode = #tpu.pipeline_mode<synchronous>, transform_indices = @transform_1, window_bounds = array<i64: 1, 256>}, {transform_indices = @transform_2, window_bounds = array<i64: 256, 256>}, {transform_indices = @transform_3, window_bounds = array<i64: 32, 256>}]} {
    %c0_i32 = arith.constant 0 : i32
    %0 = arith.cmpi eq, %arg1, %c0_i32 : i32
    %1 = arith.extui %0 : i1 to i32
    %c0_i32_0 = arith.constant 0 : i32
    %2 = arith.cmpi ne, %1, %c0_i32_0 : i32
    scf.if %2 {
      %c0_6 = arith.constant 0 : index
      %c0_7 = arith.constant 0 : index
      %7 = vector.load %arg2[%c0_6, %c0_7] : memref<32x256xf32, #tpu.memory_space<vmem>>, vector<32x256xf32>
      %8 = arith.mulf %7, %7 : vector<32x256xf32>
      %cst_8 = arith.constant dense<0.000000e+00> : vector<32xf32>
      %9 = vector.multi_reduction <add>, %8, %cst_8 [1] : vector<32x256xf32> to vector<32xf32>
      %10 = vector.shape_cast %9 : vector<32xf32> to vector<32x1xf32>
      %cst_9 = arith.constant 2.560000e+02 : f32
      %11 = vector.broadcast %cst_9 : f32 to vector<32x1xf32>
      %12 = arith.divf %10, %11 : vector<32x1xf32>
      %cst_10 = arith.constant 9.99999974E-6 : f32
      %13 = vector.broadcast %cst_10 : f32 to vector<32x1xf32>
      %14 = arith.addf %12, %13 : vector<32x1xf32>
      %15 = math.rsqrt %14 : vector<32x1xf32>
      %16 = vector.broadcast %15 : vector<32x1xf32> to vector<32x256xf32>
      %17 = arith.mulf %7, %16 : vector<32x256xf32>
      %c0_11 = arith.constant 0 : index
      %c0_12 = arith.constant 0 : index
      %18 = vector.load %arg3[%c0_11, %c0_12] : memref<1x256xf32, #tpu.memory_space<vmem>>, vector<1x256xf32>
      %19 = vector.broadcast %18 : vector<1x256xf32> to vector<32x256xf32>
      %20 = arith.mulf %17, %19 : vector<32x256xf32>
      %21 = arith.truncf %20 : vector<32x256xf32> to vector<32x256xbf16>
      %c0_13 = arith.constant 0 : index
      %c0_14 = arith.constant 0 : index
      %22 = vector.load %arg6[%c0_13, %c0_14] : memref<32x256xbf16, #tpu.memory_space<vmem>>, vector<32x256xbf16>
      tpu.vector_store %arg6[%c0_13, %c0_14], %21 {strides = array<i32>} : memref<32x256xbf16, #tpu.memory_space<vmem>>, vector<32x256xbf16>,
    } else {
    }
    %c0 = arith.constant 0 : index
    %c0_1 = arith.constant 0 : index
    %3 = vector.load %arg6[%c0, %c0_1] : memref<32x256xbf16, #tpu.memory_space<vmem>>, vector<32x256xbf16>
    %c0_2 = arith.constant 0 : index
    %c0_3 = arith.constant 0 : index
    %4 = vector.load %arg4[%c0_2, %c0_3] : memref<256x256xbf16, #tpu.memory_space<vmem>>, vector<256x256xbf16>
    %cst = arith.constant dense<0.000000e+00> : vector<32x256xf32>
    %5 = tpu.matmul %3, %4, %cst {dimension_numbers = #tpu.dot_dimension_numbers<[1], [0], [0], [1], [0, 0, 1, 1], [], []>} : vector<32x256xbf16>, vector<256x256xbf16>, vector<32x256xf32> -> vector<32x256xf32>
    %c0_4 = arith.constant 0 : index
    %c0_5 = arith.constant 0 : index
    %6 = vector.load %arg5[%c0_4, %c0_5] : memref<32x256xf32, #tpu.memory_space<vmem>>, vector<32x256xf32>
    tpu.vector_store %arg5[%c0_4, %c0_5], %5 {strides = array<i32>} : memref<32x256xf32, #tpu.memory_space<vmem>>, vector<32x256xf32>,
    return
  }
  func.func @transform_0(%arg0: i32, %arg1: i32) -> (i32, i32) {
    %c0_i32 = arith.constant 0 : i32
    %c0_i32_0 = arith.constant 0 : i32
    return %arg0, %c0_i32 : i32, i32
  }
  func.func @transform_1(%arg0: i32, %arg1: i32) -> (i32, i32) {
    %c0_i32 = arith.constant 0 : i32
    %c0_i32_0 = arith.constant 0 : i32
    %c0_i32_1 = arith.constant 0 : i32
    return %c0_i32, %c0_i32_0 : i32, i32
  }
  func.func @transform_2(%arg0: i32, %arg1: i32) -> (i32, i32) {
    %c0_i32 = arith.constant 0 : i32
    %c0_i32_0 = arith.constant 0 : i32
    return %c0_i32, %arg1 : i32, i32
  }
  func.func @transform_3(%arg0: i32, %arg1: i32) -> (i32, i32) {
    %c0_i32 = arith.constant 0 : i32
    return %arg0, %arg1 : i32, i32
  }
}

module attributes {stable_mosaic.version = 11 : i64} {
  func.func @_ffn_kernel(%arg0: i32, %arg1: i32, %arg2: memref<32x256xf32, #tpu.memory_space<vmem>>, %arg3: memref<1x256xf32, #tpu.memory_space<vmem>>, %arg4: memref<256x256xbf16, #tpu.memory_space<vmem>>, %arg5: memref<256x256xbf16, #tpu.memory_space<vmem>>, %arg6: memref<256x256xbf16, #tpu.memory_space<vmem>>, %arg7: memref<32x256xf32, #tpu.memory_space<vmem>>, %arg8: memref<32x256xbf16, #tpu.memory_space<vmem>>) attributes {dimension_semantics = [#tpu.dimension_semantics<parallel>, #tpu.dimension_semantics<arbitrary>], iteration_bounds = array<i64: 1, 3>, scalar_prefetch = 0 : i64, scratch_operands = 1 : i64, tpu.core_type = #tpu.core_type<tc>, window_params = [{transform_indices = @transform_0, window_bounds = array<i64: 32, 256>}, {pipeline_mode = #tpu.pipeline_mode<synchronous>, transform_indices = @transform_1, window_bounds = array<i64: 1, 256>}, {transform_indices = @transform_2, window_bounds = array<i64: 256, 256>}, {transform_indices = @transform_3, window_bounds = array<i64: 256, 256>}, {transform_indices = @transform_4, window_bounds = array<i64: 256, 256>}, {transform_indices = @transform_5, window_bounds = array<i64: 32, 256>}]} {
    %c0_i32 = arith.constant 0 : i32
    %0 = arith.cmpi eq, %arg1, %c0_i32 : i32
    %1 = arith.extui %0 : i1 to i32
    %c0_i32_0 = arith.constant 0 : i32
    %2 = arith.cmpi ne, %1, %c0_i32_0 : i32
    scf.if %2 {
      %c0_15 = arith.constant 0 : index
      %c0_16 = arith.constant 0 : index
      %21 = vector.load %arg2[%c0_15, %c0_16] : memref<32x256xf32, #tpu.memory_space<vmem>>, vector<32x256xf32>
      %22 = arith.mulf %21, %21 : vector<32x256xf32>
      %cst_17 = arith.constant dense<0.000000e+00> : vector<32xf32>
      %23 = vector.multi_reduction <add>, %22, %cst_17 [1] : vector<32x256xf32> to vector<32xf32>
      %24 = vector.shape_cast %23 : vector<32xf32> to vector<32x1xf32>
      %cst_18 = arith.constant 2.560000e+02 : f32
      %25 = vector.broadcast %cst_18 : f32 to vector<32x1xf32>
      %26 = arith.divf %24, %25 : vector<32x1xf32>
      %cst_19 = arith.constant 9.99999974E-6 : f32
      %27 = vector.broadcast %cst_19 : f32 to vector<32x1xf32>
      %28 = arith.addf %26, %27 : vector<32x1xf32>
      %29 = math.rsqrt %28 : vector<32x1xf32>
      %30 = vector.broadcast %29 : vector<32x1xf32> to vector<32x256xf32>
      %31 = arith.mulf %21, %30 : vector<32x256xf32>
      %c0_20 = arith.constant 0 : index
      %c0_21 = arith.constant 0 : index
      %32 = vector.load %arg3[%c0_20, %c0_21] : memref<1x256xf32, #tpu.memory_space<vmem>>, vector<1x256xf32>
      %33 = vector.broadcast %32 : vector<1x256xf32> to vector<32x256xf32>
      %34 = arith.mulf %31, %33 : vector<32x256xf32>
      %35 = arith.truncf %34 : vector<32x256xf32> to vector<32x256xbf16>
      %c0_22 = arith.constant 0 : index
      %c0_23 = arith.constant 0 : index
      %36 = vector.load %arg8[%c0_22, %c0_23] : memref<32x256xbf16, #tpu.memory_space<vmem>>, vector<32x256xbf16>
      tpu.vector_store %arg8[%c0_22, %c0_23], %35 {strides = array<i32>} : memref<32x256xbf16, #tpu.memory_space<vmem>>, vector<32x256xbf16>,
      %c0_24 = arith.constant 0 : index
      %c0_25 = arith.constant 0 : index
      %37 = vector.load %arg7[%c0_24, %c0_25] : memref<32x256xf32, #tpu.memory_space<vmem>>, vector<32x256xf32>
      tpu.vector_store %arg7[%c0_24, %c0_25], %21 {strides = array<i32>} : memref<32x256xf32, #tpu.memory_space<vmem>>, vector<32x256xf32>,
    } else {
    }
    %c0 = arith.constant 0 : index
    %c0_1 = arith.constant 0 : index
    %3 = vector.load %arg8[%c0, %c0_1] : memref<32x256xbf16, #tpu.memory_space<vmem>>, vector<32x256xbf16>
    %c0_2 = arith.constant 0 : index
    %c0_3 = arith.constant 0 : index
    %4 = vector.load %arg4[%c0_2, %c0_3] : memref<256x256xbf16, #tpu.memory_space<vmem>>, vector<256x256xbf16>
    %cst = arith.constant dense<0.000000e+00> : vector<32x256xf32>
    %5 = tpu.matmul %3, %4, %cst {dimension_numbers = #tpu.dot_dimension_numbers<[1], [0], [0], [1], [0, 0, 1, 1], [], []>} : vector<32x256xbf16>, vector<256x256xbf16>, vector<32x256xf32> -> vector<32x256xf32>
    %6 = arith.negf %5 : vector<32x256xf32>
    %7 = math.exp %6 : vector<32x256xf32>
    %cst_4 = arith.constant 1.000000e+00 : f32
    %8 = vector.broadcast %cst_4 : f32 to vector<32x256xf32>
    %9 = arith.addf %8, %7 : vector<32x256xf32>
    %10 = arith.divf %8, %9 : vector<32x256xf32>
    %11 = arith.mulf %5, %10 : vector<32x256xf32>
    %c0_5 = arith.constant 0 : index
    %c0_6 = arith.constant 0 : index
    %12 = vector.load %arg5[%c0_5, %c0_6] : memref<256x256xbf16, #tpu.memory_space<vmem>>, vector<256x256xbf16>
    %cst_7 = arith.constant dense<0.000000e+00> : vector<32x256xf32>
    %13 = tpu.matmul %3, %12, %cst_7 {dimension_numbers = #tpu.dot_dimension_numbers<[1], [0], [0], [1], [0, 0, 1, 1], [], []>} : vector<32x256xbf16>, vector<256x256xbf16>, vector<32x256xf32> -> vector<32x256xf32>
    %14 = arith.mulf %11, %13 : vector<32x256xf32>
    %c0_8 = arith.constant 0 : index
    %c0_9 = arith.constant 0 : index
    %15 = vector.load %arg7[%c0_8, %c0_9] : memref<32x256xf32, #tpu.memory_space<vmem>>, vector<32x256xf32>
    %16 = arith.truncf %14 : vector<32x256xf32> to vector<32x256xbf16>
    %c0_10 = arith.constant 0 : index
    %c0_11 = arith.constant 0 : index
    %17 = vector.load %arg6[%c0_10, %c0_11] : memref<256x256xbf16, #tpu.memory_space<vmem>>, vector<256x256xbf16>
    %cst_12 = arith.constant dense<0.000000e+00> : vector<32x256xf32>
    %18 = tpu.matmul %16, %17, %cst_12 {dimension_numbers = #tpu.dot_dimension_numbers<[1], [0], [0], [1], [0, 0, 1, 1], [], []>} : vector<32x256xbf16>, vector<256x256xbf16>, vector<32x256xf32> -> vector<32x256xf32>
    %19 = arith.addf %15, %18 : vector<32x256xf32>
    %c0_13 = arith.constant 0 : index
    %c0_14 = arith.constant 0 : index
    %20 = vector.load %arg7[%c0_13, %c0_14] : memref<32x256xf32, #tpu.memory_space<vmem>>, vector<32x256xf32>
    tpu.vector_store %arg7[%c0_13, %c0_14], %19 {strides = array<i32>} : memref<32x256xf32, #tpu.memory_space<vmem>>, vector<32x256xf32>,
    return
  }
  func.func @transform_0(%arg0: i32, %arg1: i32) -> (i32, i32) {
    %c0_i32 = arith.constant 0 : i32
    %c0_i32_0 = arith.constant 0 : i32
    return %arg0, %c0_i32 : i32, i32
  }
  func.func @transform_1(%arg0: i32, %arg1: i32) -> (i32, i32) {
    %c0_i32 = arith.constant 0 : i32
    %c0_i32_0 = arith.constant 0 : i32
    %c0_i32_1 = arith.constant 0 : i32
    return %c0_i32, %c0_i32_0 : i32, i32
  }
  func.func @transform_2(%arg0: i32, %arg1: i32) -> (i32, i32) {
    %c0_i32 = arith.constant 0 : i32
    %c0_i32_0 = arith.constant 0 : i32
    return %c0_i32, %arg1 : i32, i32
  }
  func.func @transform_3(%arg0: i32, %arg1: i32) -> (i32, i32) {
    %c0_i32 = arith.constant 0 : i32
    %c0_i32_0 = arith.constant 0 : i32
    return %c0_i32, %arg1 : i32, i32
  }
  func.func @transform_4(%arg0: i32, %arg1: i32) -> (i32, i32) {
    %c0_i32 = arith.constant 0 : i32
    %c0_i32_0 = arith.constant 0 : i32
    return %arg1, %c0_i32 : i32, i32
  }
  func.func @transform_5(%arg0: i32, %arg1: i32) -> (i32, i32) {
    %c0_i32 = arith.constant 0 : i32
    %c0_i32_0 = arith.constant 0 : i32
    return %arg0, %c0_i32 : i32, i32
  }
}

</mosaic_0001>

<bundles_post_ra>
// kernel: _lambda_.9
= control target key start
LH: loop header
LB: loop body
LE: loop exit
PB: predicated region body
PF: predicated region fallthrough
CT: control target
= control target key end

     0   :  { %s1236_s12 = smov 0   ;;  %s1238_s13 = smov 0   ;;  %s1520_s0 = inlined_call_operand.vmem [shape: f32[32,256], index: 0, kind: input, shape index: {}]   ;;  %s1521_s1 = inlined_call_operand.vmem [shape: f32[1,256], index: 1, kind: input, shape index: {}]   ;;  %s1522_s2 = inlined_call_operand.vmem [shape: bf16[256,512], index: 2, kind: input, shape index: {}]   ;;  %s1523_s3 = inlined_call_operand.vmem [shape: bf16[32,512], index: 3, kind: output, shape index: {}]  }
   0x1   :  { %s1240_s14 = smov 0   ;;  %s1242_s15 = smov 0  }
   0x2   :  { %s1244_s16 = smov 0  }
   0x3 LB: > { %s22_s17 = sadd.s32 1, %s1209_s15  ;;  %s925_s18 = sadd.s32 4294967295, %s1213_s16   ;;  %s1213_s16 = sphi %s1244_s16, %s13_s16   ;;  %s1209_s15 = sphi %s1242_s15, %s1528_s15   ;;  %s1205_s14 = sphi %s1240_s14, %s1527_s14   ;;  %s1201_s13 = sphi %s1238_s13, %s1526_s13   ;;  %s1197_s12 = sphi %s1236_s12, %s1525_s12  }
   0x4   : > { %p23_p0 = scmp.ge.s32.totalorder %s22_s17, 2  ;;  %p86_p1 = scmp.ne.s32.totalorder %s1201_s13, %s1197_s12 }
   0x5   : > { %p87_p2 = scmp.eq.s32.totalorder %s1213_s16, 0  ;;  %p118_p4 = scmp.eq.s32.totalorder %s925_s18, 1 }
   0x6   : > { %s1530_s17 = smov (%p23_p0, %s22_s17), 0  ;;  %s79_s20 = sadd.s32 1, %s1201_s13 }
   0x7   : > { %p88_p3 = por %p87_p2, %p86_p1  ;;  %s76_s19 = ssub.s32 %s1209_s15, %s1530_s17 }
   0x8   : > { %p77_p5 = scmp.eq.s32.totalorder %s76_s19, 0  ;;  %p1271_p6 = por %p118_p4, %p86_p1 }
   0x9   : > { %p929_p7 = scmp.ge.s32.totalorder %s1213_s16, 2 }
   0xa   : > { %s1276_s22 = scalar_select %p77_p5, %s1201_s13, %s79_s20  }
   0xb   : > { %153 = sbr.rel (%p929_p7) target bundleno = 52 (0x34), region = 24 }
  0x10   : > { %156 = sbr.rel (!%p88_p3) target bundleno = 52 (0x34), region = 28  ;;  %s158_s23 = sand.u32 (%p88_p3), 1, %s1201_s13  }
  0x11   : > { %s1086_s24 = sshll.u32 (%p88_p3), %s1209_s15, 3  ;;  %s930_s25 = sshll.u32 (%p88_p3), %s158_s23, 8 }
  0x12   : > { %s1284_s28 = scalar_lea.vmem (%p88_p3), %s1522_s2, %s1086_s24  ;;  %s1289_s29 = scalar_lea.vmem (%p88_p3), [#allocation3], %s930_s25 }
  0x13   : > { %v254_v0 = vld [vmem:[%s1284_s28] sm:$0xff] (%p88_p3)  ;;  %v256_v1 = vld [vmem:[%s1284_s28 + $0x10] sm:$0xff] (%p88_p3) }
  0x14   : > { %v258_v2 = vld [vmem:[%s1284_s28 + $0x20] sm:$0xff] (%p88_p3)  ;;  %255 = vst [vmem:[%s1289_s29] sm:$0xff] (%p88_p3), %v254_v0  ;;  %v260_v3 = vld [vmem:[%s1284_s28 + $0x30] sm:$0xff] (%p88_p3) }
  0x15   : > { %257 = vst [vmem:[%s1289_s29 + $0x8] sm:$0xff] %v256_v1  ;;  %v262_v4 = vld [vmem:[%s1284_s28 + $0x40] sm:$0xff]  ;;  %v264_v5 = vld [vmem:[%s1284_s28 + $0x50] sm:$0xff] }
  0x16   : > { %259 = vst [vmem:[%s1289_s29 + $0x10] sm:$0xff] %v258_v2  ;;  %v266_v6 = vld [vmem:[%s1284_s28 + $0x60] sm:$0xff]  ;;  %v268_v7 = vld [vmem:[%s1284_s28 + $0x70] sm:$0xff] }
  0x17   : > { %261 = vst [vmem:[%s1289_s29 + $0x18] sm:$0xff] %v260_v3  ;;  %v270_v8 = vld [vmem:[%s1284_s28 + $0x80] sm:$0xff]  ;;  %v272_v9 = vld [vmem:[%s1284_s28 + $0x90] sm:$0xff] }
  0x18   : > { %263 = vst [vmem:[%s1289_s29 + $0x20] sm:$0xff] %v262_v4  ;;  %v274_v10 = vld [vmem:[%s1284_s28 + $0xa0] sm:$0xff]  ;;  %v276_v11 = vld [vmem:[%s1284_s28 + $0xb0] sm:$0xff] }
  0x19   : > { %265 = vst [vmem:[%s1289_s29 + $0x28] sm:$0xff] %v264_v5  ;;  %v278_v12 = vld [vmem:[%s1284_s28 + $0xc0] sm:$0xff]  ;;  %v280_v13 = vld [vmem:[%s1284_s28 + $0xd0] sm:$0xff] }
  0x1a   : > { %267 = vst [vmem:[%s1289_s29 + $0x30] sm:$0xff] %v266_v6  ;;  %v282_v14 = vld [vmem:[%s1284_s28 + $0xe0] sm:$0xff]  ;;  %v284_v15 = vld [vmem:[%s1284_s28 + $0xf0] sm:$0xff] }
  0x1b   : > { %269 = vst [vmem:[%s1289_s29 + $0x38] sm:$0xff] %v268_v7  ;;  %v286_v16 = vld [vmem:[%s1284_s28 + $0x100] sm:$0xff]  ;;  %v288_v17 = vld [vmem:[%s1284_s28 + $0x110] sm:$0xff] }
  0x1c   : > { %271 = vst [vmem:[%s1289_s29 + $0x40] sm:$0xff] %v270_v8  ;;  %v290_v18 = vld [vmem:[%s1284_s28 + $0x120] sm:$0xff]  ;;  %v292_v19 = vld [vmem:[%s1284_s28 + $0x130] sm:$0xff] }
  0x1d   : > { %273 = vst [vmem:[%s1289_s29 + $0x48] sm:$0xff] %v272_v9  ;;  %v294_v20 = vld [vmem:[%s1284_s28 + $0x140] sm:$0xff]  ;;  %v296_v21 = vld [vmem:[%s1284_s28 + $0x150] sm:$0xff] }
  0x1e   : > { %275 = vst [vmem:[%s1289_s29 + $0x50] sm:$0xff] %v274_v10  ;;  %v298_v22 = vld [vmem:[%s1284_s28 + $0x160] sm:$0xff]  ;;  %v300_v23 = vld [vmem:[%s1284_s28 + $0x170] sm:$0xff] }
  0x1f   : > { %277 = vst [vmem:[%s1289_s29 + $0x58] sm:$0xff] %v276_v11  ;;  %v302_v24 = vld [vmem:[%s1284_s28 + $0x180] sm:$0xff]  ;;  %v304_v25 = vld [vmem:[%s1284_s28 + $0x190] sm:$0xff] }
  0x20   : > { %279 = vst [vmem:[%s1289_s29 + $0x60] sm:$0xff] %v278_v12  ;;  %v306_v26 = vld [vmem:[%s1284_s28 + $0x1a0] sm:$0xff]  ;;  %v308_v27 = vld [vmem:[%s1284_s28 + $0x1b0] sm:$0xff] }
  0x21   : > { %281 = vst [vmem:[%s1289_s29 + $0x68] sm:$0xff] %v280_v13  ;;  %v310_v28 = vld [vmem:[%s1284_s28 + $0x1c0] sm:$0xff]  ;;  %v312_v29 = vld [vmem:[%s1284_s28 + $0x1d0] sm:$0xff] }
  0x22   : > { %283 = vst [vmem:[%s1289_s29 + $0x70] sm:$0xff] %v282_v14  ;;  %v314_v30 = vld [vmem:[%s1284_s28 + $0x1e0] sm:$0xff]  ;;  %v316_v31 = vld [vmem:[%s1284_s28 + $0x1f0] sm:$0xff] }
  0x23   : > { %285 = vst [vmem:[%s1289_s29 + $0x78] sm:$0xff] %v284_v15 }
  0x24   : > { %287 = vst [vmem:[%s1289_s29 + $0x80] sm:$0xff] %v286_v16 }
  0x25   : > { %289 = vst [vmem:[%s1289_s29 + $0x88] sm:$0xff] %v288_v17 }
  0x26   : > { %291 = vst [vmem:[%s1289_s29 + $0x90] sm:$0xff] %v290_v18 }
  0x27   : > { %293 = vst [vmem:[%s1289_s29 + $0x98] sm:$0xff] %v292_v19 }
  0x28   : > { %295 = vst [vmem:[%s1289_s29 + $0xa0] sm:$0xff] %v294_v20 }
  0x29   : > { %297 = vst [vmem:[%s1289_s29 + $0xa8] sm:$0xff] %v296_v21 }
  0x2a   : > { %299 = vst [vmem:[%s1289_s29 + $0xb0] sm:$0xff] %v298_v22 }
  0x2b   : > { %301 = vst [vmem:[%s1289_s29 + $0xb8] sm:$0xff] %v300_v23 }
  0x2c   : > { %303 = vst [vmem:[%s1289_s29 + $0xc0] sm:$0xff] %v302_v24 }
  0x2d   : > { %305 = vst [vmem:[%s1289_s29 + $0xc8] sm:$0xff] %v304_v25 }
  0x2e   : > { %307 = vst [vmem:[%s1289_s29 + $0xd0] sm:$0xff] %v306_v26 }
  0x2f   : > { %309 = vst [vmem:[%s1289_s29 + $0xd8] sm:$0xff] %v308_v27 }
  0x30   : > { %311 = vst [vmem:[%s1289_s29 + $0xe0] sm:$0xff] %v310_v28 }
  0x31   : > { %313 = vst [vmem:[%s1289_s29 + $0xe8] sm:$0xff] %v312_v29 }
  0x32   : > { %315 = vst [vmem:[%s1289_s29 + $0xf0] sm:$0xff] %v314_v30 }
  0x33   : > { %317 = vst [vmem:[%s1289_s29 + $0xf8] sm:$0xff] %v316_v31 }
  0x34 PF: > { %p933_p8 = scmp.ge.s32.totalorder %s1213_s16, 1  ;;  %p322_p9 = scmp.lt.s32.totalorder %s1213_s16, 3 }
  0x36   : > { %p323_p10 = pnand %p933_p8, %p322_p9 }
  0x37   : > { %s329_s30 = sand.u32 (!%p323_p10), 1, %s1197_s12   ;;  %p936_p11 = scmp.ne.s32.totalorder (!%p323_p10), %s1205_s14, 0 }
  0x38   : > { %326 = sbr.rel (%p323_p10) target bundleno = 430 (0x1ae), region = 66  ;;  %s934_s4 = sshll.u32 (!%p323_p10), %s329_s30, 8 }
  0x39   : > { %s935_s5 = sshll.u32 (!%p323_p10), %s329_s30, 5  ;;  %s1355_s6 = scalar_lea.vmem (!%p323_p10), [#allocation3], %s934_s4 }
  0x3a   : > { %s1357_s7 = scalar_lea.vmem (!%p323_p10), [#allocation4], %s935_s5 }
  0x3d   : > { %370 = sbr.rel (%p936_p11) target bundleno = 225 (0xe1), region = 74 }
  0x42   : > { %v1363_v32 = vld [vmem:[%s1520_s0 + $0x20] sm:$0xff]  ;;  %v1368_v33 = vld [vmem:[%s1520_s0 + $0x28] sm:$0xff]  ;;  %v1391_v40 = vld [vmem:[%s1520_s0 + $0x30] sm:$0xff]  ;;  %v1215_v52 = vmov 256.0  }
  0x43   : > { %v1373_v34 = vld [vmem:[%s1520_s0] sm:$0xff]  ;;  %v383_v35 = vmul.f32 %v1363_v32, %v1363_v32  ;;  %v384_v36 = vmul.f32 %v1368_v33, %v1368_v33  ;;  %v1382_v37 = vld [vmem:[%s1520_s0 + $0x8] sm:$0xff]  ;;  %v1396_v41 = vld [vmem:[%s1520_s0 + $0x38] sm:$0xff]  ;;  %v385_v46 = vmul.f32 %v1391_v40, %v1391_v40  ;;  %1165 = vrcp.f32 %v1215_v52 }
  0x44   : > { %v379_v38 = vmul.f32 %v1373_v34, %v1373_v34  ;;  %v380_v39 = vmul.f32 %v1382_v37, %v1382_v37  ;;  %v1401_v43 = vld [vmem:[%s1520_s0 + $0x10] sm:$0xff]  ;;  %v1406_v44 = vld [vmem:[%s1520_s0 + $0x18] sm:$0xff]  ;;  %v386_v47 = vmul.f32 %v1396_v41, %v1396_v41  ;;  %v462_v14 = vld [vmem:[%s1521_s1] sm:$0x3] }
  0x45   : > { %v393_v42 = vadd.f32 %v384_v36, %v383_v35  ;;  %v381_v48 = vmul.f32 %v1401_v43, %v1401_v43  ;;  %v382_v49 = vmul.f32 %v1406_v44, %v1406_v44  ;;  %v464_v20 = vperm.slane %v462_v14, 0 }
  0x46   : > { %v387_v45 = vadd.f32 %v380_v39, %v379_v38  ;;  %v396_v50 = vadd.f32 %v386_v47, %v385_v46  ;;  %v465_v23 = vperm.slane %v462_v14, 1 }
  0x47   : > { %394 = vadd.xlane.f32.xlu1 %v393_v42  ;;  %v390_v51 = vadd.f32 %v382_v49, %v381_v48 }
  0x48   : > { %388 = vadd.xlane.f32.xlu0 %v387_v45 }
  0x49   : > { %v1166_v53 = vpop.eup %1165 }
  0x4a   : > { %v400_v54 = vmul.f32 256.0, %v1166_v53  ;;  %vm404_vm0 = vweird.f32 %v1166_v53 }
  0x4c   : > { %v401_v55 = vsub.f32 1.0, %v400_v54 }
  0x4e   : > { %v402_v56 = vmul.f32 %v1166_v53, %v401_v55 }
  0x4f   : > { %397 = vadd.xlane.f32.xlu1 %v396_v50 }
  0x50   : > { %391 = vadd.xlane.f32.xlu0 %v390_v51  ;;  %v403_v57 = vadd.f32 %v1166_v53, %v402_v56 }
  0x52   : > { %v405_v58 = vsel %vm404_vm0, %v1166_v53, %v403_v57 }
  0xba   : > { %v395_v59 = vpop.xlane.xlu1 %394 }
  0xbb   : > { %v408_v60 = vmul.f32 %v405_v58, %v395_v59  ;;  %v389_v61 = vpop.xlane.xlu0 %388 }
  0xbc   : > { %v406_v62 = vmul.f32 %v405_v58, %v389_v61 }
  0xbd   : > { %v412_v63 = vadd.f32 1e-05, %v408_v60 }
  0xbe   : > { %v410_v0 = vadd.f32 1e-05, %v406_v62 }
  0xbf   : > { %1167 = vrsqrt.f32 %v412_v63  ;;  %vm440_vm3 = vweird.f32 %v412_v63 }
  0xc0   : > { %1169 = vrsqrt.f32 %v410_v0  ;;  %vm420_vm5 = vweird.f32 %v410_v0 }
  0xc2   : > { %v398_v1 = vpop.xlane.xlu1 %397 }
  0xc3   : > { %v409_v2 = vmul.f32 %v405_v58, %v398_v1  ;;  %v392_v3 = vpop.xlane.xlu0 %391 }
  0xc4   : > { %v407_v4 = vmul.f32 %v405_v58, %v392_v3 }
  0xc5   : > { %v1168_v5 = vpop.eup %1167  ;;  %v413_v6 = vadd.f32 1e-05, %v409_v2 }
  0xc6   : > { %v1170_v7 = vpop.eup %1169  ;;  %v435_v8 = vmul.f32 %v1168_v5, %v412_v63  ;;  %v411_v9 = vadd.f32 1e-05, %v407_v4  ;;  %vm441_vm1 = vweird.f32 %v1168_v5 }
  0xc7   : > { %v415_v10 = vmul.f32 %v1170_v7, %v410_v0  ;;  %1171 = vrsqrt.f32 %v413_v6  ;;  %vm421_vm2 = vweird.f32 %v1170_v7  ;;  %vm442_vm4 = vmor %vm440_vm3, %vm441_vm1  ;;  %vm450_vm9 = vweird.f32 %v413_v6 }
  0xc8   : > { %v436_v11 = vmul.f32 %v1168_v5, %v435_v8  ;;  %1173 = vrsqrt.f32 %v411_v9  ;;  %vm422_vm6 = vmor %vm420_vm5, %vm421_vm2  ;;  %vm430_vm11 = vweird.f32 %v411_v9 }
  0xc9   : > { %v416_v12 = vmul.f32 %v1170_v7, %v415_v10 }
  0xca   : > { %v437_v13 = vmul.f32 0.5, %v436_v11 }
  0xcb   : > { %v417_v15 = vmul.f32 0.5, %v416_v12 }
  0xcc   : > { %v438_v16 = vsub.f32 1.5, %v437_v13 }
  0xcd   : > { %v1172_v17 = vpop.eup %1171  ;;  %v418_v18 = vsub.f32 1.5, %v417_v15 }
  0xce   : > { %v1174_v19 = vpop.eup %1173  ;;  %v439_v21 = vmul.f32 %v1168_v5, %v438_v16  ;;  %v445_v22 = vmul.f32 %v1172_v17, %v413_v6  ;;  %vm451_vm7 = vweird.f32 %v1172_v17 }
  0xcf   : > { %v419_v24 = vmul.f32 %v1170_v7, %v418_v18  ;;  %v425_v25 = vmul.f32 %v1174_v19, %v411_v9  ;;  %vm431_vm8 = vweird.f32 %v1174_v19  ;;  %vm452_vm10 = vmor %vm450_vm9, %vm451_vm7 }
  0xd0   : > { %v443_v26 = vsel %vm442_vm4, %v1168_v5, %v439_v21  ;;  %v446_v27 = vmul.f32 %v1172_v17, %v445_v22  ;;  %vm432_vm12 = vmor %vm430_vm11, %vm431_vm8 }
  0xd1   : > { %v458_v28 = vmul.f32 %v443_v26, %v1363_v32  ;;  %v459_v29 = vmul.f32 %v443_v26, %v1368_v33  ;;  %v423_v30 = vsel %vm422_vm6, %v1170_v7, %v419_v24  ;;  %v426_v31 = vmul.f32 %v1174_v19, %v425_v25 }
  0xd2   : > { %v454_v35 = vmul.f32 %v423_v30, %v1373_v34  ;;  %v455_v36 = vmul.f32 %v423_v30, %v1382_v37  ;;  %v447_v38 = vmul.f32 0.5, %v446_v27 }
  0xd3   : > { %v472_v39 = vmul.f32 %v464_v20, %v458_v28  ;;  %v473_v42 = vmul.f32 %v465_v23, %v459_v29  ;;  %v427_v45 = vmul.f32 0.5, %v426_v31 }
  0xd4   : > { %v468_v46 = vmul.f32 %v464_v20, %v454_v35  ;;  %v469_v47 = vmul.f32 %v465_v23, %v455_v36  ;;  %v448_v48 = vsub.f32 1.5, %v447_v38 }
  0xd5   : > { %v478_v49 = vpack.c.bf16 %v473_v42, %v472_v39  ;;  %v428_v50 = vsub.f32 1.5, %v427_v45 }
  0xd6   : > { %v476_v32 = vpack.c.bf16 %v469_v47, %v468_v46  ;;  %v449_v51 = vmul.f32 %v1172_v17, %v448_v48 }
  0xd7   : > { %482 = vst [vmem:[#allocation2 + $0x10] sm:$0xff] %v478_v49  ;;  %v429_v33 = vmul.f32 %v1174_v19, %v428_v50 }
  0xd8   : > { %480 = vst [vmem:[#allocation2] sm:$0xff] %v476_v32  ;;  %v453_v34 = vsel %vm452_vm10, %v1172_v17, %v449_v51 }
  0xd9   : > { %v460_v37 = vmul.f32 %v453_v34, %v1391_v40  ;;  %v461_v52 = vmul.f32 %v453_v34, %v1396_v41  ;;  %v433_v53 = vsel %vm432_vm12, %v1174_v19, %v429_v33 }
  0xda   : > { %v456_v54 = vmul.f32 %v433_v53, %v1401_v43  ;;  %v457_v55 = vmul.f32 %v433_v53, %v1406_v44 }
  0xdb   : > { %v474_v56 = vmul.f32 %v464_v20, %v460_v37  ;;  %v475_v57 = vmul.f32 %v465_v23, %v461_v52 }
  0xdc   : > { %v470_v58 = vmul.f32 %v464_v20, %v456_v54  ;;  %v471_v59 = vmul.f32 %v465_v23, %v457_v55 }
  0xdd   : > { %v479_v60 = vpack.c.bf16 %v475_v57, %v474_v56 }
  0xde   : > { %v477_v61 = vpack.c.bf16 %v471_v59, %v470_v58 }
  0xdf   : > { %483 = vst [vmem:[#allocation2 + $0x18] sm:$0xff] %v479_v60 }
  0xe0   : > { %481 = vst [vmem:[#allocation2 + $0x8] sm:$0xff] %v477_v61 }
  0xe1 PF: > { %v1011_v40 = vld [vmem:[%s1355_s6 + $0x70] sm:$0xf]  ;;  %v1106_v41 = vld [vmem:[%s1355_s6 + $0x74] sm:$0xf0]  ;;  %v1105_v63 = vld [vmem:[%s1355_s6 + $0x74] sm:$0xf] }
  0xe2   : > { %v1075_v43 = vld [vmem:[%s1355_s6 + $0xf0] sm:$0xf]  ;;  %v1012_v44 = vor.u32 %v1106_v41, %v1011_v40  ;;  %v1122_v62 = vld [vmem:[%s1355_s6 + $0xf4] sm:$0xf0]  ;;  %v1013_v0 = vld [vmem:[%s1355_s6 + $0x78] sm:$0xf0] }
  0xe3   : > { %v1076_v1 = vor.u32 %v1122_v62, %v1075_v43  ;;  %v1016_v2 = vor.u32 %v1105_v63, %v1013_v0  ;;  %v1121_v3 = vld [vmem:[%s1355_s6 + $0xf4] sm:$0xf]  ;;  %v1077_v4 = vld [vmem:[%s1355_s6 + $0xf8] sm:$0xf0]  ;;  %v1003_v5 = vld [vmem:[%s1355_s6 + $0x60] sm:$0xf] }
  0xe4   : > { %700 = vmatpush.bf16.msra.mxu0 %v1012_v44  ;;  %v1080_v6 = vor.u32 %v1121_v3, %v1077_v4  ;;  %v1104_v7 = vld [vmem:[%s1355_s6 + $0x64] sm:$0xf0]  ;;  %v1067_v8 = vld [vmem:[%s1355_s6 + $0xe0] sm:$0xf]  ;;  %v1103_v12 = vld [vmem:[%s1355_s6 + $0x64] sm:$0xf] }
  0xe5   : > { %v1120_v9 = vld [vmem:[%s1355_s6 + $0xe4] sm:$0xf0]  ;;  %719 = vmatpush.bf16.msra.mxu1 %v1076_v1  ;;  %738 = vmatpush.bf16.msra.mxu2 %v1016_v2  ;;  %v1004_v10 = vor.u32 %v1104_v7, %v1003_v5  ;;  %v1005_v13 = vld [vmem:[%s1355_s6 + $0x68] sm:$0xf0]  ;;  %v1119_v14 = vld [vmem:[%s1355_s6 + $0xe4] sm:$0xf] }
  0xe6   : > { %v1068_v11 = vor.u32 %v1120_v9, %v1067_v8  ;;  %757 = vmatpush.bf16.msra.mxu3 %v1080_v6  ;;  %v1008_v15 = vor.u32 %v1103_v12, %v1005_v13  ;;  %v1069_v16 = vld [vmem:[%s1355_s6 + $0xe8] sm:$0xf0]  ;;  %v995_v17 = vld [vmem:[%s1355_s6 + $0x50] sm:$0xf]  ;;  %v1102_v18 = vld [vmem:[%s1355_s6 + $0x54] sm:$0xf0] }
  0xe7   : > { %v1072_v19 = vor.u32 %v1119_v14, %v1069_v16  ;;  %v1059_v20 = vld [vmem:[%s1355_s6 + $0xd0] sm:$0xf]  ;;  %v1118_v21 = vld [vmem:[%s1355_s6 + $0xd4] sm:$0xf0]  ;;  %v1101_v22 = vld [vmem:[%s1355_s6 + $0x54] sm:$0xf]  ;;  %v996_v23 = vor.u32 %v1102_v18, %v995_v17 }
  0xe8   : > { %701 = vmatpush.bf16.msra.mxu0 %v1004_v10  ;;  %v997_v24 = vld [vmem:[%s1355_s6 + $0x58] sm:$0xf0]  ;;  %v1117_v25 = vld [vmem:[%s1355_s6 + $0xd4] sm:$0xf]  ;;  %v1060_v27 = vor.u32 %v1118_v21, %v1059_v20  ;;  %v987_v29 = vld [vmem:[%s1355_s6 + $0x40] sm:$0xf] }
  0xe9   : > { %v1061_v26 = vld [vmem:[%s1355_s6 + $0xd8] sm:$0xf0]  ;;  %720 = vmatpush.bf16.msra.mxu1 %v1068_v11  ;;  %739 = vmatpush.bf16.msra.mxu2 %v1008_v15  ;;  %v1000_v28 = vor.u32 %v1101_v22, %v997_v24  ;;  %v1100_v30 = vld [vmem:[%s1355_s6 + $0x44] sm:$0xf0]  ;;  %v1051_v31 = vld [vmem:[%s1355_s6 + $0xc0] sm:$0xf] }
  0xea   : > { %758 = vmatpush.bf16.msra.mxu3 %v1072_v19  ;;  %v1064_v35 = vor.u32 %v1117_v25, %v1061_v26  ;;  %v1116_v36 = vld [vmem:[%s1355_s6 + $0xc4] sm:$0xf0]  ;;  %v1099_v38 = vld [vmem:[%s1355_s6 + $0x44] sm:$0xf]  ;;  %v989_v39 = vld [vmem:[%s1355_s6 + $0x48] sm:$0xf0]  ;;  %v988_v46 = vor.u32 %v1100_v30, %v987_v29 }
  0xeb   : > { %v1115_v42 = vld [vmem:[%s1355_s6 + $0xc4] sm:$0xf]  ;;  %v1053_v45 = vld [vmem:[%s1355_s6 + $0xc8] sm:$0xf0]  ;;  %v1052_v47 = vor.u32 %v1116_v36, %v1051_v31  ;;  %v992_v48 = vor.u32 %v1099_v38, %v989_v39  ;;  %v979_v49 = vld [vmem:[%s1355_s6 + $0x30] sm:$0xf] }
  0xec   : > { %702 = vmatpush.bf16.msra.mxu0 %v996_v23  ;;  %v1098_v50 = vld [vmem:[%s1355_s6 + $0x34] sm:$0xf0]  ;;  %v1043_v32 = vld [vmem:[%s1355_s6 + $0xb0] sm:$0xf]  ;;  %v1056_v51 = vor.u32 %v1115_v42, %v1053_v45  ;;  %v1097_v34 = vld [vmem:[%s1355_s6 + $0x34] sm:$0xf] }
  0xed   : > { %721 = vmatpush.bf16.msra.mxu1 %v1060_v27  ;;  %740 = vmatpush.bf16.msra.mxu2 %v1000_v28  ;;  %v1114_v33 = vld [vmem:[%s1355_s6 + $0xb4] sm:$0xf0]  ;;  %v981_v37 = vld [vmem:[%s1355_s6 + $0x38] sm:$0xf0]  ;;  %v1113_v52 = vld [vmem:[%s1355_s6 + $0xb4] sm:$0xf]  ;;  %v980_v54 = vor.u32 %v1098_v50, %v979_v49 }
  0xee   : > { %759 = vmatpush.bf16.msra.mxu3 %v1064_v35  ;;  %v1045_v53 = vld [vmem:[%s1355_s6 + $0xb8] sm:$0xf0]  ;;  %v1044_v55 = vor.u32 %v1114_v33, %v1043_v32  ;;  %v984_v56 = vor.u32 %v1097_v34, %v981_v37  ;;  %v971_v57 = vld [vmem:[%s1355_s6 + $0x20] sm:$0xf]  ;;  %v1096_v58 = vld [vmem:[%s1355_s6 + $0x24] sm:$0xf0] }
  0xef   : > { %v1035_v59 = vld [vmem:[%s1355_s6 + $0xa0] sm:$0xf]  ;;  %v1048_v60 = vor.u32 %v1113_v52, %v1045_v53  ;;  %v1112_v61 = vld [vmem:[%s1355_s6 + $0xa4] sm:$0xf0]  ;;  %v1095_v40 = vld [vmem:[%s1355_s6 + $0x24] sm:$0xf]  ;;  %v972_v62 = vor.u32 %v1096_v58, %v971_v57 }
  0xf0   : > { %703 = vmatpush.bf16.msra.mxu0 %v988_v46  ;;  %v973_v41 = vld [vmem:[%s1355_s6 + $0x28] sm:$0xf0]  ;;  %v1111_v43 = vld [vmem:[%s1355_s6 + $0xa4] sm:$0xf]  ;;  %v1036_v63 = vor.u32 %v1112_v61, %v1035_v59  ;;  %v963_v1 = vld [vmem:[%s1355_s6 + $0x10] sm:$0xf] }
  0xf1   : > { %722 = vmatpush.bf16.msra.mxu1 %v1052_v47  ;;  %741 = vmatpush.bf16.msra.mxu2 %v992_v48  ;;  %v1037_v44 = vld [vmem:[%s1355_s6 + $0xa8] sm:$0xf0]  ;;  %v976_v0 = vor.u32 %v1095_v40, %v973_v41  ;;  %v1094_v2 = vld [vmem:[%s1355_s6 + $0x14] sm:$0xf0]  ;;  %v1027_v3 = vld [vmem:[%s1355_s6 + $0x90] sm:$0xf] }
  0xf2   : > { %760 = vmatpush.bf16.msra.mxu3 %v1056_v51  ;;  %v1040_v4 = vor.u32 %v1111_v43, %v1037_v44  ;;  %v1110_v5 = vld [vmem:[%s1355_s6 + $0x94] sm:$0xf0]  ;;  %v1093_v6 = vld [vmem:[%s1355_s6 + $0x14] sm:$0xf]  ;;  %v965_v7 = vld [vmem:[%s1355_s6 + $0x18] sm:$0xf0]  ;;  %v964_v10 = vor.u32 %v1094_v2, %v963_v1 }
  0xf3   : > { %v1109_v8 = vld [vmem:[%s1355_s6 + $0x94] sm:$0xf]  ;;  %v1029_v9 = vld [vmem:[%s1355_s6 + $0x98] sm:$0xf0]  ;;  %v1028_v11 = vor.u32 %v1110_v5, %v1027_v3  ;;  %v968_v12 = vor.u32 %v1093_v6, %v965_v7  ;;  %v955_v13 = vld [vmem:[%s1355_s6] sm:$0xf] }
  0xf4   : > { %704 = vmatpush.bf16.msra.mxu0 %v980_v54  ;;  %v1092_v14 = vld [vmem:[%s1355_s6 + $0x4] sm:$0xf0]  ;;  %v1019_v15 = vld [vmem:[%s1355_s6 + $0x80] sm:$0xf]  ;;  %v1032_v16 = vor.u32 %v1109_v8, %v1029_v9  ;;  %v1091_v18 = vld [vmem:[%s1355_s6 + $0x4] sm:$0xf] }
  0xf5   : > { %723 = vmatpush.bf16.msra.mxu1 %v1044_v55  ;;  %742 = vmatpush.bf16.msra.mxu2 %v984_v56  ;;  %v1108_v17 = vld [vmem:[%s1355_s6 + $0x84] sm:$0xf0]  ;;  %v957_v19 = vld [vmem:[%s1355_s6 + $0x8] sm:$0xf0]  ;;  %v1107_v20 = vld [vmem:[%s1355_s6 + $0x84] sm:$0xf]  ;;  %v956_v22 = vor.u32 %v1092_v14, %v955_v13 }
  0xf6   : > { %761 = vmatpush.bf16.msra.mxu3 %v1048_v60  ;;  %v1021_v21 = vld [vmem:[%s1355_s6 + $0x88] sm:$0xf0]  ;;  %v939_v23 = vld [vmem:[#allocation2] sm:$0xf]  ;;  %v1088_v24 = vld [vmem:[#allocation2 + $0x4] sm:$0xf0]  ;;  %v1020_v25 = vor.u32 %v1108_v17, %v1019_v15  ;;  %v960_v26 = vor.u32 %v1091_v18, %v957_v19 }
  0xf7   : > { %v1087_v27 = vld [vmem:[#allocation2 + $0x4] sm:$0xf]  ;;  %v941_v28 = vld [vmem:[#allocation2 + $0x8] sm:$0xf0]  ;;  %v1024_v29 = vor.u32 %v1107_v20, %v1021_v21  ;;  %v940_v30 = vor.u32 %v1088_v24, %v939_v23  ;;  %v947_v35 = vld [vmem:[#allocation2 + $0x10] sm:$0xf] }
  0xf8   : > { %705 = vmatpush.bf16.msra.mxu0 %v972_v62  ;;  %v944_v31 = vor.u32 %v1087_v27, %v941_v28  ;;  %v1090_v36 = vld [vmem:[#allocation2 + $0x14] sm:$0xf0]  ;;  %v1089_v38 = vld [vmem:[#allocation2 + $0x14] sm:$0xf]  ;;  %v949_v39 = vld [vmem:[#allocation2 + $0x18] sm:$0xf0] }
  0xf9   : > { %724 = vmatpush.bf16.msra.mxu1 %v1036_v63  ;;  %743 = vmatpush.bf16.msra.mxu2 %v976_v0  ;;  %v948_v42 = vor.u32 %v1090_v36, %v947_v35  ;;  %v952_v45 = vor.u32 %v1089_v38, %v949_v39  ;;  %s1123_s6 = sshll.u32 (%p1271_p6), %s1205_s14, 3 }
  0xfa   : > { %762 = vmatpush.bf16.msra.mxu3 %v1040_v4  ;;  %s796_s10 = scalar_lea.vmem (%p1271_p6), %s1523_s3, %s1123_s6 }
  0xfc   : > { %706 = vmatpush.bf16.msra.mxu0 %v964_v10 }
  0xfd   : > { %725 = vmatpush.bf16.msra.mxu1 %v1028_v11  ;;  %744 = vmatpush.bf16.msra.mxu2 %v968_v12 }
  0xfe   : > { %763 = vmatpush.bf16.msra.mxu3 %v1032_v16 }
 0x100   : > { %707 = vmatpush.bf16.msra.mxu0 %v956_v22 }
 0x101   : > { %726 = vmatpush.bf16.msra.mxu1 %v1020_v25  ;;  %745 = vmatpush.bf16.msra.mxu2 %v960_v26 }
 0x102   : > { %764 = vmatpush.bf16.msra.mxu3 %v1024_v29 }
 0x103   : > { %708 = vmatmul.bf16.vlgmr.msra.gmra.mxu0 %v940_v30 }
 0x104   : > { %727 = vmatmul.bf16.vlgmr.msra.gmra.mxu1 %v944_v31  ;;  %746 = vmatmul.bf16.vlgmr.msra.gmra.mxu2 %v940_v30 }
 0x105   : > { %765 = vmatmul.bf16.vlgmr.msra.gmra.mxu3 %v944_v31 }
 0x113   : > { %713 = vmatmul.bf16.gmra.mxu0 %v948_v42 }
 0x114   : > { %732 = vmatmul.bf16.gmra.mxu1 %v952_v45  ;;  %751 = vmatmul.bf16.gmra.mxu2 %v948_v42 }
 0x115   : > { %770 = vmatmul.bf16.gmra.mxu3 %v952_v45 }
 0x180   : > { %v709_v46 = vpop.f32.mrf.mxu0 }
 0x181   : > { %v728_v47 = vpop.f32.mrf.mxu1 }
 0x182   : > { %v729_v48 = vadd.f32 %v728_v47, %v709_v46 }
 0x187   : > { %v747_v49 = vpop.f32.mrf.mxu2 }
 0x188   : > { %v766_v50 = vpop.f32.mrf.mxu3  ;;  %v711_v51 = vpop.f32.mrf.mxu0 }
 0x189   : > { %v767_v32 = vadd.f32 %v766_v50, %v747_v49  ;;  %v730_v33 = vpop.f32.mrf.mxu1 }
 0x18a   : > { %v731_v53 = vadd.f32 %v730_v33, %v711_v51 }
 0x18b   : > { %v776_v34 = vpack.c.bf16 %v767_v32, %v729_v48 }
 0x18d   : > { %780 = vst [vmem:[%s1357_s7] sm:$0xff] %v776_v34 }
 0x18f   : > { %v749_v37 = vpop.f32.mrf.mxu2 }
 0x190   : > { %v768_v52 = vpop.f32.mrf.mxu3  ;;  %v714_v56 = vpop.f32.mrf.mxu0 }
 0x191   : > { %v769_v54 = vadd.f32 %v768_v52, %v749_v37  ;;  %v733_v57 = vpop.f32.mrf.mxu1 }
 0x192   : > { %v734_v58 = vadd.f32 %v733_v57, %v714_v56 }
 0x193   : > { %v777_v55 = vpack.c.bf16 %v769_v54, %v731_v53 }
 0x194   : > { %v831_v2 = vld [vmem:[%s1357_s7] sm:$0xff] (%p1271_p6) }
 0x195   : > { %781 = vst [vmem:[%s1357_s7 + $0x8] sm:$0xff] %v777_v55 }
 0x196   : > { %832 = vst [vmem:[%s796_s10] sm:$0xff] (%p1271_p6), %v831_v2 }
 0x197   : > { %v752_v59 = vpop.f32.mrf.mxu2 }
 0x198   : > { %v771_v60 = vpop.f32.mrf.mxu3  ;;  %v716_v41 = vpop.f32.mrf.mxu0 }
 0x199   : > { %v772_v61 = vadd.f32 %v771_v60, %v752_v59  ;;  %v735_v43 = vpop.f32.mrf.mxu1 }
 0x19a   : > { %v736_v63 = vadd.f32 %v735_v43, %v716_v41 }
 0x19b   : > { %v778_v40 = vpack.c.bf16 %v772_v61, %v734_v58 }
 0x19c   : > { %v833_v3 = vld [vmem:[%s1357_s7 + $0x8] sm:$0xff] (%p1271_p6) }
 0x19d   : > { %782 = vst [vmem:[%s1357_s7 + $0x10] sm:$0xff] %v778_v40 }
 0x19e   : > { %834 = vst [vmem:[%s796_s10 + $0x10] sm:$0xff] (%p1271_p6), %v833_v3 }
 0x19f   : > { %v754_v44 = vpop.f32.mrf.mxu2 }
 0x1a0   : > { %v773_v62 = vpop.f32.mrf.mxu3 }
 0x1a1   : > { %v774_v0 = vadd.f32 %v773_v62, %v754_v44  ;;  %790 = sbr.rel (!%p1271_p6) target bundleno = 430 (0x1ae), region = 78 }
 0x1a3   : > { %v779_v1 = vpack.c.bf16 %v774_v0, %v736_v63 }
 0x1a4   : > { %v835_v4 = vld [vmem:[%s1357_s7 + $0x10] sm:$0xff] (%p1271_p6) }
 0x1a5   : > { %783 = vst [vmem:[%s1357_s7 + $0x18] sm:$0xff] %v779_v1 }
 0x1a6   : > { %836 = vst [vmem:[%s796_s10 + $0x20] sm:$0xff] %v835_v4 }
 0x1ac   : > { %v837_v5 = vld [vmem:[%s1357_s7 + $0x18] sm:$0xff] }
 0x1ad   : > { %838 = vst [vmem:[%s796_s10 + $0x30] sm:$0xff] %v837_v5 }
 0x1ae PF: > { %s13_s16 = sadd.s32 1, %s1213_s16   ;;  %s1525_s12 = smov %s1201_s13 }
 0x1af   : > { %p10_p12 = scmp.ge.s32.totalorder %s13_s16, 4   ;;  %s1526_s13 = smov %s1276_s22 }
 0x1b0   : > { %s1527_s14 = smov %s1209_s15  ;;  %s1528_s15 = smov %s1530_s17 }
 0x1b1   :  { %12 = sbr.rel (!%p10_p12) target bundleno = 3 (0x3), region = 150 }

// kernel: _lambda_.10
= control target key start
LH: loop header
LB: loop body
LE: loop exit
PB: predicated region body
PF: predicated region fallthrough
CT: control target
= control target key end

     0   :  { %s794_s12 = smov 0   ;;  %s796_s13 = smov 0   ;;  %s883_s0 = inlined_call_operand.vmem [shape: bf16[2,2,16,128], index: 0, kind: input, shape index: {}]   ;;  %s884_s1 = inlined_call_operand.vmem [shape: bf16[2,16,128], index: 1, kind: input, shape index: {}]   ;;  %s885_s2 = inlined_call_operand.vmem [shape: bf16[2,16,128], index: 2, kind: input, shape index: {}]   ;;  %s886_s3 = inlined_call_operand.vmem [shape: bf16[2,2,16,128], index: 3, kind: output, shape index: {}]  }
   0x1   :  { %s798_s14 = smov 0  }
   0x2 LB: > { %s25_s15 = sadd.s32 1, %s768_s13  ;;  %p660_p0 = scmp.ge.s32.totalorder %s772_s14, 1  ;;  %s772_s14 = sphi %s798_s14, %s13_s14   ;;  %s768_s13 = sphi %s796_s13, %s892_s13   ;;  %s764_s12 = sphi %s794_s12, %s891_s12  }
   0x3   : > { %p27_p1 = scmp.ge.s32.totalorder %s25_s15, 2  ;;  %p189_p2 = scmp.lt.s32.totalorder %s772_s14, 3 }
   0x5   : > { %s894_s15 = smov (%p27_p1, %s25_s15), 0  ;;  %p190_p3 = pnand %p660_p0, %p189_p2 }
   0x6   : > { %p240_p4 = scmp.lt.s32.totalorder (!%p190_p3), %s764_s12, 1 }
   0x7   : > { %193 = sbr.rel (%p190_p3) target bundleno = 573 (0x23d), region = 32 }
   0xc   : > { %s896_s12 = smov (!%p240_p4, %s764_s12), 1  ;;  %v323_v3 = vlaneseq  ;;  %vm386_vm1 = vcmask 130048  }
   0xd   : > { %s690_s16 = sshll.u32 %s896_s12, 3  ;;  %s689_s20 = sshll.u32 %s896_s12, 4 }
   0xe   : > { %s257_s19 = scalar_lea.vmem %s884_s1, %s690_s16  ;;  %s248_s23 = scalar_lea.vmem %s883_s0, %s689_s20  ;;  %v324_v4 = vshrl.u32 %v323_v3, 7  ;;  %v377_v6 = vand.u32 127, %v323_v3 }
   0xf   : > { %v695_v0 = vld [vmem:[%s257_s19] sm:$0xff]  ;;  %v694_v2 = vld [vmem:[%s248_s23 + $0x8] sm:$0xff]  ;;  %s265_s26 = scalar_lea.vmem %s885_s2, %s690_s16  ;;  %s275_s29 = scalar_lea.vmem %s886_s3, %s689_s20 }
  0x10   : > { %311 = vmatpush.bf16.xpose.msra.mxu0 %v695_v0  ;;  %708 = vmatpush.bf16.xpose.msra.mxu2 %v695_v0  ;;  %v693_v1 = vld [vmem:[%s248_s23] sm:$0xff]  ;;  %v332_v5 = vand.u32 15, %v324_v4  ;;  %v326_v7 = vadd.s32 16, %v324_v4  ;;  %v325_v8 = vadd.s32 8, %v324_v4  ;;  %v327_v14 = vadd.s32 24, %v324_v4 }
  0x11   : > { %v696_v45 = vld [vmem:[%s265_s26] sm:$0xff] }
  0x12   : > { %vm378_vm0 = vcmp.gt.s32.totalorder %v377_v6, %v332_v5  ;;  %v346_v10 = vand.u32 15, %v326_v7  ;;  %v339_v13 = vand.u32 15, %v325_v8  ;;  %v353_v19 = vand.u32 15, %v327_v14  ;;  %504 = vmatpush.bf16.msra.mxu1 %v696_v45  ;;  %709 = vmatpush.bf16.msra.mxu3 %v696_v45 }
  0x14   : > { %vm380_vm2 = vcmp.gt.s32.totalorder %v377_v6, %v346_v10  ;;  %vm379_vm3 = vcmp.gt.s32.totalorder %v377_v6, %v339_v13  ;;  %vm381_vm4 = vcmp.gt.s32.totalorder %v377_v6, %v353_v19 }
  0x17   : > { %312 = vmatmul.bf16.vlgmr.msra.gmra.mxu0 %v693_v1  ;;  %317 = vmatmul.bf16.vlgmr.msra.gmra.mxu2 %v694_v2 }
  0x94   : > { %v313_v9 = vpop.f32.mrf.mxu0 }
  0x95   : > { %v382_v11 = vsel %vm378_vm0, -inf, %v313_v9 }
  0x96   : > { %v387_v12 = vsel %vm386_vm1, %v382_v11, -inf }
  0x97   : > { %388 = vmax.xlane.f32.xlu1 %v387_v12 }
  0x9a   : > { %v318_v15 = vpop.f32.mrf.mxu2 }
  0x9b   : > { %v384_v16 = vsel %vm380_vm2, -inf, %v318_v15 }
  0x9c   : > { %v315_v17 = vpop.f32.mrf.mxu0  ;;  %v393_v18 = vsel %vm386_vm1, %v384_v16, -inf }
  0x9d   : > { %v383_v20 = vsel %vm379_vm3, -inf, %v315_v17  ;;  %394 = vmax.xlane.f32.xlu0 %v393_v18 }
  0x9e   : > { %v390_v21 = vsel %vm386_vm1, %v383_v20, -inf }
  0x9f   : > { %391 = vmax.xlane.f32.xlu1 %v390_v21 }
  0xa2   : > { %v320_v22 = vpop.f32.mrf.mxu2 }
  0xa3   : > { %v385_v23 = vsel %vm381_vm4, -inf, %v320_v22 }
  0xa4   : > { %v396_v24 = vsel %vm386_vm1, %v385_v23, -inf }
  0xa5   : > { %397 = vmax.xlane.f32.xlu0 %v396_v24 }
 0x10a   : > { %v389_v25 = vpop.xlane.xlu1 %388 }
 0x10b   : > { %v399_v26 = vsub.f32 %v382_v11, %v389_v25 }
 0x10d   : > { %v403_v27 = vmul.f32 1.442695, %v399_v26 }
 0x10f   : > { %734 = vpow2.f32 %v403_v27 }
 0x110   : > { %v395_v28 = vpop.xlane.xlu0 %394 }
 0x111   : > { %v401_v29 = vsub.f32 %v384_v16, %v395_v28 }
 0x112   : > { %v392_v30 = vpop.xlane.xlu1 %391 }
 0x113   : > { %v407_v31 = vmul.f32 1.442695, %v401_v29  ;;  %v400_v32 = vsub.f32 %v383_v20, %v392_v30 }
 0x115   : > { %v830_v33 = vpop.eup %734  ;;  %736 = vpow2.f32 %v407_v31  ;;  %v405_v34 = vmul.f32 1.442695, %v400_v32 }
 0x116   : > { %v411_v35 = vsel %vm386_vm1, %v830_v33, 0.0 }
 0x117   : > { %738 = vpow2.f32 %v405_v34  ;;  %412 = vadd.xlane.f32.xlu0 %v411_v35 }
 0x118   : > { %v398_v36 = vpop.xlane.xlu0 %397 }
 0x119   : > { %v402_v37 = vsub.f32 %v385_v23, %v398_v36 }
 0x11b   : > { %v834_v38 = vpop.eup %736  ;;  %v409_v39 = vmul.f32 1.442695, %v402_v37 }
 0x11c   : > { %v417_v40 = vsel %vm386_vm1, %v834_v38, 0.0 }
 0x11d   : > { %v838_v41 = vpop.eup %738  ;;  %740 = vpow2.f32 %v409_v39  ;;  %418 = vadd.xlane.f32.xlu2 %v417_v40 }
 0x11e   : > { %v414_v42 = vsel %vm386_vm1, %v838_v41, 0.0 }
 0x11f   : > { %415 = vadd.xlane.f32.xlu1 %v414_v42 }
 0x123   : > { %v842_v43 = vpop.eup %740 }
 0x124   : > { %v420_v44 = vsel %vm386_vm1, %v842_v43, 0.0 }
 0x125   : > { %421 = vadd.xlane.f32.xlu2 %v420_v44 }
 0x18a   : > { %v413_v46 = vpop.xlane.xlu0 %412 }
 0x18b   : > { %742 = vrcp.f32 %v413_v46  ;;  %v434_v58 = vand.u32 2147483648, %v413_v46  ;;  %vm428_vm6 = vweird.f32 %v413_v46  ;;  %v432_v61 = vand.u32 2147483647, %v413_v46 }
 0x18d   : > { %v435_v3 = vor.u32 1.1754944e-38, %v434_v58  ;;  %vm433_vm9 = vcmp.eq.f32.partialorder %v432_v61, 8.507059e+37 }
 0x190   : > { %v419_v47 = vpop.xlane.xlu2 %418 }
 0x191   : > { %v743_v48 = vpop.eup %742  ;;  %744 = vrcp.f32 %v419_v47  ;;  %vm458_vm12 = vweird.f32 %v419_v47  ;;  %v464_v11 = vand.u32 2147483648, %v419_v47  ;;  %v462_v13 = vand.u32 2147483647, %v419_v47 }
 0x192   : > { %v424_v49 = vmul.f32 %v743_v48, %v413_v46  ;;  %v416_v50 = vpop.xlane.xlu1 %415  ;;  %vm429_vm5 = vweird.f32 %v743_v48 }
 0x193   : > { %746 = vrcp.f32 %v416_v50  ;;  %vm851_vm7 = vmor %vm428_vm6, %vm429_vm5  ;;  %v449_v2 = vand.u32 2147483648, %v416_v50  ;;  %v447_v5 = vand.u32 2147483647, %v416_v50  ;;  %vm443_vm11 = vweird.f32 %v416_v50 }
 0x194   : > { %v425_v51 = vsub.f32 1.0, %v424_v49  ;;  %v465_v24 = vor.u32 1.1754944e-38, %v464_v11  ;;  %vm463_vm2 = vcmp.eq.f32.partialorder %v462_v13, 8.507059e+37 }
 0x195   : > { %v450_v12 = vor.u32 1.1754944e-38, %v449_v2  ;;  %vm448_vm14 = vcmp.eq.f32.partialorder %v447_v5, 8.507059e+37 }
 0x196   : > { %v426_v52 = vmul.f32 %v743_v48, %v425_v51 }
 0x197   : > { %v745_v53 = vpop.eup %744 }
 0x198   : > { %v454_v54 = vmul.f32 %v745_v53, %v419_v47  ;;  %v422_v55 = vpop.xlane.xlu2 %421  ;;  %v427_v57 = vadd.f32 %v743_v48, %v426_v52  ;;  %vm459_vm10 = vweird.f32 %v745_v53 }
 0x199   : > { %v747_v56 = vpop.eup %746  ;;  %748 = vrcp.f32 %v422_v55  ;;  %vm857_vm15 = vmor %vm458_vm12, %vm459_vm10  ;;  %v477_v17 = vand.u32 2147483647, %v422_v55  ;;  %v479_v18 = vand.u32 2147483648, %v422_v55  ;;  %vm473_vm3 = vweird.f32 %v422_v55 }
 0x19a   : > { %v455_v59 = vsub.f32 1.0, %v454_v54  ;;  %v439_v60 = vmul.f32 %v747_v56, %v416_v50  ;;  %v431_v1 = vsel %vm851_vm7, %v743_v48, %v427_v57  ;;  %vm444_vm8 = vweird.f32 %v747_v56 }
 0x19b   : > { %v436_v10 = vsel %vm433_vm9, %v435_v3, %v431_v1  ;;  %vm445_vm13 = vmor %vm443_vm11, %vm444_vm8  ;;  %v480_v27 = vor.u32 1.1754944e-38, %v479_v18  ;;  %vm478_vm5 = vcmp.eq.f32.partialorder %v477_v17, 8.507059e+37 }
 0x19c   : > { %v456_v63 = vmul.f32 %v745_v53, %v455_v59  ;;  %v440_v0 = vsub.f32 1.0, %v439_v60  ;;  %v437_v19 = vmul.f32 %v830_v33, %v436_v10 }
 0x19e   : > { %v441_v4 = vmul.f32 %v747_v56, %v440_v0  ;;  %v457_v7 = vadd.f32 %v745_v53, %v456_v63 }
 0x19f   : > { %v749_v6 = vpop.eup %748 }
 0x1a0   : > { %v442_v8 = vadd.f32 %v747_v56, %v441_v4  ;;  %v469_v9 = vmul.f32 %v749_v6, %v422_v55  ;;  %vm474_vm0 = vweird.f32 %v749_v6  ;;  %v461_v23 = vsel %vm857_vm15, %v745_v53, %v457_v7 }
 0x1a1   : > { %vm475_vm4 = vmor %vm473_vm3, %vm474_vm0  ;;  %v466_v28 = vsel %vm463_vm2, %v465_v24, %v461_v23 }
 0x1a2   : > { %v446_v14 = vsel %vm445_vm13, %v747_v56, %v442_v8  ;;  %v470_v15 = vsub.f32 1.0, %v469_v9  ;;  %v467_v31 = vmul.f32 %v834_v38, %v466_v28 }
 0x1a3   : > { %v451_v20 = vsel %vm448_vm14, %v450_v12, %v446_v14 }
 0x1a4   : > { %v471_v21 = vmul.f32 %v749_v6, %v470_v15  ;;  %v452_v22 = vmul.f32 %v838_v41, %v451_v20 }
 0x1a6   : > { %v472_v25 = vadd.f32 %v749_v6, %v471_v21  ;;  %v483_v26 = vpack.c.bf16 %v452_v22, %v437_v19 }
 0x1a8   : > { %v476_v29 = vsel %vm475_vm4, %v749_v6, %v472_v25  ;;  %685 = vmatmul.msk.bf16.vlgmr.msra.gmra.mxu1 %vm386_vm1, %v483_v26 }
 0x1a9   : > { %v481_v30 = vsel %vm478_vm5, %v480_v27, %v476_v29 }
 0x1aa   : > { %v482_v32 = vmul.f32 %v842_v43, %v481_v30 }
 0x1ac   : > { %v484_v33 = vpack.c.bf16 %v482_v32, %v467_v31 }
 0x1ae   : > { %686 = vmatmul.msk.bf16.vlgmr.msra.gmra.mxu3 %vm386_vm1, %v484_v33 }
 0x225   : > { %v506_v34 = vpop.f32.mrf.mxu1 }
 0x22d   : > { %v508_v35 = vpop.f32.mrf.mxu1 }
 0x22e   : > { %v700_v36 = vpack.c.bf16 %v508_v35, %v506_v34 }
 0x230   : > { %701 = vst [vmem:[%s275_s29] sm:$0xff] %v700_v36  }
 0x231   : > { %v511_v37 = vpop.f32.mrf.mxu3 }
 0x239   : > { %v513_v39 = vpop.f32.mrf.mxu3 }
 0x23a   : > { %v705_v40 = vpack.c.bf16 %v513_v39, %v511_v37 }
 0x23c   : > { %707 = vst [vmem:[%s275_s29 + $0x8] sm:$0xff] %v705_v40  }
 0x23d PF: > { %s13_s14 = sadd.s32 1, %s772_s14   ;;  %s891_s12 = smov %s768_s13 }
 0x23e   : > { %p10_p5 = scmp.ge.s32.totalorder %s13_s14, 4   ;;  %s892_s13 = smov %s894_s15 }
 0x240   :  { %12 = sbr.rel (!%p10_p5) target bundleno = 2 (0x2), region = 68 }

// kernel: _lambda_.11
= control target key start
LH: loop header
LB: loop body
LE: loop exit
PB: predicated region body
PF: predicated region fallthrough
CT: control target
= control target key end

     0   :  { %s818_s1 = inlined_call_operand.vmem [shape: bf16[256,256], index: 1, kind: input, shape index: {}]   ;;  %s819_s0 = inlined_call_operand.vmem [shape: bf16[32,256], index: 0, kind: input, shape index: {}]   ;;  %s820_s2 = inlined_call_operand.vmem [shape: f32[32,256], index: 2, kind: input, shape index: {}]   ;;  %s821_s3 = inlined_call_operand.vmem [shape: f32[32,256], index: 3, kind: output, shape index: {}]  }
   0x1   :  { %v428_v0 = vld [vmem:[%s818_s1 + $0x70] sm:$0xf]  ;;  %v517_v1 = vld [vmem:[%s818_s1 + $0x74] sm:$0xf0]  ;;  %v516_v5 = vld [vmem:[%s818_s1 + $0x74] sm:$0xf] }
   0x2   :  { %v492_v2 = vld [vmem:[%s818_s1 + $0xf0] sm:$0xf]  ;;  %v429_v3 = vor.u32 %v517_v1, %v428_v0  ;;  %v533_v4 = vld [vmem:[%s818_s1 + $0xf4] sm:$0xf0]  ;;  %v430_v6 = vld [vmem:[%s818_s1 + $0x78] sm:$0xf0] }
   0x3   :  { %v493_v7 = vor.u32 %v533_v4, %v492_v2  ;;  %v433_v8 = vor.u32 %v516_v5, %v430_v6  ;;  %v532_v9 = vld [vmem:[%s818_s1 + $0xf4] sm:$0xf]  ;;  %v494_v10 = vld [vmem:[%s818_s1 + $0xf8] sm:$0xf0]  ;;  %v420_v11 = vld [vmem:[%s818_s1 + $0x60] sm:$0xf] }
   0x4   :  { %258 = vmatpush.bf16.msra.mxu0 %v429_v3  ;;  %v497_v12 = vor.u32 %v532_v9, %v494_v10  ;;  %v515_v13 = vld [vmem:[%s818_s1 + $0x64] sm:$0xf0]  ;;  %v484_v14 = vld [vmem:[%s818_s1 + $0xe0] sm:$0xf]  ;;  %v514_v18 = vld [vmem:[%s818_s1 + $0x64] sm:$0xf] }
   0x5   :  { %v531_v15 = vld [vmem:[%s818_s1 + $0xe4] sm:$0xf0]  ;;  %277 = vmatpush.bf16.msra.mxu1 %v493_v7  ;;  %296 = vmatpush.bf16.msra.mxu2 %v433_v8  ;;  %v421_v16 = vor.u32 %v515_v13, %v420_v11  ;;  %v422_v19 = vld [vmem:[%s818_s1 + $0x68] sm:$0xf0]  ;;  %v530_v20 = vld [vmem:[%s818_s1 + $0xe4] sm:$0xf] }
   0x6   :  { %v485_v17 = vor.u32 %v531_v15, %v484_v14  ;;  %315 = vmatpush.bf16.msra.mxu3 %v497_v12  ;;  %v425_v21 = vor.u32 %v514_v18, %v422_v19  ;;  %v486_v22 = vld [vmem:[%s818_s1 + $0xe8] sm:$0xf0]  ;;  %v412_v23 = vld [vmem:[%s818_s1 + $0x50] sm:$0xf]  ;;  %v513_v24 = vld [vmem:[%s818_s1 + $0x54] sm:$0xf0] }
   0x7   :  { %v489_v25 = vor.u32 %v530_v20, %v486_v22  ;;  %v476_v26 = vld [vmem:[%s818_s1 + $0xd0] sm:$0xf]  ;;  %v529_v27 = vld [vmem:[%s818_s1 + $0xd4] sm:$0xf0]  ;;  %v512_v28 = vld [vmem:[%s818_s1 + $0x54] sm:$0xf]  ;;  %v413_v29 = vor.u32 %v513_v24, %v412_v23 }
   0x8   :  { %259 = vmatpush.bf16.msra.mxu0 %v421_v16  ;;  %v414_v30 = vld [vmem:[%s818_s1 + $0x58] sm:$0xf0]  ;;  %v528_v31 = vld [vmem:[%s818_s1 + $0xd4] sm:$0xf]  ;;  %v477_v33 = vor.u32 %v529_v27, %v476_v26  ;;  %v404_v35 = vld [vmem:[%s818_s1 + $0x40] sm:$0xf] }
   0x9   :  { %v478_v32 = vld [vmem:[%s818_s1 + $0xd8] sm:$0xf0]  ;;  %278 = vmatpush.bf16.msra.mxu1 %v485_v17  ;;  %297 = vmatpush.bf16.msra.mxu2 %v425_v21  ;;  %v417_v34 = vor.u32 %v512_v28, %v414_v30  ;;  %v511_v36 = vld [vmem:[%s818_s1 + $0x44] sm:$0xf0]  ;;  %v468_v37 = vld [vmem:[%s818_s1 + $0xc0] sm:$0xf] }
   0xa   :  { %316 = vmatpush.bf16.msra.mxu3 %v489_v25  ;;  %v481_v38 = vor.u32 %v528_v31, %v478_v32  ;;  %v527_v39 = vld [vmem:[%s818_s1 + $0xc4] sm:$0xf0]  ;;  %v510_v40 = vld [vmem:[%s818_s1 + $0x44] sm:$0xf]  ;;  %v406_v41 = vld [vmem:[%s818_s1 + $0x48] sm:$0xf0]  ;;  %v405_v44 = vor.u32 %v511_v36, %v404_v35 }
   0xb   :  { %v526_v42 = vld [vmem:[%s818_s1 + $0xc4] sm:$0xf]  ;;  %v470_v43 = vld [vmem:[%s818_s1 + $0xc8] sm:$0xf0]  ;;  %v469_v45 = vor.u32 %v527_v39, %v468_v37  ;;  %v409_v46 = vor.u32 %v510_v40, %v406_v41  ;;  %v396_v47 = vld [vmem:[%s818_s1 + $0x30] sm:$0xf] }
   0xc   :  { %260 = vmatpush.bf16.msra.mxu0 %v413_v29  ;;  %v509_v48 = vld [vmem:[%s818_s1 + $0x34] sm:$0xf0]  ;;  %v460_v49 = vld [vmem:[%s818_s1 + $0xb0] sm:$0xf]  ;;  %v473_v50 = vor.u32 %v526_v42, %v470_v43  ;;  %v508_v52 = vld [vmem:[%s818_s1 + $0x34] sm:$0xf] }
   0xd   :  { %279 = vmatpush.bf16.msra.mxu1 %v477_v33  ;;  %298 = vmatpush.bf16.msra.mxu2 %v417_v34  ;;  %v525_v51 = vld [vmem:[%s818_s1 + $0xb4] sm:$0xf0]  ;;  %v398_v53 = vld [vmem:[%s818_s1 + $0x38] sm:$0xf0]  ;;  %v524_v54 = vld [vmem:[%s818_s1 + $0xb4] sm:$0xf]  ;;  %v397_v56 = vor.u32 %v509_v48, %v396_v47 }
   0xe   :  { %317 = vmatpush.bf16.msra.mxu3 %v481_v38  ;;  %v462_v55 = vld [vmem:[%s818_s1 + $0xb8] sm:$0xf0]  ;;  %v461_v57 = vor.u32 %v525_v51, %v460_v49  ;;  %v401_v58 = vor.u32 %v508_v52, %v398_v53  ;;  %v388_v59 = vld [vmem:[%s818_s1 + $0x20] sm:$0xf]  ;;  %v507_v60 = vld [vmem:[%s818_s1 + $0x24] sm:$0xf0] }
   0xf   :  { %v452_v61 = vld [vmem:[%s818_s1 + $0xa0] sm:$0xf]  ;;  %v465_v62 = vor.u32 %v524_v54, %v462_v55  ;;  %v523_v63 = vld [vmem:[%s818_s1 + $0xa4] sm:$0xf0]  ;;  %v506_v0 = vld [vmem:[%s818_s1 + $0x24] sm:$0xf]  ;;  %v389_v4 = vor.u32 %v507_v60, %v388_v59 }
  0x10   :  { %261 = vmatpush.bf16.msra.mxu0 %v405_v44  ;;  %v390_v1 = vld [vmem:[%s818_s1 + $0x28] sm:$0xf0]  ;;  %v522_v2 = vld [vmem:[%s818_s1 + $0xa4] sm:$0xf]  ;;  %v453_v5 = vor.u32 %v523_v63, %v452_v61  ;;  %v380_v7 = vld [vmem:[%s818_s1 + $0x10] sm:$0xf] }
  0x11   :  { %280 = vmatpush.bf16.msra.mxu1 %v469_v45  ;;  %299 = vmatpush.bf16.msra.mxu2 %v409_v46  ;;  %v454_v3 = vld [vmem:[%s818_s1 + $0xa8] sm:$0xf0]  ;;  %v393_v6 = vor.u32 %v506_v0, %v390_v1  ;;  %v505_v8 = vld [vmem:[%s818_s1 + $0x14] sm:$0xf0]  ;;  %v444_v9 = vld [vmem:[%s818_s1 + $0x90] sm:$0xf] }
  0x12   :  { %318 = vmatpush.bf16.msra.mxu3 %v473_v50  ;;  %v457_v10 = vor.u32 %v522_v2, %v454_v3  ;;  %v521_v11 = vld [vmem:[%s818_s1 + $0x94] sm:$0xf0]  ;;  %v504_v12 = vld [vmem:[%s818_s1 + $0x14] sm:$0xf]  ;;  %v382_v13 = vld [vmem:[%s818_s1 + $0x18] sm:$0xf0]  ;;  %v381_v16 = vor.u32 %v505_v8, %v380_v7 }
  0x13   :  { %v520_v14 = vld [vmem:[%s818_s1 + $0x94] sm:$0xf]  ;;  %v446_v15 = vld [vmem:[%s818_s1 + $0x98] sm:$0xf0]  ;;  %v445_v17 = vor.u32 %v521_v11, %v444_v9  ;;  %v385_v18 = vor.u32 %v504_v12, %v382_v13  ;;  %v372_v19 = vld [vmem:[%s818_s1] sm:$0xf] }
  0x14   :  { %262 = vmatpush.bf16.msra.mxu0 %v397_v56  ;;  %v503_v20 = vld [vmem:[%s818_s1 + $0x4] sm:$0xf0]  ;;  %v436_v21 = vld [vmem:[%s818_s1 + $0x80] sm:$0xf]  ;;  %v449_v22 = vor.u32 %v520_v14, %v446_v15  ;;  %v502_v24 = vld [vmem:[%s818_s1 + $0x4] sm:$0xf] }
  0x15   :  { %281 = vmatpush.bf16.msra.mxu1 %v461_v57  ;;  %300 = vmatpush.bf16.msra.mxu2 %v401_v58  ;;  %v519_v23 = vld [vmem:[%s818_s1 + $0x84] sm:$0xf0]  ;;  %v374_v25 = vld [vmem:[%s818_s1 + $0x8] sm:$0xf0]  ;;  %v518_v26 = vld [vmem:[%s818_s1 + $0x84] sm:$0xf]  ;;  %v373_v28 = vor.u32 %v503_v20, %v372_v19 }
  0x16   :  { %319 = vmatpush.bf16.msra.mxu3 %v465_v62  ;;  %v438_v27 = vld [vmem:[%s818_s1 + $0x88] sm:$0xf0]  ;;  %v356_v29 = vld [vmem:[%s819_s0] sm:$0xf]  ;;  %v499_v30 = vld [vmem:[%s819_s0 + $0x4] sm:$0xf0]  ;;  %v437_v31 = vor.u32 %v519_v23, %v436_v21  ;;  %v377_v32 = vor.u32 %v502_v24, %v374_v25 }
  0x17   :  { %v498_v33 = vld [vmem:[%s819_s0 + $0x4] sm:$0xf]  ;;  %v358_v34 = vld [vmem:[%s819_s0 + $0x8] sm:$0xf0]  ;;  %v441_v35 = vor.u32 %v518_v26, %v438_v27  ;;  %v357_v36 = vor.u32 %v499_v30, %v356_v29  ;;  %v364_v38 = vld [vmem:[%s819_s0 + $0x10] sm:$0xf] }
  0x18   :  { %263 = vmatpush.bf16.msra.mxu0 %v389_v4  ;;  %v361_v37 = vor.u32 %v498_v33, %v358_v34  ;;  %v501_v39 = vld [vmem:[%s819_s0 + $0x14] sm:$0xf0]  ;;  %v500_v40 = vld [vmem:[%s819_s0 + $0x14] sm:$0xf]  ;;  %v366_v41 = vld [vmem:[%s819_s0 + $0x18] sm:$0xf0] }
  0x19   :  { %282 = vmatpush.bf16.msra.mxu1 %v453_v5  ;;  %301 = vmatpush.bf16.msra.mxu2 %v393_v6  ;;  %v365_v42 = vor.u32 %v501_v39, %v364_v38  ;;  %v369_v43 = vor.u32 %v500_v40, %v366_v41  ;;  %v18_v45 = vld [vmem:[%s820_s2] sm:$0xff]  ;;  %v19_v50 = vld [vmem:[%s820_s2 + $0x8] sm:$0xff]  ;;  %v20_v54 = vld [vmem:[%s820_s2 + $0x10] sm:$0xff] }
  0x1a   :  { %320 = vmatpush.bf16.msra.mxu3 %v457_v10  ;;  %v21_v60 = vld [vmem:[%s820_s2 + $0x18] sm:$0xff]  ;;  %v22_v0 = vld [vmem:[%s820_s2 + $0x20] sm:$0xff]  ;;  %v23_v6 = vld [vmem:[%s820_s2 + $0x28] sm:$0xff] }
  0x1b   :  { %v24_v10 = vld [vmem:[%s820_s2 + $0x30] sm:$0xff] }
  0x1c   :  { %264 = vmatpush.bf16.msra.mxu0 %v381_v16  ;;  %v25_v16 = vld [vmem:[%s820_s2 + $0x38] sm:$0xff] }
  0x1d   :  { %283 = vmatpush.bf16.msra.mxu1 %v445_v17  ;;  %302 = vmatpush.bf16.msra.mxu2 %v385_v18 }
  0x1e   :  { %321 = vmatpush.bf16.msra.mxu3 %v449_v22 }
  0x20   :  { %265 = vmatpush.bf16.msra.mxu0 %v373_v28 }
  0x21   :  { %284 = vmatpush.bf16.msra.mxu1 %v437_v31  ;;  %303 = vmatpush.bf16.msra.mxu2 %v377_v32 }
  0x22   :  { %322 = vmatpush.bf16.msra.mxu3 %v441_v35 }
  0x23   :  { %266 = vmatmul.bf16.vlgmr.msra.gmra.mxu0 %v357_v36 }
  0x24   :  { %285 = vmatmul.bf16.vlgmr.msra.gmra.mxu1 %v361_v37  ;;  %304 = vmatmul.bf16.vlgmr.msra.gmra.mxu2 %v357_v36 }
  0x25   :  { %323 = vmatmul.bf16.vlgmr.msra.gmra.mxu3 %v361_v37 }
  0x33   :  { %271 = vmatmul.bf16.gmra.mxu0 %v365_v42 }
  0x34   :  { %290 = vmatmul.bf16.gmra.mxu1 %v369_v43  ;;  %309 = vmatmul.bf16.gmra.mxu2 %v365_v42 }
  0x35   :  { %328 = vmatmul.bf16.gmra.mxu3 %v369_v43 }
  0xa0   :  { %v267_v44 = vpop.f32.mrf.mxu0 }
  0xa1   :  { %v286_v46 = vpop.f32.mrf.mxu1 }
  0xa2   :  { %v287_v47 = vadd.f32 %v286_v46, %v267_v44 }
  0xa4   :  { %v334_v48 = vadd.f32 %v287_v47, %v18_v45 }
  0xa6   :  { %342 = vst [vmem:[%s821_s3] sm:$0xff] %v334_v48 }
  0xa7   :  { %v305_v49 = vpop.f32.mrf.mxu2 }
  0xa8   :  { %v324_v51 = vpop.f32.mrf.mxu3  ;;  %v269_v52 = vpop.f32.mrf.mxu0 }
  0xa9   :  { %v325_v53 = vadd.f32 %v324_v51, %v305_v49  ;;  %v288_v55 = vpop.f32.mrf.mxu1 }
  0xaa   :  { %v289_v56 = vadd.f32 %v288_v55, %v269_v52 }
  0xab   :  { %v335_v57 = vadd.f32 %v325_v53, %v19_v50 }
  0xac   :  { %v336_v58 = vadd.f32 %v289_v56, %v20_v54 }
  0xad   :  { %343 = vst [vmem:[%s821_s3 + $0x8] sm:$0xff] %v335_v57 }
  0xae   :  { %344 = vst [vmem:[%s821_s3 + $0x10] sm:$0xff] %v336_v58 }
  0xaf   :  { %v307_v59 = vpop.f32.mrf.mxu2 }
  0xb0   :  { %v326_v61 = vpop.f32.mrf.mxu3  ;;  %v272_v62 = vpop.f32.mrf.mxu0 }
  0xb1   :  { %v327_v63 = vadd.f32 %v326_v61, %v307_v59  ;;  %v291_v1 = vpop.f32.mrf.mxu1 }
  0xb2   :  { %v292_v2 = vadd.f32 %v291_v1, %v272_v62 }
  0xb3   :  { %v337_v3 = vadd.f32 %v327_v63, %v21_v60 }
  0xb4   :  { %v338_v4 = vadd.f32 %v292_v2, %v22_v0 }
  0xb5   :  { %345 = vst [vmem:[%s821_s3 + $0x18] sm:$0xff] %v337_v3 }
  0xb6   :  { %346 = vst [vmem:[%s821_s3 + $0x20] sm:$0xff] %v338_v4 }
  0xb7   :  { %v310_v5 = vpop.f32.mrf.mxu2 }
  0xb8   :  { %v329_v7 = vpop.f32.mrf.mxu3  ;;  %v274_v8 = vpop.f32.mrf.mxu0 }
  0xb9   :  { %v330_v9 = vadd.f32 %v329_v7, %v310_v5  ;;  %v293_v11 = vpop.f32.mrf.mxu1 }
  0xba   :  { %v294_v12 = vadd.f32 %v293_v11, %v274_v8 }
  0xbb   :  { %v339_v13 = vadd.f32 %v330_v9, %v23_v6 }
  0xbc   :  { %v340_v14 = vadd.f32 %v294_v12, %v24_v10 }
  0xbd   :  { %347 = vst [vmem:[%s821_s3 + $0x28] sm:$0xff] %v339_v13 }
  0xbe   :  { %348 = vst [vmem:[%s821_s3 + $0x30] sm:$0xff] %v340_v14 }
  0xbf   :  { %v312_v15 = vpop.f32.mrf.mxu2 }
  0xc0   :  { %v331_v17 = vpop.f32.mrf.mxu3 }
  0xc1   :  { %v332_v18 = vadd.f32 %v331_v17, %v312_v15 }
  0xc3   :  { %v341_v19 = vadd.f32 %v332_v18, %v25_v16 }
  0xc5   :  { %349 = vst [vmem:[%s821_s3 + $0x38] sm:$0xff] %v341_v19 }

// kernel: _lambda_.17
= control target key start
LH: loop header
LB: loop body
LE: loop exit
PB: predicated region body
PF: predicated region fallthrough
CT: control target
= control target key end

     0   :  { %s980_s0 = inlined_call_operand.vmem [shape: f32[32,256], index: 0, kind: input, shape index: {}]   ;;  %s981_s1 = inlined_call_operand.vmem [shape: f32[1,256], index: 1, kind: input, shape index: {}]   ;;  %s982_s2 = inlined_call_operand.vmem [shape: bf16[256,256], index: 2, kind: input, shape index: {}]   ;;  %s983_s3 = inlined_call_operand.hbm [shape: f32[32,256], index: 3, kind: output, shape index: {}]  }
   0x1   :  { %v697_v0 = vld [vmem:[%s980_s0 + $0x20] sm:$0xff]  ;;  %v702_v1 = vld [vmem:[%s980_s0 + $0x28] sm:$0xff]  ;;  %v725_v8 = vld [vmem:[%s980_s0 + $0x30] sm:$0xff] }
   0x2   :  { %v707_v2 = vld [vmem:[%s980_s0] sm:$0xff]  ;;  %v31_v3 = vmul.f32 %v697_v0, %v697_v0  ;;  %v32_v4 = vmul.f32 %v702_v1, %v702_v1  ;;  %v716_v5 = vld [vmem:[%s980_s0 + $0x8] sm:$0xff]  ;;  %v730_v9 = vld [vmem:[%s980_s0 + $0x38] sm:$0xff] }
   0x3   :  { %v27_v6 = vmul.f32 %v707_v2, %v707_v2  ;;  %v28_v7 = vmul.f32 %v716_v5, %v716_v5  ;;  %v735_v11 = vld [vmem:[%s980_s0 + $0x10] sm:$0xff]  ;;  %v740_v12 = vld [vmem:[%s980_s0 + $0x18] sm:$0xff] }
   0x4   :  { %v41_v10 = vadd.f32 %v32_v4, %v31_v3 }
   0x5   :  { %8 = vsyncpa [#allocation4], 0  ;;  %v35_v13 = vadd.f32 %v28_v7, %v27_v6  ;;  %v33_v14 = vmul.f32 %v725_v8, %v725_v8  ;;  %v34_v15 = vmul.f32 %v730_v9, %v730_v9  ;;  %v29_v16 = vmul.f32 %v735_v11, %v735_v11  ;;  %v524_v23 = vld [vmem:[%s982_s2 + $0x70] sm:$0xf]  ;;  %v613_v24 = vld [vmem:[%s982_s2 + $0x74] sm:$0xf0] }
   0x6   :  { %42 = vadd.xlane.f32.xlu1 %v41_v10  ;;  %v30_v17 = vmul.f32 %v740_v12, %v740_v12  ;;  %v670_v20 = vmov 256.0   ;;  %v588_v25 = vld [vmem:[%s982_s2 + $0xf0] sm:$0xf]  ;;  %v525_v26 = vor.u32 %v613_v24, %v524_v23  ;;  %v629_v27 = vld [vmem:[%s982_s2 + $0xf4] sm:$0xf0]  ;;  %s438_s20 = sshll.u32 %s983_s3, 4  ;;  %s439_s20 = int_to_ptr.hbm [resolvable:$true] %s438_s20 }
   0x7   :  { %36 = vadd.xlane.f32.xlu0 %v35_v13  ;;  %v44_v18 = vadd.f32 %v34_v15, %v33_v14  ;;  %634 = vrcp.f32 %v670_v20  ;;  %v612_v28 = vld [vmem:[%s982_s2 + $0x74] sm:$0xf]  ;;  %v526_v29 = vld [vmem:[%s982_s2 + $0x78] sm:$0xf0]  ;;  %v589_v30 = vor.u32 %v629_v27, %v588_v25  ;;  %v516_v36 = vld [vmem:[%s982_s2 + $0x60] sm:$0xf] }
   0x8   :  { %v38_v19 = vadd.f32 %v30_v17, %v29_v16  ;;  %v529_v31 = vor.u32 %v612_v28, %v526_v29  ;;  %v628_v32 = vld [vmem:[%s982_s2 + $0xf4] sm:$0xf]  ;;  %v590_v33 = vld [vmem:[%s982_s2 + $0xf8] sm:$0xf0]  ;;  %348 = vmatpush.bf16.msra.mxu0 %v525_v26  ;;  %v611_v37 = vld [vmem:[%s982_s2 + $0x64] sm:$0xf0] }
   0x9   :  { %v593_v35 = vor.u32 %v628_v32, %v590_v33  ;;  %367 = vmatpush.bf16.msra.mxu1 %v589_v30  ;;  %v580_v38 = vld [vmem:[%s982_s2 + $0xe0] sm:$0xf]  ;;  %v517_v39 = vor.u32 %v611_v37, %v516_v36  ;;  %v627_v40 = vld [vmem:[%s982_s2 + $0xe4] sm:$0xf0]  ;;  %v610_v41 = vld [vmem:[%s982_s2 + $0x64] sm:$0xf] }
   0xa   :  { %386 = vmatpush.bf16.msra.mxu2 %v529_v31  ;;  %v518_v42 = vld [vmem:[%s982_s2 + $0x68] sm:$0xf0]  ;;  %v581_v43 = vor.u32 %v627_v40, %v580_v38  ;;  %v626_v45 = vld [vmem:[%s982_s2 + $0xe4] sm:$0xf]  ;;  %v508_v49 = vld [vmem:[%s982_s2 + $0x50] sm:$0xf] }
   0xb   :  { %405 = vmatpush.bf16.msra.mxu3 %v593_v35  ;;  %v521_v44 = vor.u32 %v610_v41, %v518_v42  ;;  %v582_v46 = vld [vmem:[%s982_s2 + $0xe8] sm:$0xf0]  ;;  %v609_v50 = vld [vmem:[%s982_s2 + $0x54] sm:$0xf0]  ;;  %v572_v51 = vld [vmem:[%s982_s2 + $0xd0] sm:$0xf] }
   0xc   :  { %349 = vmatpush.bf16.msra.mxu0 %v517_v39  ;;  %v585_v47 = vor.u32 %v626_v45, %v582_v46  ;;  %v509_v52 = vor.u32 %v609_v50, %v508_v49  ;;  %v625_v53 = vld [vmem:[%s982_s2 + $0xd4] sm:$0xf0]  ;;  %v608_v54 = vld [vmem:[%s982_s2 + $0x54] sm:$0xf]  ;;  %v510_v55 = vld [vmem:[%s982_s2 + $0x58] sm:$0xf0] }
   0xd   :  { %v750_v21 = vpop.eup %634  ;;  %368 = vmatpush.bf16.msra.mxu1 %v581_v43  ;;  %v573_v56 = vor.u32 %v625_v53, %v572_v51  ;;  %v513_v57 = vor.u32 %v608_v54, %v510_v55  ;;  %v624_v58 = vld [vmem:[%s982_s2 + $0xd4] sm:$0xf]  ;;  %v574_v59 = vld [vmem:[%s982_s2 + $0xd8] sm:$0xf0]  ;;  %v500_v62 = vld [vmem:[%s982_s2 + $0x40] sm:$0xf] }
   0xe   :  { %45 = vadd.xlane.f32.xlu1 %v44_v18  ;;  %v48_v22 = vmul.f32 256.0, %v750_v21  ;;  %387 = vmatpush.bf16.msra.mxu2 %v521_v44  ;;  %v577_v60 = vor.u32 %v624_v58, %v574_v59  ;;  %v607_v63 = vld [vmem:[%s982_s2 + $0x44] sm:$0xf0]  ;;  %v564_v3 = vld [vmem:[%s982_s2 + $0xc0] sm:$0xf]  ;;  %vm52_vm0 = vweird.f32 %v750_v21  ;;  %s672_s21 = smov 256  }
   0xf   :  { %39 = vadd.xlane.f32.xlu0 %v38_v19  ;;  %406 = vmatpush.bf16.msra.mxu3 %v585_v47  ;;  %v501_v4 = vor.u32 %v607_v63, %v500_v62  ;;  %v623_v6 = vld [vmem:[%s982_s2 + $0xc4] sm:$0xf0]  ;;  %v606_v7 = vld [vmem:[%s982_s2 + $0x44] sm:$0xf]  ;;  %v502_v10 = vld [vmem:[%s982_s2 + $0x48] sm:$0xf0] }
  0x10   :  { %v49_v34 = vsub.f32 1.0, %v48_v22  ;;  %350 = vmatpush.bf16.msra.mxu0 %v509_v52  ;;  %v565_v13 = vor.u32 %v623_v6, %v564_v3  ;;  %v505_v14 = vor.u32 %v606_v7, %v502_v10  ;;  %v622_v15 = vld [vmem:[%s982_s2 + $0xc4] sm:$0xf]  ;;  %v566_v16 = vld [vmem:[%s982_s2 + $0xc8] sm:$0xf0]  ;;  %s673_s22 = smov 16  }
  0x11   :  { %369 = vmatpush.bf16.msra.mxu1 %v573_v56  ;;  %v569_v17 = vor.u32 %v622_v15, %v566_v16  ;;  %v492_v19 = vld [vmem:[%s982_s2 + $0x30] sm:$0xf]  ;;  %v605_v20 = vld [vmem:[%s982_s2 + $0x34] sm:$0xf0]  ;;  %v604_v24 = vld [vmem:[%s982_s2 + $0x34] sm:$0xf] }
  0x12   :  { %v50_v48 = vmul.f32 %v750_v21, %v49_v34  ;;  %388 = vmatpush.bf16.msra.mxu2 %v513_v57  ;;  %v556_v22 = vld [vmem:[%s982_s2 + $0xb0] sm:$0xf]  ;;  %v493_v23 = vor.u32 %v605_v20, %v492_v19  ;;  %v494_v25 = vld [vmem:[%s982_s2 + $0x38] sm:$0xf0]  ;;  %v620_v29 = vld [vmem:[%s982_s2 + $0xb4] sm:$0xf] }
  0x13   :  { %407 = vmatpush.bf16.msra.mxu3 %v577_v60  ;;  %v497_v28 = vor.u32 %v604_v24, %v494_v25  ;;  %v558_v30 = vld [vmem:[%s982_s2 + $0xb8] sm:$0xf0]  ;;  %v484_v35 = vld [vmem:[%s982_s2 + $0x20] sm:$0xf]  ;;  %v603_v36 = vld [vmem:[%s982_s2 + $0x24] sm:$0xf0] }
  0x14   :  { %v51_v61 = vadd.f32 %v750_v21, %v50_v48  ;;  %351 = vmatpush.bf16.msra.mxu0 %v501_v4  ;;  %v561_v33 = vor.u32 %v620_v29, %v558_v30  ;;  %v548_v37 = vld [vmem:[%s982_s2 + $0xa0] sm:$0xf]  ;;  %v485_v39 = vor.u32 %v603_v36, %v484_v35  ;;  %v619_v40 = vld [vmem:[%s982_s2 + $0xa4] sm:$0xf0]  ;;  %v602_v41 = vld [vmem:[%s982_s2 + $0x24] sm:$0xf] }
  0x15   :  { %370 = vmatpush.bf16.msra.mxu1 %v565_v13  ;;  %v549_v43 = vor.u32 %v619_v40, %v548_v37  ;;  %v486_v44 = vld [vmem:[%s982_s2 + $0x28] sm:$0xf0]  ;;  %v618_v45 = vld [vmem:[%s982_s2 + $0xa4] sm:$0xf]  ;;  %v476_v49 = vld [vmem:[%s982_s2 + $0x10] sm:$0xf] }
  0x16   :  { %v853_v18 = vsel %vm52_vm0, %v750_v21, %v51_v61  ;;  %389 = vmatpush.bf16.msra.mxu2 %v505_v14  ;;  %v621_v21 = vld [vmem:[%s982_s2 + $0xb4] sm:$0xf0]  ;;  %v489_v46 = vor.u32 %v602_v41, %v486_v44  ;;  %v550_v47 = vld [vmem:[%s982_s2 + $0xa8] sm:$0xf0]  ;;  %v540_v51 = vld [vmem:[%s982_s2 + $0x90] sm:$0xf] }
  0x17   :  { %408 = vmatpush.bf16.msra.mxu3 %v569_v17  ;;  %v557_v27 = vor.u32 %v621_v21, %v556_v22  ;;  %v553_v48 = vor.u32 %v618_v45, %v550_v47  ;;  %v601_v50 = vld [vmem:[%s982_s2 + $0x14] sm:$0xf0]  ;;  %v600_v54 = vld [vmem:[%s982_s2 + $0x14] sm:$0xf]  ;;  %v478_v55 = vld [vmem:[%s982_s2 + $0x18] sm:$0xf0] }
  0x18   :  { %352 = vmatpush.bf16.msra.mxu0 %v493_v23  ;;  %v477_v52 = vor.u32 %v601_v50, %v476_v49  ;;  %v617_v53 = vld [vmem:[%s982_s2 + $0x94] sm:$0xf0]  ;;  %v481_v58 = vor.u32 %v600_v54, %v478_v55  ;;  %v616_v59 = vld [vmem:[%s982_s2 + $0x94] sm:$0xf]  ;;  %v542_v60 = vld [vmem:[%s982_s2 + $0x98] sm:$0xf0] }
  0x19   :  { %371 = vmatpush.bf16.msra.mxu1 %v557_v27  ;;  %v541_v57 = vor.u32 %v617_v53, %v540_v51  ;;  %v468_v61 = vld [vmem:[%s982_s2] sm:$0xf]  ;;  %v545_v3 = vor.u32 %v616_v59, %v542_v60  ;;  %v599_v4 = vld [vmem:[%s982_s2 + $0x4] sm:$0xf0]  ;;  %v598_v15 = vld [vmem:[%s982_s2 + $0x4] sm:$0xf] }
  0x1a   :  { %390 = vmatpush.bf16.msra.mxu2 %v497_v28  ;;  %v532_v6 = vld [vmem:[%s982_s2 + $0x80] sm:$0xf]  ;;  %v615_v7 = vld [vmem:[%s982_s2 + $0x84] sm:$0xf0]  ;;  %v469_v13 = vor.u32 %v599_v4, %v468_v61  ;;  %v470_v16 = vld [vmem:[%s982_s2 + $0x8] sm:$0xf0] }
  0x1b   :  { %409 = vmatpush.bf16.msra.mxu3 %v561_v33  ;;  %v533_v14 = vor.u32 %v615_v7, %v532_v6  ;;  %v614_v17 = vld [vmem:[%s982_s2 + $0x84] sm:$0xf]  ;;  %v473_v22 = vor.u32 %v598_v15, %v470_v16  ;;  %v110_v30 = vld [vmem:[%s981_s1] sm:$0x3]  ;;  %s671_s1 = smov [#allocation3]  }
  0x1c   :  { %353 = vmatpush.bf16.msra.mxu0 %v485_v39  ;;  %v112_v36 = vperm.slane %v110_v30, 0  ;;  %v113_v40 = vperm.slane %v110_v30, 1  ;;  %s436_s17 = sshll.u32 %s671_s1, 4  ;;  %s437_s17 = int_to_ptr.vmem [resolvable:$true] %s436_s17 }
  0x1d   :  { %372 = vmatpush.bf16.msra.mxu1 %v549_v43 }
  0x1e   :  { %391 = vmatpush.bf16.msra.mxu2 %v489_v46 }
  0x1f   :  { %410 = vmatpush.bf16.msra.mxu3 %v553_v48 }
  0x20   :  { %354 = vmatpush.bf16.msra.mxu0 %v477_v52 }
  0x21   :  { %373 = vmatpush.bf16.msra.mxu1 %v541_v57 }
  0x22   :  { %392 = vmatpush.bf16.msra.mxu2 %v481_v58 }
  0x23   :  { %411 = vmatpush.bf16.msra.mxu3 %v545_v3 }
  0x24   :  { %355 = vmatpush.bf16.msra.mxu0 %v469_v13 }
  0x25   :  { %374 = vmatpush.bf16.msra.mxu1 %v533_v14 }
  0x26   :  { %393 = vmatpush.bf16.msra.mxu2 %v473_v22 }
  0x79   :  { %v43_v26 = vpop.xlane.xlu1 %42 }
  0x7a   :  { %v56_v31 = vmul.f32 %v853_v18, %v43_v26  ;;  %v37_v32 = vpop.xlane.xlu0 %36 }
  0x7b   :  { %v54_v34 = vmul.f32 %v853_v18, %v37_v32 }
  0x7c   :  { %v890_v38 = vadd.f32 1e-05, %v56_v31 }
  0x7d   :  { %v898_v42 = vadd.f32 1e-05, %v54_v34 }
  0x7e   :  { %636 = vrsqrt.f32 %v890_v38  ;;  %vm88_vm1 = vweird.f32 %v890_v38 }
  0x7f   :  { %638 = vrsqrt.f32 %v898_v42  ;;  %vm68_vm5 = vweird.f32 %v898_v42 }
  0x81   :  { %v46_v56 = vpop.xlane.xlu1 %45 }
  0x82   :  { %v57_v62 = vmul.f32 %v853_v18, %v46_v56  ;;  %v40_v63 = vpop.xlane.xlu0 %39 }
  0x83   :  { %v55_v10 = vmul.f32 %v853_v18, %v40_v63  ;;  %v534_v18 = vld [vmem:[%s982_s2 + $0x88] sm:$0xf0] }
  0x84   :  { %v637_v19 = vpop.eup %636  ;;  %v61_v20 = vadd.f32 1e-05, %v57_v62  ;;  %v537_v25 = vor.u32 %v614_v17, %v534_v18 }
  0x85   :  { %v639_v23 = vpop.eup %638  ;;  %v83_v21 = vmul.f32 %v637_v19, %v890_v38  ;;  %v59_v24 = vadd.f32 1e-05, %v55_v10  ;;  %vm89_vm2 = vweird.f32 %v637_v19 }
  0x86   :  { %v63_v26 = vmul.f32 %v639_v23, %v898_v42  ;;  %640 = vrsqrt.f32 %v61_v20  ;;  %412 = vmatpush.bf16.msra.mxu3 %v537_v25  ;;  %vm90_vm3 = vmor %vm88_vm1, %vm89_vm2  ;;  %vm69_vm4 = vweird.f32 %v639_v23  ;;  %vm98_vm7 = vweird.f32 %v61_v20 }
  0x87   :  { %v84_v27 = vmul.f32 %v637_v19, %v83_v21  ;;  %642 = vrsqrt.f32 %v59_v24  ;;  %vm70_vm6 = vmor %vm68_vm5, %vm69_vm4  ;;  %vm78_vm11 = vweird.f32 %v59_v24 }
  0x88   :  { %v64_v28 = vmul.f32 %v639_v23, %v63_v26 }
  0x89   :  { %v85_v29 = vmul.f32 0.5, %v84_v27 }
  0x8a   :  { %v65_v31 = vmul.f32 0.5, %v64_v28 }
  0x8b   :  { %v86_v32 = vsub.f32 1.5, %v85_v29 }
  0x8c   :  { %v641_v33 = vpop.eup %640  ;;  %v66_v34 = vsub.f32 1.5, %v65_v31 }
  0x8d   :  { %v643_v35 = vpop.eup %642  ;;  %v87_v37 = vmul.f32 %v637_v19, %v86_v32  ;;  %v93_v39 = vmul.f32 %v641_v33, %v61_v20  ;;  %vm99_vm8 = vweird.f32 %v641_v33 }
  0x8e   :  { %v67_v41 = vmul.f32 %v639_v23, %v66_v34  ;;  %v73_v38 = vmul.f32 %v643_v35, %v59_v24  ;;  %vm100_vm9 = vmor %vm98_vm7, %vm99_vm8  ;;  %vm79_vm10 = vweird.f32 %v643_v35 }
  0x8f   :  { %v91_v43 = vsel %vm90_vm3, %v637_v19, %v87_v37  ;;  %v94_v44 = vmul.f32 %v641_v33, %v93_v39  ;;  %vm80_vm12 = vmor %vm78_vm11, %vm79_vm10 }
  0x90   :  { %v106_v45 = vmul.f32 %v91_v43, %v697_v0  ;;  %v107_v46 = vmul.f32 %v91_v43, %v702_v1  ;;  %v71_v47 = vsel %vm70_vm6, %v639_v23, %v67_v41  ;;  %v74_v48 = vmul.f32 %v643_v35, %v73_v38 }
  0x91   :  { %v102_v49 = vmul.f32 %v71_v47, %v707_v2  ;;  %v103_v50 = vmul.f32 %v71_v47, %v716_v5  ;;  %v95_v51 = vmul.f32 0.5, %v94_v44 }
  0x92   :  { %v120_v52 = vmul.f32 %v112_v36, %v106_v45  ;;  %v121_v53 = vmul.f32 %v113_v40, %v107_v46  ;;  %v75_v42 = vmul.f32 0.5, %v74_v48 }
  0x93   :  { %v116_v54 = vmul.f32 %v112_v36, %v102_v49  ;;  %v117_v55 = vmul.f32 %v113_v40, %v103_v50  ;;  %v96_v56 = vsub.f32 1.5, %v95_v51 }
  0x94   :  { %v126_v57 = vpack.c.bf16 %v121_v53, %v120_v52  ;;  %v76_v0 = vsub.f32 1.5, %v75_v42 }
  0x95   :  { %v124_v1 = vpack.c.bf16 %v117_v55, %v116_v54  ;;  %v97_v58 = vmul.f32 %v641_v33, %v96_v56 }
  0x96   :  { %130 = vst [vmem:[#allocation2 + $0x10] sm:$0xff] %v126_v57  ;;  %v77_v59 = vmul.f32 %v643_v35, %v76_v0 }
  0x97   :  { %128 = vst [vmem:[#allocation2] sm:$0xff] %v124_v1  ;;  %v101_v2 = vsel %vm100_vm9, %v641_v33, %v97_v58 }
  0x98   :  { %v108_v5 = vmul.f32 %v101_v2, %v725_v8  ;;  %v109_v60 = vmul.f32 %v101_v2, %v730_v9  ;;  %v81_v61 = vsel %vm80_vm12, %v643_v35, %v77_v59 }
  0x99   :  { %v104_v62 = vmul.f32 %v81_v61, %v735_v11  ;;  %v105_v63 = vmul.f32 %v81_v61, %v740_v12 }
  0x9a   :  { %v122_v3 = vmul.f32 %v112_v36, %v108_v5  ;;  %v123_v4 = vmul.f32 %v113_v40, %v109_v60 }
  0x9b   :  { %v118_v6 = vmul.f32 %v112_v36, %v104_v62  ;;  %v119_v7 = vmul.f32 %v113_v40, %v105_v63 }
  0x9c   :  { %v127_v10 = vpack.c.bf16 %v123_v4, %v122_v3 }
  0x9d   :  { %v125_v13 = vpack.c.bf16 %v119_v7, %v118_v6  ;;  %v460_v12 = vld [vmem:[#allocation2 + $0x10] sm:$0xf]  ;;  %v596_v20 = vld [vmem:[#allocation2 + $0x14] sm:$0xf] }
  0x9e   :  { %131 = vst [vmem:[#allocation2 + $0x18] sm:$0xff] %v127_v10  ;;  %v452_v14 = vld [vmem:[#allocation2] sm:$0xf]  ;;  %v594_v16 = vld [vmem:[#allocation2 + $0x4] sm:$0xf] }
  0x9f   :  { %129 = vst [vmem:[#allocation2 + $0x8] sm:$0xff] %v125_v13 }
  0xa5   :  { %v597_v9 = vld [vmem:[#allocation2 + $0x14] sm:$0xf0]  ;;  %v462_v11 = vld [vmem:[#allocation2 + $0x18] sm:$0xf0] }
  0xa6   :  { %v595_v15 = vld [vmem:[#allocation2 + $0x4] sm:$0xf0]  ;;  %v454_v17 = vld [vmem:[#allocation2 + $0x8] sm:$0xf0]  ;;  %v461_v22 = vor.u32 %v597_v9, %v460_v12  ;;  %v465_v18 = vor.u32 %v596_v20, %v462_v11 }
  0xa7   :  { %v453_v8 = vor.u32 %v595_v15, %v452_v14  ;;  %v457_v19 = vor.u32 %v594_v16, %v454_v17 }
  0xa9   :  { %356 = vmatmul.bf16.vlgmr.msra.gmra.mxu0 %v453_v8  ;;  %375 = vmatmul.bf16.vlgmr.msra.gmra.mxu1 %v457_v19 }
  0xaa   :  { %394 = vmatmul.bf16.vlgmr.msra.gmra.mxu2 %v453_v8  ;;  %413 = vmatmul.bf16.vlgmr.msra.gmra.mxu3 %v457_v19 }
  0xb9   :  { %361 = vmatmul.bf16.gmra.mxu0 %v461_v22  ;;  %380 = vmatmul.bf16.gmra.mxu1 %v465_v18 }
  0xba   :  { %399 = vmatmul.bf16.gmra.mxu2 %v461_v22  ;;  %418 = vmatmul.bf16.gmra.mxu3 %v465_v18 }
 0x126   :  { %v357_v23 = vpop.f32.mrf.mxu0  ;;  %v376_v21 = vpop.f32.mrf.mxu1 }
 0x127   :  { %v377_v24 = vadd.f32 %v376_v21, %v357_v23 }
 0x129   :  { %424 = vst [vmem:[#allocation3] sm:$0xff] %v377_v24 }
 0x12d   :  { %v395_v25 = vpop.f32.mrf.mxu2  ;;  %v414_v26 = vpop.f32.mrf.mxu3 }
 0x12e   :  { %v415_v27 = vadd.f32 %v414_v26, %v395_v25  ;;  %v359_v28 = vpop.f32.mrf.mxu0  ;;  %v378_v29 = vpop.f32.mrf.mxu1 }
 0x12f   :  { %v379_v30 = vadd.f32 %v378_v29, %v359_v28 }
 0x130   :  { %425 = vst [vmem:[#allocation3 + $0x8] sm:$0xff] %v415_v27 }
 0x131   :  { %426 = vst [vmem:[#allocation3 + $0x10] sm:$0xff] %v379_v30 }
 0x135   :  { %v397_v31 = vpop.f32.mrf.mxu2  ;;  %v416_v32 = vpop.f32.mrf.mxu3 }
 0x136   :  { %v417_v33 = vadd.f32 %v416_v32, %v397_v31  ;;  %v362_v34 = vpop.f32.mrf.mxu0  ;;  %v381_v35 = vpop.f32.mrf.mxu1 }
 0x137   :  { %v382_v36 = vadd.f32 %v381_v35, %v362_v34 }
 0x138   :  { %427 = vst [vmem:[#allocation3 + $0x18] sm:$0xff] %v417_v33 }
 0x139   :  { %428 = vst [vmem:[#allocation3 + $0x20] sm:$0xff] %v382_v36 }
 0x13d   :  { %v400_v37 = vpop.f32.mrf.mxu2  ;;  %v419_v39 = vpop.f32.mrf.mxu3 }
 0x13e   :  { %v420_v40 = vadd.f32 %v419_v39, %v400_v37  ;;  %v364_v41 = vpop.f32.mrf.mxu0  ;;  %v383_v38 = vpop.f32.mrf.mxu1 }
 0x13f   :  { %v384_v43 = vadd.f32 %v383_v38, %v364_v41 }
 0x140   :  { %429 = vst [vmem:[#allocation3 + $0x28] sm:$0xff] %v420_v40 }
 0x141   :  { %430 = vst [vmem:[#allocation3 + $0x30] sm:$0xff] %v384_v43 }
 0x145   :  { %v402_v44 = vpop.f32.mrf.mxu2  ;;  %v421_v45 = vpop.f32.mrf.mxu3 }
 0x146   :  { %v422_v46 = vadd.f32 %v421_v45, %v402_v44 }
 0x148   :  { %431 = vst [vmem:[#allocation3 + $0x38] sm:$0xff] %v422_v46 }
 0x149   :  { %444 = dma.vmem_to_hbm [thread:$0]  %s437_s17, 1024, %s439_s20, [#allocation4], %s672_s21, %s672_s21, %s673_s22  }
 0x14a   :  { %668 = dma.done.wait [#allocation4], 1024  }
 0x14b   :  { %669 = vsyncadd [#allocation4], 4294966272 }
 0x14c   :  { %449 = vsyncpa [#allocation4], 1 }

// kernel: _lambda_.12
= control target key start
LH: loop header
LB: loop body
LE: loop exit
PB: predicated region body
PF: predicated region fallthrough
CT: control target
= control target key end

     0   :  { %s2582_s18 = smov 0   ;;  %s2584_s19 = smov 0   ;;  %s3352_s0 = inlined_call_operand.vmem [shape: f32[32,256], index: 0, kind: input, shape index: {}]   ;;  %s3353_s1 = inlined_call_operand.vmem [shape: f32[1,256], index: 1, kind: input, shape index: {}]   ;;  %s3354_s2 = inlined_call_operand.vmem [shape: bf16[256,768], index: 2, kind: input, shape index: {}]   ;;  %s3355_s3 = inlined_call_operand.vmem [shape: bf16[256,768], index: 3, kind: input, shape index: {}]   ;;  %s3356_s4 = inlined_call_operand.vmem [shape: bf16[768,256], index: 4, kind: input, shape index: {}]   ;;  %s3357_s5 = inlined_call_operand.vmem [shape: f32[32,256], index: 5, kind: output, shape index: {}]  }
   0x1   :  { %s2586_s20 = smov 0   ;;  %s2588_s21 = smov 0  }
   0x2   :  { %s2590_s22 = smov 0  }
   0x3 LB: > { %s24_s23 = sadd.s32 1, %s2545_s21  ;;  %p88_p1 = scmp.ne.s32.totalorder %s2537_s19, %s2533_s18  ;;  %s2549_s22 = sphi %s2590_s22, %s15_s22   ;;  %s2545_s21 = sphi %s2588_s21, %s3376_s21   ;;  %s2541_s20 = sphi %s2586_s20, %s3375_s20   ;;  %s2537_s19 = sphi %s2584_s19, %s3374_s19   ;;  %s2533_s18 = sphi %s2582_s18, %s3373_s18  }
   0x4   : > { %p25_p0 = scmp.ge.s32.totalorder %s24_s23, 3  ;;  %p89_p2 = scmp.eq.s32.totalorder %s2549_s22, 0 }
   0x5   : > { %s81_s26 = sadd.s32 1, %s2537_s19  ;;  %p1899_p5 = scmp.ge.s32.totalorder %s2549_s22, 3 }
   0x6   : > { %s3378_s23 = smov (%p25_p0, %s24_s23), 0  ;;  %p2613_p3 = por %p89_p2, %p88_p1 }
   0x7   : > { %s78_s25 = ssub.s32 %s2545_s21, %s3378_s23  ;;  %205 = sbr.rel (%p1899_p5) target bundleno = 84 (0x54), region = 24 }
   0x8   : > { %p79_p4 = scmp.eq.s32.totalorder %s78_s25, 0 }
   0xa   : > { %s2621_s27 = scalar_select %p79_p4, %s2537_s19, %s81_s26  }
   0xc   : > { %208 = sbr.rel (!%p2613_p3) target bundleno = 48 (0x30), region = 28  ;;  %s210_s28 = sand.u32 (%p2613_p3), 1, %s2537_s19  }
   0xd   : > { %s2325_s29 = sshll.u32 (%p2613_p3), %s2545_s21, 3  ;;  %s1900_s30 = sshll.u32 (%p2613_p3), %s210_s28, 8 }
   0xe   : > { %s2631_s8 = scalar_lea.vmem (%p2613_p3), %s3354_s2, %s2325_s29  ;;  %s2636_s9 = scalar_lea.vmem (%p2613_p3), [#allocation3], %s1900_s30 }
   0xf   : > { %v306_v0 = vld [vmem:[%s2631_s8] sm:$0xff] (%p2613_p3)  ;;  %v308_v1 = vld [vmem:[%s2631_s8 + $0x18] sm:$0xff] (%p2613_p3)  ;;  %v310_v2 = vld [vmem:[%s2631_s8 + $0x30] sm:$0xff] (%p2613_p3) }
  0x10   : > { %307 = vst [vmem:[%s2636_s9] sm:$0xff] (%p2613_p3), %v306_v0  ;;  %v312_v3 = vld [vmem:[%s2631_s8 + $0x48] sm:$0xff] (%p2613_p3)  ;;  %v314_v4 = vld [vmem:[%s2631_s8 + $0x60] sm:$0xff] (%p2613_p3)  ;;  %v316_v5 = vld [vmem:[%s2631_s8 + $0x78] sm:$0xff] (%p2613_p3) }
  0x11   : > { %309 = vst [vmem:[%s2636_s9 + $0x8] sm:$0xff] %v308_v1  ;;  %v318_v6 = vld [vmem:[%s2631_s8 + $0x90] sm:$0xff]  ;;  %v320_v7 = vld [vmem:[%s2631_s8 + $0xa8] sm:$0xff]  ;;  %v322_v8 = vld [vmem:[%s2631_s8 + $0xc0] sm:$0xff] }
  0x12   : > { %311 = vst [vmem:[%s2636_s9 + $0x10] sm:$0xff] %v310_v2  ;;  %v324_v9 = vld [vmem:[%s2631_s8 + $0xd8] sm:$0xff]  ;;  %v326_v10 = vld [vmem:[%s2631_s8 + $0xf0] sm:$0xff]  ;;  %v328_v11 = vld [vmem:[%s2631_s8 + $0x108] sm:$0xff] }
  0x13   : > { %313 = vst [vmem:[%s2636_s9 + $0x18] sm:$0xff] %v312_v3  ;;  %v330_v12 = vld [vmem:[%s2631_s8 + $0x120] sm:$0xff]  ;;  %v332_v13 = vld [vmem:[%s2631_s8 + $0x138] sm:$0xff]  ;;  %v334_v14 = vld [vmem:[%s2631_s8 + $0x150] sm:$0xff] }
  0x14   : > { %315 = vst [vmem:[%s2636_s9 + $0x20] sm:$0xff] %v314_v4  ;;  %v336_v15 = vld [vmem:[%s2631_s8 + $0x168] sm:$0xff]  ;;  %v338_v16 = vld [vmem:[%s2631_s8 + $0x180] sm:$0xff]  ;;  %v340_v17 = vld [vmem:[%s2631_s8 + $0x198] sm:$0xff] }
  0x15   : > { %317 = vst [vmem:[%s2636_s9 + $0x28] sm:$0xff] %v316_v5  ;;  %v342_v18 = vld [vmem:[%s2631_s8 + $0x1b0] sm:$0xff]  ;;  %v344_v19 = vld [vmem:[%s2631_s8 + $0x1c8] sm:$0xff]  ;;  %v346_v20 = vld [vmem:[%s2631_s8 + $0x1e0] sm:$0xff] }
  0x16   : > { %319 = vst [vmem:[%s2636_s9 + $0x30] sm:$0xff] %v318_v6  ;;  %v348_v21 = vld [vmem:[%s2631_s8 + $0x1f8] sm:$0xff]  ;;  %v350_v22 = vld [vmem:[%s2631_s8 + $0x210] sm:$0xff]  ;;  %v352_v23 = vld [vmem:[%s2631_s8 + $0x228] sm:$0xff] }
  0x17   : > { %321 = vst [vmem:[%s2636_s9 + $0x38] sm:$0xff] %v320_v7  ;;  %v354_v24 = vld [vmem:[%s2631_s8 + $0x240] sm:$0xff]  ;;  %v356_v25 = vld [vmem:[%s2631_s8 + $0x258] sm:$0xff]  ;;  %v358_v26 = vld [vmem:[%s2631_s8 + $0x270] sm:$0xff] }
  0x18   : > { %323 = vst [vmem:[%s2636_s9 + $0x40] sm:$0xff] %v322_v8  ;;  %v360_v27 = vld [vmem:[%s2631_s8 + $0x288] sm:$0xff]  ;;  %v362_v28 = vld [vmem:[%s2631_s8 + $0x2a0] sm:$0xff]  ;;  %v364_v29 = vld [vmem:[%s2631_s8 + $0x2b8] sm:$0xff] }
  0x19   : > { %325 = vst [vmem:[%s2636_s9 + $0x48] sm:$0xff] %v324_v9  ;;  %v366_v30 = vld [vmem:[%s2631_s8 + $0x2d0] sm:$0xff]  ;;  %v368_v31 = vld [vmem:[%s2631_s8 + $0x2e8] sm:$0xff] }
  0x1a   : > { %327 = vst [vmem:[%s2636_s9 + $0x50] sm:$0xff] %v326_v10 }
  0x1b   : > { %329 = vst [vmem:[%s2636_s9 + $0x58] sm:$0xff] %v328_v11 }
  0x1c   : > { %331 = vst [vmem:[%s2636_s9 + $0x60] sm:$0xff] %v330_v12 }
  0x1d   : > { %333 = vst [vmem:[%s2636_s9 + $0x68] sm:$0xff] %v332_v13 }
  0x1e   : > { %335 = vst [vmem:[%s2636_s9 + $0x70] sm:$0xff] %v334_v14 }
  0x1f   : > { %337 = vst [vmem:[%s2636_s9 + $0x78] sm:$0xff] %v336_v15 }
  0x20   : > { %339 = vst [vmem:[%s2636_s9 + $0x80] sm:$0xff] %v338_v16 }
  0x21   : > { %341 = vst [vmem:[%s2636_s9 + $0x88] sm:$0xff] %v340_v17 }
  0x22   : > { %343 = vst [vmem:[%s2636_s9 + $0x90] sm:$0xff] %v342_v18 }
  0x23   : > { %345 = vst [vmem:[%s2636_s9 + $0x98] sm:$0xff] %v344_v19 }
  0x24   : > { %347 = vst [vmem:[%s2636_s9 + $0xa0] sm:$0xff] %v346_v20 }
  0x25   : > { %349 = vst [vmem:[%s2636_s9 + $0xa8] sm:$0xff] %v348_v21 }
  0x26   : > { %351 = vst [vmem:[%s2636_s9 + $0xb0] sm:$0xff] %v350_v22 }
  0x27   : > { %353 = vst [vmem:[%s2636_s9 + $0xb8] sm:$0xff] %v352_v23 }
  0x28   : > { %355 = vst [vmem:[%s2636_s9 + $0xc0] sm:$0xff] %v354_v24 }
  0x29   : > { %357 = vst [vmem:[%s2636_s9 + $0xc8] sm:$0xff] %v356_v25 }
  0x2a   : > { %359 = vst [vmem:[%s2636_s9 + $0xd0] sm:$0xff] %v358_v26 }
  0x2b   : > { %361 = vst [vmem:[%s2636_s9 + $0xd8] sm:$0xff] %v360_v27 }
  0x2c   : > { %363 = vst [vmem:[%s2636_s9 + $0xe0] sm:$0xff] %v362_v28 }
  0x2d   : > { %365 = vst [vmem:[%s2636_s9 + $0xe8] sm:$0xff] %v364_v29 }
  0x2e   : > { %367 = vst [vmem:[%s2636_s9 + $0xf0] sm:$0xff] %v366_v30 }
  0x2f   : > { %369 = vst [vmem:[%s2636_s9 + $0xf8] sm:$0xff] %v368_v31 }
  0x30 PF: > { %375 = sbr.rel (!%p2613_p3) target bundleno = 84 (0x54), region = 66  ;;  %s377_s10 = sand.u32 (%p2613_p3), 1, %s2537_s19  }
  0x31   : > { %s2326_s11 = sshll.u32 (%p2613_p3), %s2545_s21, 3  ;;  %s1903_s12 = sshll.u32 (%p2613_p3), %s377_s10, 8 }
  0x32   : > { %s2706_s15 = scalar_lea.vmem (%p2613_p3), %s3355_s3, %s2326_s11  ;;  %s2711_s16 = scalar_lea.vmem (%p2613_p3), [#allocation4], %s1903_s12 }
  0x33   : > { %v473_v32 = vld [vmem:[%s2706_s15] sm:$0xff] (%p2613_p3)  ;;  %v475_v33 = vld [vmem:[%s2706_s15 + $0x18] sm:$0xff] (%p2613_p3)  ;;  %v477_v34 = vld [vmem:[%s2706_s15 + $0x30] sm:$0xff] (%p2613_p3) }
  0x34   : > { %474 = vst [vmem:[%s2711_s16] sm:$0xff] (%p2613_p3), %v473_v32  ;;  %v479_v35 = vld [vmem:[%s2706_s15 + $0x48] sm:$0xff] (%p2613_p3)  ;;  %v481_v36 = vld [vmem:[%s2706_s15 + $0x60] sm:$0xff] (%p2613_p3)  ;;  %v483_v37 = vld [vmem:[%s2706_s15 + $0x78] sm:$0xff] (%p2613_p3) }
  0x35   : > { %476 = vst [vmem:[%s2711_s16 + $0x8] sm:$0xff] %v475_v33  ;;  %v485_v38 = vld [vmem:[%s2706_s15 + $0x90] sm:$0xff]  ;;  %v487_v39 = vld [vmem:[%s2706_s15 + $0xa8] sm:$0xff]  ;;  %v489_v40 = vld [vmem:[%s2706_s15 + $0xc0] sm:$0xff] }
  0x36   : > { %478 = vst [vmem:[%s2711_s16 + $0x10] sm:$0xff] %v477_v34  ;;  %v491_v41 = vld [vmem:[%s2706_s15 + $0xd8] sm:$0xff]  ;;  %v493_v42 = vld [vmem:[%s2706_s15 + $0xf0] sm:$0xff]  ;;  %v495_v43 = vld [vmem:[%s2706_s15 + $0x108] sm:$0xff] }
  0x37   : > { %480 = vst [vmem:[%s2711_s16 + $0x18] sm:$0xff] %v479_v35  ;;  %v497_v44 = vld [vmem:[%s2706_s15 + $0x120] sm:$0xff]  ;;  %v499_v45 = vld [vmem:[%s2706_s15 + $0x138] sm:$0xff]  ;;  %v501_v46 = vld [vmem:[%s2706_s15 + $0x150] sm:$0xff] }
  0x38   : > { %482 = vst [vmem:[%s2711_s16 + $0x20] sm:$0xff] %v481_v36  ;;  %v503_v47 = vld [vmem:[%s2706_s15 + $0x168] sm:$0xff]  ;;  %v505_v48 = vld [vmem:[%s2706_s15 + $0x180] sm:$0xff]  ;;  %v507_v49 = vld [vmem:[%s2706_s15 + $0x198] sm:$0xff] }
  0x39   : > { %484 = vst [vmem:[%s2711_s16 + $0x28] sm:$0xff] %v483_v37  ;;  %v509_v50 = vld [vmem:[%s2706_s15 + $0x1b0] sm:$0xff]  ;;  %v511_v51 = vld [vmem:[%s2706_s15 + $0x1c8] sm:$0xff]  ;;  %v513_v52 = vld [vmem:[%s2706_s15 + $0x1e0] sm:$0xff] }
  0x3a   : > { %486 = vst [vmem:[%s2711_s16 + $0x30] sm:$0xff] %v485_v38  ;;  %v515_v53 = vld [vmem:[%s2706_s15 + $0x1f8] sm:$0xff]  ;;  %v517_v54 = vld [vmem:[%s2706_s15 + $0x210] sm:$0xff]  ;;  %v519_v55 = vld [vmem:[%s2706_s15 + $0x228] sm:$0xff] }
  0x3b   : > { %488 = vst [vmem:[%s2711_s16 + $0x38] sm:$0xff] %v487_v39  ;;  %v521_v56 = vld [vmem:[%s2706_s15 + $0x240] sm:$0xff]  ;;  %v523_v57 = vld [vmem:[%s2706_s15 + $0x258] sm:$0xff]  ;;  %v525_v58 = vld [vmem:[%s2706_s15 + $0x270] sm:$0xff] }
  0x3c   : > { %490 = vst [vmem:[%s2711_s16 + $0x40] sm:$0xff] %v489_v40  ;;  %v527_v59 = vld [vmem:[%s2706_s15 + $0x288] sm:$0xff]  ;;  %v529_v60 = vld [vmem:[%s2706_s15 + $0x2a0] sm:$0xff]  ;;  %v531_v61 = vld [vmem:[%s2706_s15 + $0x2b8] sm:$0xff] }
  0x3d   : > { %492 = vst [vmem:[%s2711_s16 + $0x48] sm:$0xff] %v491_v41  ;;  %v533_v62 = vld [vmem:[%s2706_s15 + $0x2d0] sm:$0xff]  ;;  %v535_v63 = vld [vmem:[%s2706_s15 + $0x2e8] sm:$0xff] }
  0x3e   : > { %494 = vst [vmem:[%s2711_s16 + $0x50] sm:$0xff] %v493_v42 }
  0x3f   : > { %496 = vst [vmem:[%s2711_s16 + $0x58] sm:$0xff] %v495_v43 }
  0x40   : > { %498 = vst [vmem:[%s2711_s16 + $0x60] sm:$0xff] %v497_v44 }
  0x41   : > { %500 = vst [vmem:[%s2711_s16 + $0x68] sm:$0xff] %v499_v45 }
  0x42   : > { %502 = vst [vmem:[%s2711_s16 + $0x70] sm:$0xff] %v501_v46 }
  0x43   : > { %504 = vst [vmem:[%s2711_s16 + $0x78] sm:$0xff] %v503_v47 }
  0x44   : > { %506 = vst [vmem:[%s2711_s16 + $0x80] sm:$0xff] %v505_v48 }
  0x45   : > { %508 = vst [vmem:[%s2711_s16 + $0x88] sm:$0xff] %v507_v49 }
  0x46   : > { %510 = vst [vmem:[%s2711_s16 + $0x90] sm:$0xff] %v509_v50 }
  0x47   : > { %512 = vst [vmem:[%s2711_s16 + $0x98] sm:$0xff] %v511_v51 }
  0x48   : > { %514 = vst [vmem:[%s2711_s16 + $0xa0] sm:$0xff] %v513_v52 }
  0x49   : > { %516 = vst [vmem:[%s2711_s16 + $0xa8] sm:$0xff] %v515_v53 }
  0x4a   : > { %518 = vst [vmem:[%s2711_s16 + $0xb0] sm:$0xff] %v517_v54 }
  0x4b   : > { %520 = vst [vmem:[%s2711_s16 + $0xb8] sm:$0xff] %v519_v55 }
  0x4c   : > { %522 = vst [vmem:[%s2711_s16 + $0xc0] sm:$0xff] %v521_v56 }
  0x4d   : > { %524 = vst [vmem:[%s2711_s16 + $0xc8] sm:$0xff] %v523_v57 }
  0x4e   : > { %526 = vst [vmem:[%s2711_s16 + $0xd0] sm:$0xff] %v525_v58 }
  0x4f   : > { %528 = vst [vmem:[%s2711_s16 + $0xd8] sm:$0xff] %v527_v59 }
  0x50   : > { %530 = vst [vmem:[%s2711_s16 + $0xe0] sm:$0xff] %v529_v60 }
  0x51   : > { %532 = vst [vmem:[%s2711_s16 + $0xe8] sm:$0xff] %v531_v61 }
  0x52   : > { %534 = vst [vmem:[%s2711_s16 + $0xf0] sm:$0xff] %v533_v62 }
  0x53   : > { %536 = vst [vmem:[%s2711_s16 + $0xf8] sm:$0xff] %v535_v63 }
  0x54 PF: > { %p1906_p6 = scmp.ge.s32.totalorder %s2549_s22, 1  ;;  %p551_p7 = scmp.lt.s32.totalorder %s2549_s22, 4 }
  0x56   : > { %p552_p8 = pnand %p1906_p6, %p551_p7 }
  0x57   : > { %s558_s17 = sand.u32 (!%p552_p8), 1, %s2533_s18   ;;  %s1909_s24 = sshll.u32 (!%p552_p8), %s2541_s20, 5 }
  0x58   : > { %555 = sbr.rel (%p552_p8) target bundleno = 632 (0x278), region = 108  ;;  %s1907_s25 = sshll.u32 (!%p552_p8), %s558_s17, 8 }
  0x59   : > { %p619_p9 = scmp.lt.s32.totalorder (!%p552_p8), %s1909_s24, 95  ;;  %s2783_s6 = scalar_lea.vmem (!%p552_p8), [#allocation3], %s1907_s25 }
  0x5a   : > { %s2785_s7 = scalar_lea.vmem (!%p552_p8), [#allocation4], %s1907_s25  ;;  %p1912_p10 = scmp.ne.s32.totalorder (!%p552_p8), %s2541_s20, 0 }
  0x5d   : > { %s3380_s24 = smov (!%p619_p9, %s1909_s24), 95  ;;  %635 = sbr.rel (%p1912_p10) target bundleno = 257 (0x101), region = 120 }
  0x5e   : > { %s2327_s26 = sshll.u32 %s3380_s24, 3 }
  0x5f   : > { %s2781_s30 = scalar_lea.vmem %s3356_s4, %s2327_s26 }
  0x62   : > { %v2791_v0 = vld [vmem:[%s3352_s0 + $0x20] sm:$0xff]  ;;  %v2796_v1 = vld [vmem:[%s3352_s0 + $0x28] sm:$0xff]  ;;  %v2827_v8 = vld [vmem:[%s3352_s0 + $0x30] sm:$0xff]  ;;  %v2551_v20 = vmov 256.0  }
  0x63   : > { %v2801_v2 = vld [vmem:[%s3352_s0] sm:$0xff]  ;;  %v648_v3 = vmul.f32 %v2791_v0, %v2791_v0  ;;  %v649_v4 = vmul.f32 %v2796_v1, %v2796_v1  ;;  %753 = vst [vmem:[%s3357_s5 + $0x20] sm:$0xff] %v2791_v0  ;;  %v2814_v5 = vld [vmem:[%s3352_s0 + $0x8] sm:$0xff]  ;;  %v2832_v9 = vld [vmem:[%s3352_s0 + $0x38] sm:$0xff]  ;;  %v650_v14 = vmul.f32 %v2827_v8, %v2827_v8  ;;  %2469 = vrcp.f32 %v2551_v20 }
  0x64   : > { %v644_v6 = vmul.f32 %v2801_v2, %v2801_v2  ;;  %754 = vst [vmem:[%s3357_s5 + $0x28] sm:$0xff] %v2796_v1  ;;  %v645_v7 = vmul.f32 %v2814_v5, %v2814_v5  ;;  %v2841_v11 = vld [vmem:[%s3352_s0 + $0x10] sm:$0xff]  ;;  %v2846_v12 = vld [vmem:[%s3352_s0 + $0x18] sm:$0xff]  ;;  %v651_v15 = vmul.f32 %v2832_v9, %v2832_v9  ;;  %v727_v46 = vld [vmem:[%s3353_s1] sm:$0x3] }
  0x65   : > { %v658_v10 = vadd.f32 %v649_v4, %v648_v3  ;;  %749 = vst [vmem:[%s3357_s5] sm:$0xff] %v2801_v2  ;;  %v646_v16 = vmul.f32 %v2841_v11, %v2841_v11  ;;  %v647_v17 = vmul.f32 %v2846_v12, %v2846_v12  ;;  %v729_v52 = vperm.slane %v727_v46, 0 }
  0x66   : > { %v652_v13 = vadd.f32 %v645_v7, %v644_v6  ;;  %750 = vst [vmem:[%s3357_s5 + $0x8] sm:$0xff] %v2814_v5  ;;  %v661_v18 = vadd.f32 %v651_v15, %v650_v14  ;;  %v730_v55 = vperm.slane %v727_v46, 1 }
  0x67   : > { %659 = vadd.xlane.f32.xlu1 %v658_v10  ;;  %755 = vst [vmem:[%s3357_s5 + $0x30] sm:$0xff] %v2827_v8  ;;  %v655_v19 = vadd.f32 %v647_v17, %v646_v16 }
  0x68   : > { %653 = vadd.xlane.f32.xlu0 %v652_v13  ;;  %756 = vst [vmem:[%s3357_s5 + $0x38] sm:$0xff] %v2832_v9 }
  0x69   : > { %751 = vst [vmem:[%s3357_s5 + $0x10] sm:$0xff] %v2841_v11  ;;  %v2470_v21 = vpop.eup %2469 }
  0x6a   : > { %752 = vst [vmem:[%s3357_s5 + $0x18] sm:$0xff] %v2846_v12  ;;  %v665_v22 = vmul.f32 256.0, %v2470_v21  ;;  %vm669_vm0 = vweird.f32 %v2470_v21 }
  0x6c   : > { %v666_v23 = vsub.f32 1.0, %v665_v22 }
  0x6e   : > { %v667_v24 = vmul.f32 %v2470_v21, %v666_v23 }
  0x6f   : > { %662 = vadd.xlane.f32.xlu1 %v661_v18 }
  0x70   : > { %656 = vadd.xlane.f32.xlu0 %v655_v19  ;;  %v668_v25 = vadd.f32 %v2470_v21, %v667_v24 }
  0x72   : > { %v670_v26 = vsel %vm669_vm0, %v2470_v21, %v668_v25 }
  0xda   : > { %v660_v27 = vpop.xlane.xlu1 %659 }
  0xdb   : > { %v673_v28 = vmul.f32 %v670_v26, %v660_v27  ;;  %v654_v29 = vpop.xlane.xlu0 %653 }
  0xdc   : > { %v671_v30 = vmul.f32 %v670_v26, %v654_v29 }
  0xdd   : > { %v677_v31 = vadd.f32 1e-05, %v673_v28 }
  0xde   : > { %v675_v32 = vadd.f32 1e-05, %v671_v30 }
  0xdf   : > { %2471 = vrsqrt.f32 %v677_v31  ;;  %vm705_vm3 = vweird.f32 %v677_v31 }
  0xe0   : > { %2473 = vrsqrt.f32 %v675_v32  ;;  %vm685_vm5 = vweird.f32 %v675_v32 }
  0xe2   : > { %v663_v33 = vpop.xlane.xlu1 %662 }
  0xe3   : > { %v674_v34 = vmul.f32 %v670_v26, %v663_v33  ;;  %v657_v35 = vpop.xlane.xlu0 %656 }
  0xe4   : > { %v672_v36 = vmul.f32 %v670_v26, %v657_v35 }
  0xe5   : > { %v2472_v37 = vpop.eup %2471  ;;  %v678_v38 = vadd.f32 1e-05, %v674_v34 }
  0xe6   : > { %v2474_v39 = vpop.eup %2473  ;;  %v700_v40 = vmul.f32 %v2472_v37, %v677_v31  ;;  %v676_v41 = vadd.f32 1e-05, %v672_v36  ;;  %vm706_vm1 = vweird.f32 %v2472_v37 }
  0xe7   : > { %v680_v42 = vmul.f32 %v2474_v39, %v675_v32  ;;  %2475 = vrsqrt.f32 %v678_v38  ;;  %vm686_vm2 = vweird.f32 %v2474_v39  ;;  %vm707_vm4 = vmor %vm705_vm3, %vm706_vm1  ;;  %vm715_vm9 = vweird.f32 %v678_v38 }
  0xe8   : > { %v701_v43 = vmul.f32 %v2472_v37, %v700_v40  ;;  %2477 = vrsqrt.f32 %v676_v41  ;;  %vm687_vm6 = vmor %vm685_vm5, %vm686_vm2  ;;  %vm695_vm11 = vweird.f32 %v676_v41 }
  0xe9   : > { %v681_v44 = vmul.f32 %v2474_v39, %v680_v42 }
  0xea   : > { %v702_v45 = vmul.f32 0.5, %v701_v43 }
  0xeb   : > { %v682_v47 = vmul.f32 0.5, %v681_v44 }
  0xec   : > { %v703_v48 = vsub.f32 1.5, %v702_v45 }
  0xed   : > { %v2476_v49 = vpop.eup %2475  ;;  %v683_v50 = vsub.f32 1.5, %v682_v47 }
  0xee   : > { %v2478_v51 = vpop.eup %2477  ;;  %v704_v53 = vmul.f32 %v2472_v37, %v703_v48  ;;  %v710_v54 = vmul.f32 %v2476_v49, %v678_v38  ;;  %vm716_vm7 = vweird.f32 %v2476_v49 }
  0xef   : > { %v684_v56 = vmul.f32 %v2474_v39, %v683_v50  ;;  %v690_v57 = vmul.f32 %v2478_v51, %v676_v41  ;;  %vm696_vm8 = vweird.f32 %v2478_v51  ;;  %vm717_vm10 = vmor %vm715_vm9, %vm716_vm7 }
  0xf0   : > { %v708_v58 = vsel %vm707_vm4, %v2472_v37, %v704_v53  ;;  %v711_v59 = vmul.f32 %v2476_v49, %v710_v54  ;;  %vm697_vm12 = vmor %vm695_vm11, %vm696_vm8 }
  0xf1   : > { %v723_v60 = vmul.f32 %v708_v58, %v2791_v0  ;;  %v724_v61 = vmul.f32 %v708_v58, %v2796_v1  ;;  %v688_v62 = vsel %vm687_vm6, %v2474_v39, %v684_v56  ;;  %v691_v63 = vmul.f32 %v2478_v51, %v690_v57 }
  0xf2   : > { %v719_v3 = vmul.f32 %v688_v62, %v2801_v2  ;;  %v720_v4 = vmul.f32 %v688_v62, %v2814_v5  ;;  %v712_v6 = vmul.f32 0.5, %v711_v59 }
  0xf3   : > { %v737_v7 = vmul.f32 %v729_v52, %v723_v60  ;;  %v738_v10 = vmul.f32 %v730_v55, %v724_v61  ;;  %v692_v13 = vmul.f32 0.5, %v691_v63 }
  0xf4   : > { %v733_v14 = vmul.f32 %v729_v52, %v719_v3  ;;  %v734_v15 = vmul.f32 %v730_v55, %v720_v4  ;;  %v713_v16 = vsub.f32 1.5, %v712_v6 }
  0xf5   : > { %v743_v17 = vpack.c.bf16 %v738_v10, %v737_v7  ;;  %v693_v18 = vsub.f32 1.5, %v692_v13 }
  0xf6   : > { %v741_v0 = vpack.c.bf16 %v734_v15, %v733_v14  ;;  %v714_v19 = vmul.f32 %v2476_v49, %v713_v16 }
  0xf7   : > { %747 = vst [vmem:[#allocation2 + $0x10] sm:$0xff] %v743_v17  ;;  %v694_v1 = vmul.f32 %v2478_v51, %v693_v18 }
  0xf8   : > { %745 = vst [vmem:[#allocation2] sm:$0xff] %v741_v0  ;;  %v718_v2 = vsel %vm717_vm10, %v2476_v49, %v714_v19 }
  0xf9   : > { %v725_v5 = vmul.f32 %v718_v2, %v2827_v8  ;;  %v726_v20 = vmul.f32 %v718_v2, %v2832_v9  ;;  %v698_v21 = vsel %vm697_vm12, %v2478_v51, %v694_v1 }
  0xfa   : > { %v721_v22 = vmul.f32 %v698_v21, %v2841_v11  ;;  %v722_v23 = vmul.f32 %v698_v21, %v2846_v12 }
  0xfb   : > { %v739_v24 = vmul.f32 %v729_v52, %v725_v5  ;;  %v740_v25 = vmul.f32 %v730_v55, %v726_v20 }
  0xfc   : > { %v735_v26 = vmul.f32 %v729_v52, %v721_v22  ;;  %v736_v27 = vmul.f32 %v730_v55, %v722_v23 }
  0xfd   : > { %v744_v28 = vpack.c.bf16 %v740_v25, %v739_v24 }
  0xfe   : > { %v742_v29 = vpack.c.bf16 %v736_v27, %v735_v26 }
  0xff   : > { %748 = vst [vmem:[#allocation2 + $0x18] sm:$0xff] %v744_v28 }
 0x100   : > { %746 = vst [vmem:[#allocation2 + $0x8] sm:$0xff] %v742_v29 }
 0x101 PF: > { %v1987_v8 = vld [vmem:[%s2783_s6 + $0x70] sm:$0xf]  ;;  %v2347_v9 = vld [vmem:[%s2783_s6 + $0x74] sm:$0xf0]  ;;  %v2346_v31 = vld [vmem:[%s2783_s6 + $0x74] sm:$0xf] }
 0x102   : > { %v2051_v11 = vld [vmem:[%s2783_s6 + $0xf0] sm:$0xf]  ;;  %v1988_v12 = vor.u32 %v2347_v9, %v1987_v8  ;;  %v2363_v30 = vld [vmem:[%s2783_s6 + $0xf4] sm:$0xf0]  ;;  %v1989_v32 = vld [vmem:[%s2783_s6 + $0x78] sm:$0xf0] }
 0x103   : > { %v2052_v33 = vor.u32 %v2363_v30, %v2051_v11  ;;  %v1992_v34 = vor.u32 %v2346_v31, %v1989_v32  ;;  %v2362_v35 = vld [vmem:[%s2783_s6 + $0xf4] sm:$0xf]  ;;  %v2053_v36 = vld [vmem:[%s2783_s6 + $0xf8] sm:$0xf0]  ;;  %v1979_v37 = vld [vmem:[%s2783_s6 + $0x60] sm:$0xf] }
 0x104   : > { %973 = vmatpush.bf16.msra.mxu0 %v1988_v12  ;;  %v2056_v38 = vor.u32 %v2362_v35, %v2053_v36  ;;  %v2345_v39 = vld [vmem:[%s2783_s6 + $0x64] sm:$0xf0]  ;;  %v2043_v40 = vld [vmem:[%s2783_s6 + $0xe0] sm:$0xf]  ;;  %v2344_v44 = vld [vmem:[%s2783_s6 + $0x64] sm:$0xf] }
 0x105   : > { %v2361_v41 = vld [vmem:[%s2783_s6 + $0xe4] sm:$0xf0]  ;;  %992 = vmatpush.bf16.msra.mxu1 %v2052_v33  ;;  %1011 = vmatpush.bf16.msra.mxu2 %v1992_v34  ;;  %v1980_v42 = vor.u32 %v2345_v39, %v1979_v37  ;;  %v1981_v45 = vld [vmem:[%s2783_s6 + $0x68] sm:$0xf0]  ;;  %v2360_v46 = vld [vmem:[%s2783_s6 + $0xe4] sm:$0xf] }
 0x106   : > { %v2044_v43 = vor.u32 %v2361_v41, %v2043_v40  ;;  %1030 = vmatpush.bf16.msra.mxu3 %v2056_v38  ;;  %v1984_v47 = vor.u32 %v2344_v44, %v1981_v45  ;;  %v2045_v48 = vld [vmem:[%s2783_s6 + $0xe8] sm:$0xf0]  ;;  %v1971_v49 = vld [vmem:[%s2783_s6 + $0x50] sm:$0xf]  ;;  %v2343_v50 = vld [vmem:[%s2783_s6 + $0x54] sm:$0xf0] }
 0x107   : > { %v2048_v51 = vor.u32 %v2360_v46, %v2045_v48  ;;  %v2035_v52 = vld [vmem:[%s2783_s6 + $0xd0] sm:$0xf]  ;;  %v2359_v53 = vld [vmem:[%s2783_s6 + $0xd4] sm:$0xf0]  ;;  %v2342_v54 = vld [vmem:[%s2783_s6 + $0x54] sm:$0xf]  ;;  %v1972_v55 = vor.u32 %v2343_v50, %v1971_v49 }
 0x108   : > { %974 = vmatpush.bf16.msra.mxu0 %v1980_v42  ;;  %v1973_v56 = vld [vmem:[%s2783_s6 + $0x58] sm:$0xf0]  ;;  %v2358_v57 = vld [vmem:[%s2783_s6 + $0xd4] sm:$0xf]  ;;  %v2036_v59 = vor.u32 %v2359_v53, %v2035_v52  ;;  %v1963_v61 = vld [vmem:[%s2783_s6 + $0x40] sm:$0xf] }
 0x109   : > { %v2037_v58 = vld [vmem:[%s2783_s6 + $0xd8] sm:$0xf0]  ;;  %993 = vmatpush.bf16.msra.mxu1 %v2044_v43  ;;  %1012 = vmatpush.bf16.msra.mxu2 %v1984_v47  ;;  %v1976_v60 = vor.u32 %v2342_v54, %v1973_v56  ;;  %v2341_v62 = vld [vmem:[%s2783_s6 + $0x44] sm:$0xf0]  ;;  %v2027_v63 = vld [vmem:[%s2783_s6 + $0xc0] sm:$0xf] }
 0x10a   : > { %1031 = vmatpush.bf16.msra.mxu3 %v2048_v51  ;;  %v2040_v3 = vor.u32 %v2358_v57, %v2037_v58  ;;  %v2357_v4 = vld [vmem:[%s2783_s6 + $0xc4] sm:$0xf0]  ;;  %v2340_v6 = vld [vmem:[%s2783_s6 + $0x44] sm:$0xf]  ;;  %v1965_v7 = vld [vmem:[%s2783_s6 + $0x48] sm:$0xf0]  ;;  %v1964_v14 = vor.u32 %v2341_v62, %v1963_v61 }
 0x10b   : > { %v2356_v10 = vld [vmem:[%s2783_s6 + $0xc4] sm:$0xf]  ;;  %v2029_v13 = vld [vmem:[%s2783_s6 + $0xc8] sm:$0xf0]  ;;  %v2028_v15 = vor.u32 %v2357_v4, %v2027_v63  ;;  %v1968_v16 = vor.u32 %v2340_v6, %v1965_v7  ;;  %v1955_v17 = vld [vmem:[%s2783_s6 + $0x30] sm:$0xf] }
 0x10c   : > { %975 = vmatpush.bf16.msra.mxu0 %v1972_v55  ;;  %v2339_v18 = vld [vmem:[%s2783_s6 + $0x34] sm:$0xf0]  ;;  %v2019_v0 = vld [vmem:[%s2783_s6 + $0xb0] sm:$0xf]  ;;  %v2032_v19 = vor.u32 %v2356_v10, %v2029_v13  ;;  %v2338_v2 = vld [vmem:[%s2783_s6 + $0x34] sm:$0xf] }
 0x10d   : > { %994 = vmatpush.bf16.msra.mxu1 %v2036_v59  ;;  %1013 = vmatpush.bf16.msra.mxu2 %v1976_v60  ;;  %v2355_v1 = vld [vmem:[%s2783_s6 + $0xb4] sm:$0xf0]  ;;  %v1957_v5 = vld [vmem:[%s2783_s6 + $0x38] sm:$0xf0]  ;;  %v2354_v20 = vld [vmem:[%s2783_s6 + $0xb4] sm:$0xf]  ;;  %v1956_v22 = vor.u32 %v2339_v18, %v1955_v17 }
 0x10e   : > { %1032 = vmatpush.bf16.msra.mxu3 %v2040_v3  ;;  %v2021_v21 = vld [vmem:[%s2783_s6 + $0xb8] sm:$0xf0]  ;;  %v2020_v23 = vor.u32 %v2355_v1, %v2019_v0  ;;  %v1960_v24 = vor.u32 %v2338_v2, %v1957_v5  ;;  %v1947_v25 = vld [vmem:[%s2783_s6 + $0x20] sm:$0xf]  ;;  %v2337_v26 = vld [vmem:[%s2783_s6 + $0x24] sm:$0xf0] }
 0x10f   : > { %v2011_v27 = vld [vmem:[%s2783_s6 + $0xa0] sm:$0xf]  ;;  %v2024_v28 = vor.u32 %v2354_v20, %v2021_v21  ;;  %v2353_v29 = vld [vmem:[%s2783_s6 + $0xa4] sm:$0xf0]  ;;  %v2336_v8 = vld [vmem:[%s2783_s6 + $0x24] sm:$0xf]  ;;  %v1948_v30 = vor.u32 %v2337_v26, %v1947_v25 }
 0x110   : > { %976 = vmatpush.bf16.msra.mxu0 %v1964_v14  ;;  %v1949_v9 = vld [vmem:[%s2783_s6 + $0x28] sm:$0xf0]  ;;  %v2352_v11 = vld [vmem:[%s2783_s6 + $0xa4] sm:$0xf]  ;;  %v2012_v31 = vor.u32 %v2353_v29, %v2011_v27  ;;  %v1939_v33 = vld [vmem:[%s2783_s6 + $0x10] sm:$0xf] }
 0x111   : > { %995 = vmatpush.bf16.msra.mxu1 %v2028_v15  ;;  %1014 = vmatpush.bf16.msra.mxu2 %v1968_v16  ;;  %v2013_v12 = vld [vmem:[%s2783_s6 + $0xa8] sm:$0xf0]  ;;  %v1952_v32 = vor.u32 %v2336_v8, %v1949_v9  ;;  %v2335_v34 = vld [vmem:[%s2783_s6 + $0x14] sm:$0xf0]  ;;  %v2003_v35 = vld [vmem:[%s2783_s6 + $0x90] sm:$0xf] }
 0x112   : > { %1033 = vmatpush.bf16.msra.mxu3 %v2032_v19  ;;  %v2016_v36 = vor.u32 %v2352_v11, %v2013_v12  ;;  %v2351_v37 = vld [vmem:[%s2783_s6 + $0x94] sm:$0xf0]  ;;  %v2334_v38 = vld [vmem:[%s2783_s6 + $0x14] sm:$0xf]  ;;  %v1941_v39 = vld [vmem:[%s2783_s6 + $0x18] sm:$0xf0]  ;;  %v1940_v42 = vor.u32 %v2335_v34, %v1939_v33 }
 0x113   : > { %v2350_v40 = vld [vmem:[%s2783_s6 + $0x94] sm:$0xf]  ;;  %v2005_v41 = vld [vmem:[%s2783_s6 + $0x98] sm:$0xf0]  ;;  %v1931_v43 = vld [vmem:[%s2783_s6] sm:$0xf]  ;;  %v2004_v45 = vor.u32 %v2351_v37, %v2003_v35  ;;  %v1944_v46 = vor.u32 %v2334_v38, %v1941_v39 }
 0x114   : > { %977 = vmatpush.bf16.msra.mxu0 %v1956_v22  ;;  %v2333_v44 = vld [vmem:[%s2783_s6 + $0x4] sm:$0xf0]  ;;  %v1995_v47 = vld [vmem:[%s2783_s6 + $0x80] sm:$0xf]  ;;  %v2332_v49 = vld [vmem:[%s2783_s6 + $0x4] sm:$0xf]  ;;  %v2008_v50 = vor.u32 %v2350_v40, %v2005_v41 }
 0x115   : > { %996 = vmatpush.bf16.msra.mxu1 %v2020_v23  ;;  %1015 = vmatpush.bf16.msra.mxu2 %v1960_v24  ;;  %v2349_v48 = vld [vmem:[%s2783_s6 + $0x84] sm:$0xf0]  ;;  %v1933_v51 = vld [vmem:[%s2783_s6 + $0x8] sm:$0xf0]  ;;  %v2348_v52 = vld [vmem:[%s2783_s6 + $0x84] sm:$0xf]  ;;  %v1932_v57 = vor.u32 %v2333_v44, %v1931_v43 }
 0x116   : > { %1034 = vmatpush.bf16.msra.mxu3 %v2024_v28  ;;  %v1997_v53 = vld [vmem:[%s2783_s6 + $0x88] sm:$0xf0]  ;;  %v1915_v54 = vld [vmem:[#allocation2] sm:$0xf]  ;;  %v2378_v55 = vld [vmem:[%s2785_s7 + $0x74] sm:$0xf]  ;;  %v1996_v61 = vor.u32 %v2349_v48, %v1995_v47  ;;  %v1936_v62 = vor.u32 %v2332_v49, %v1933_v51 }
 0x117   : > { %v2125_v56 = vld [vmem:[%s2785_s7 + $0x78] sm:$0xf0]  ;;  %v2329_v58 = vld [vmem:[#allocation2 + $0x4] sm:$0xf0]  ;;  %v2394_v59 = vld [vmem:[%s2785_s7 + $0xf4] sm:$0xf]  ;;  %v2000_v4 = vor.u32 %v2348_v52, %v1997_v53 }
 0x118   : > { %978 = vmatpush.bf16.msra.mxu0 %v1948_v30  ;;  %v2189_v60 = vld [vmem:[%s2785_s7 + $0xf8] sm:$0xf0]  ;;  %v2328_v63 = vld [vmem:[#allocation2 + $0x4] sm:$0xf]  ;;  %v1917_v3 = vld [vmem:[#allocation2 + $0x8] sm:$0xf0]  ;;  %v2128_v6 = vor.u32 %v2378_v55, %v2125_v56  ;;  %v2958_v14 = vor.u32 %v2329_v58, %v1915_v54 }
 0x119   : > { %997 = vmatpush.bf16.msra.mxu1 %v2012_v31  ;;  %1016 = vmatpush.bf16.msra.mxu2 %v1952_v32  ;;  %v2123_v7 = vld [vmem:[%s2785_s7 + $0x70] sm:$0xf]  ;;  %v2379_v10 = vld [vmem:[%s2785_s7 + $0x74] sm:$0xf0]  ;;  %v2192_v15 = vor.u32 %v2394_v59, %v2189_v60  ;;  %v2376_v17 = vld [vmem:[%s2785_s7 + $0x64] sm:$0xf]  ;;  %v2963_v0 = vor.u32 %v2328_v63, %v1917_v3 }
 0x11a   : > { %1035 = vmatpush.bf16.msra.mxu3 %v2016_v36  ;;  %v2187_v13 = vld [vmem:[%s2785_s7 + $0xf0] sm:$0xf]  ;;  %v2395_v16 = vld [vmem:[%s2785_s7 + $0xf4] sm:$0xf0]  ;;  %v2117_v18 = vld [vmem:[%s2785_s7 + $0x68] sm:$0xf0]  ;;  %v2124_v2 = vor.u32 %v2379_v10, %v2123_v7 }
 0x11b   : > { %v2392_v19 = vld [vmem:[%s2785_s7 + $0xe4] sm:$0xf]  ;;  %v2181_v1 = vld [vmem:[%s2785_s7 + $0xe8] sm:$0xf0]  ;;  %v2188_v5 = vor.u32 %v2395_v16, %v2187_v13  ;;  %v2120_v20 = vor.u32 %v2376_v17, %v2117_v18  ;;  %v2115_v21 = vld [vmem:[%s2785_s7 + $0x60] sm:$0xf] }
 0x11c   : > { %979 = vmatpush.bf16.msra.mxu0 %v1940_v42  ;;  %v2377_v22 = vld [vmem:[%s2785_s7 + $0x64] sm:$0xf0]  ;;  %v2179_v23 = vld [vmem:[%s2785_s7 + $0xe0] sm:$0xf]  ;;  %v2184_v24 = vor.u32 %v2392_v19, %v2181_v1  ;;  %v2374_v26 = vld [vmem:[%s2785_s7 + $0x54] sm:$0xf] }
 0x11d   : > { %998 = vmatpush.bf16.msra.mxu1 %v2004_v45  ;;  %1017 = vmatpush.bf16.msra.mxu2 %v1944_v46  ;;  %v2393_v25 = vld [vmem:[%s2785_s7 + $0xe4] sm:$0xf0]  ;;  %v2109_v27 = vld [vmem:[%s2785_s7 + $0x58] sm:$0xf0]  ;;  %v2390_v28 = vld [vmem:[%s2785_s7 + $0xd4] sm:$0xf]  ;;  %v2116_v8 = vor.u32 %v2377_v22, %v2115_v21 }
 0x11e   : > { %1036 = vmatpush.bf16.msra.mxu3 %v2008_v50  ;;  %v2173_v29 = vld [vmem:[%s2785_s7 + $0xd8] sm:$0xf0]  ;;  %v2180_v9 = vor.u32 %v2393_v25, %v2179_v23  ;;  %v2112_v11 = vor.u32 %v2374_v26, %v2109_v27  ;;  %v2107_v12 = vld [vmem:[%s2785_s7 + $0x50] sm:$0xf]  ;;  %v2375_v30 = vld [vmem:[%s2785_s7 + $0x54] sm:$0xf0] }
 0x11f   : > { %v2171_v31 = vld [vmem:[%s2785_s7 + $0xd0] sm:$0xf]  ;;  %v2176_v32 = vor.u32 %v2390_v28, %v2173_v29  ;;  %v2391_v33 = vld [vmem:[%s2785_s7 + $0xd4] sm:$0xf0]  ;;  %v2372_v34 = vld [vmem:[%s2785_s7 + $0x44] sm:$0xf]  ;;  %v2108_v38 = vor.u32 %v2375_v30, %v2107_v12 }
 0x120   : > { %980 = vmatpush.bf16.msra.mxu0 %v1932_v57  ;;  %v2101_v35 = vld [vmem:[%s2785_s7 + $0x48] sm:$0xf0]  ;;  %v2388_v36 = vld [vmem:[%s2785_s7 + $0xc4] sm:$0xf]  ;;  %v2099_v39 = vld [vmem:[%s2785_s7 + $0x40] sm:$0xf]  ;;  %v2172_v40 = vor.u32 %v2391_v33, %v2171_v31 }
 0x121   : > { %999 = vmatpush.bf16.msra.mxu1 %v1996_v61  ;;  %1018 = vmatpush.bf16.msra.mxu2 %v1936_v62  ;;  %v2165_v37 = vld [vmem:[%s2785_s7 + $0xc8] sm:$0xf0]  ;;  %v2104_v41 = vor.u32 %v2372_v34, %v2101_v35  ;;  %v2373_v42 = vld [vmem:[%s2785_s7 + $0x44] sm:$0xf0]  ;;  %v2163_v43 = vld [vmem:[%s2785_s7 + $0xc0] sm:$0xf] }
 0x122   : > { %1037 = vmatpush.bf16.msra.mxu3 %v2000_v4  ;;  %v2389_v44 = vld [vmem:[%s2785_s7 + $0xc4] sm:$0xf0]  ;;  %v2168_v45 = vor.u32 %v2388_v36, %v2165_v37  ;;  %v1923_v46 = vld [vmem:[#allocation2 + $0x10] sm:$0xf]  ;;  %v2370_v47 = vld [vmem:[%s2785_s7 + $0x34] sm:$0xf]  ;;  %v2100_v52 = vor.u32 %v2373_v42, %v2099_v39 }
 0x123   : > { %981 = vmatmul.bf16.vlgmr.msra.gmra.mxu0 %v2958_v14  ;;  %v2093_v48 = vld [vmem:[%s2785_s7 + $0x38] sm:$0xf0]  ;;  %v2331_v49 = vld [vmem:[#allocation2 + $0x14] sm:$0xf0]  ;;  %v2386_v50 = vld [vmem:[%s2785_s7 + $0xb4] sm:$0xf]  ;;  %v2164_v55 = vor.u32 %v2389_v44, %v2163_v43 }
 0x124   : > { %1000 = vmatmul.bf16.vlgmr.msra.gmra.mxu1 %v2963_v0  ;;  %1019 = vmatmul.bf16.vlgmr.msra.gmra.mxu2 %v2958_v14  ;;  %v2157_v51 = vld [vmem:[%s2785_s7 + $0xb8] sm:$0xf0]  ;;  %v2330_v53 = vld [vmem:[#allocation2 + $0x14] sm:$0xf]  ;;  %v2096_v56 = vor.u32 %v2370_v47, %v2093_v48  ;;  %v2091_v57 = vld [vmem:[%s2785_s7 + $0x30] sm:$0xf]  ;;  %v2998_v60 = vor.u32 %v2331_v49, %v1923_v46 }
 0x125   : > { %1439 = vmatpush.bf16.msrb.mxu2 %v2128_v6  ;;  %1038 = vmatmul.bf16.vlgmr.msra.gmra.mxu3 %v2963_v0  ;;  %v1925_v54 = vld [vmem:[#allocation2 + $0x18] sm:$0xf0]  ;;  %v2371_v58 = vld [vmem:[%s2785_s7 + $0x34] sm:$0xf0]  ;;  %v2155_v59 = vld [vmem:[%s2785_s7 + $0xb0] sm:$0xf]  ;;  %v2160_v61 = vor.u32 %v2386_v50, %v2157_v51 }
 0x126   : > { %1458 = vmatpush.bf16.msrb.mxu3 %v2192_v15  ;;  %1401 = vmatpush.bf16.msrb.mxu0 %v2124_v2  ;;  %v2387_v62 = vld [vmem:[%s2785_s7 + $0xb4] sm:$0xf0]  ;;  %v2368_v63 = vld [vmem:[%s2785_s7 + $0x24] sm:$0xf]  ;;  %v2085_v3 = vld [vmem:[%s2785_s7 + $0x28] sm:$0xf0]  ;;  %v3003_v4 = vor.u32 %v2330_v53, %v1925_v54  ;;  %v2092_v10 = vor.u32 %v2371_v58, %v2091_v57 }
 0x127   : > { %1420 = vmatpush.bf16.msrb.mxu1 %v2188_v5  ;;  %v2384_v6 = vld [vmem:[%s2785_s7 + $0xa4] sm:$0xf]  ;;  %v2149_v7 = vld [vmem:[%s2785_s7 + $0xa8] sm:$0xf0]  ;;  %v2156_v13 = vor.u32 %v2387_v62, %v2155_v59  ;;  %v2088_v15 = vor.u32 %v2368_v63, %v2085_v3  ;;  %v2083_v16 = vld [vmem:[%s2785_s7 + $0x20] sm:$0xf] }
 0x128   : > { %v2369_v17 = vld [vmem:[%s2785_s7 + $0x24] sm:$0xf0]  ;;  %v2147_v18 = vld [vmem:[%s2785_s7 + $0xa0] sm:$0xf]  ;;  %v2152_v19 = vor.u32 %v2384_v6, %v2149_v7  ;;  %v2366_v2 = vld [vmem:[%s2785_s7 + $0x14] sm:$0xf] }
 0x129   : > { %1440 = vmatpush.bf16.msrb.mxu2 %v2120_v20  ;;  %v2385_v1 = vld [vmem:[%s2785_s7 + $0xa4] sm:$0xf0]  ;;  %v2077_v5 = vld [vmem:[%s2785_s7 + $0x18] sm:$0xf0]  ;;  %v2382_v20 = vld [vmem:[%s2785_s7 + $0x94] sm:$0xf]  ;;  %v2084_v22 = vor.u32 %v2369_v17, %v2083_v16 }
 0x12a   : > { %1459 = vmatpush.bf16.msrb.mxu3 %v2184_v24  ;;  %1402 = vmatpush.bf16.msrb.mxu0 %v2116_v8  ;;  %v2141_v21 = vld [vmem:[%s2785_s7 + $0x98] sm:$0xf0]  ;;  %v2148_v23 = vor.u32 %v2385_v1, %v2147_v18  ;;  %v2080_v24 = vor.u32 %v2366_v2, %v2077_v5  ;;  %v2075_v25 = vld [vmem:[%s2785_s7 + $0x10] sm:$0xf]  ;;  %v2367_v26 = vld [vmem:[%s2785_s7 + $0x14] sm:$0xf0] }
 0x12b   : > { %1421 = vmatpush.bf16.msrb.mxu1 %v2180_v9  ;;  %v2139_v27 = vld [vmem:[%s2785_s7 + $0x90] sm:$0xf]  ;;  %v2144_v28 = vor.u32 %v2382_v20, %v2141_v21  ;;  %v2383_v29 = vld [vmem:[%s2785_s7 + $0x94] sm:$0xf0]  ;;  %v2364_v8 = vld [vmem:[%s2785_s7 + $0x4] sm:$0xf]  ;;  %v2076_v30 = vor.u32 %v2367_v26, %v2075_v25 }
 0x12c   : > { %v2069_v9 = vld [vmem:[%s2785_s7 + $0x8] sm:$0xf0]  ;;  %v2140_v31 = vor.u32 %v2383_v29, %v2139_v27  ;;  %v2067_v33 = vld [vmem:[%s2785_s7] sm:$0xf]  ;;  %v2365_v34 = vld [vmem:[%s2785_s7 + $0x4] sm:$0xf0] }
 0x12d   : > { %1441 = vmatpush.bf16.msrb.mxu2 %v2112_v11  ;;  %v2380_v11 = vld [vmem:[%s2785_s7 + $0x84] sm:$0xf]  ;;  %v2133_v12 = vld [vmem:[%s2785_s7 + $0x88] sm:$0xf0]  ;;  %v2131_v36 = vld [vmem:[%s2785_s7 + $0x80] sm:$0xf] }
 0x12e   : > { %1460 = vmatpush.bf16.msrb.mxu3 %v2176_v32  ;;  %1403 = vmatpush.bf16.msrb.mxu0 %v2108_v38  ;;  %v2072_v32 = vor.u32 %v2364_v8, %v2069_v9  ;;  %v2136_v35 = vor.u32 %v2380_v11, %v2133_v12  ;;  %v2381_v37 = vld [vmem:[%s2785_s7 + $0x84] sm:$0xf0]  ;;  %v2068_v38 = vor.u32 %v2365_v34, %v2067_v33  ;;  %v2253_v43 = vld [vmem:[%s2781_s30 + $0x78] sm:$0xf0]  ;;  %v2408_v46 = vld [vmem:[%s2781_s30 + $0x64] sm:$0xf] }
 0x12f   : > { %1422 = vmatpush.bf16.msrb.mxu1 %v2172_v40  ;;  %v2132_v39 = vor.u32 %v2381_v37, %v2131_v36  ;;  %v2251_v40 = vld [vmem:[%s2781_s30 + $0x70] sm:$0xf]  ;;  %v2245_v48 = vld [vmem:[%s2781_s30 + $0x68] sm:$0xf0]  ;;  %v2426_v50 = vld [vmem:[%s2781_s30 + $0xf4] sm:$0xf] }
 0x130   : > { %v2248_v49 = vor.u32 %v2408_v46, %v2245_v48  ;;  %v2317_v51 = vld [vmem:[%s2781_s30 + $0xf8] sm:$0xf0]  ;;  %v2427_v54 = vld [vmem:[%s2781_s30 + $0xf4] sm:$0xf0]  ;;  %v2406_v58 = vld [vmem:[%s2781_s30 + $0x54] sm:$0xf] }
 0x131   : > { %1442 = vmatpush.bf16.msrb.mxu2 %v2104_v41  ;;  %v2410_v41 = vld [vmem:[%s2781_s30 + $0x74] sm:$0xf]  ;;  %v2320_v53 = vor.u32 %v2426_v50, %v2317_v51  ;;  %v2407_v57 = vld [vmem:[%s2781_s30 + $0x54] sm:$0xf0]  ;;  %v2424_v62 = vld [vmem:[%s2781_s30 + $0xe4] sm:$0xf] }
 0x132   : > { %1461 = vmatpush.bf16.msrb.mxu3 %v2168_v45  ;;  %1404 = vmatpush.bf16.msrb.mxu0 %v2100_v52  ;;  %v2256_v44 = vor.u32 %v2410_v41, %v2253_v43  ;;  %v2409_v45 = vld [vmem:[%s2781_s30 + $0x64] sm:$0xf0]  ;;  %v2315_v52 = vld [vmem:[%s2781_s30 + $0xf0] sm:$0xf]  ;;  %v2309_v63 = vld [vmem:[%s2781_s30 + $0xe8] sm:$0xf0] }
 0x133   : > { %1423 = vmatpush.bf16.msrb.mxu1 %v2164_v55  ;;  %986 = vmatmul.bf16.gmra.mxu0 %v2998_v60  ;;  %v2316_v55 = vor.u32 %v2427_v54, %v2315_v52  ;;  %v2307_v3 = vld [vmem:[%s2781_s30 + $0xe0] sm:$0xf]  ;;  %v2425_v6 = vld [vmem:[%s2781_s30 + $0xe4] sm:$0xf0]  ;;  %v2229_v18 = vld [vmem:[%s2781_s30 + $0x48] sm:$0xf0] }
 0x134   : > { %1005 = vmatmul.bf16.gmra.mxu1 %v3003_v4  ;;  %1024 = vmatmul.bf16.gmra.mxu2 %v2998_v60  ;;  %v2308_v7 = vor.u32 %v2425_v6, %v2307_v3  ;;  %v2422_v2 = vld [vmem:[%s2781_s30 + $0xd4] sm:$0xf]  ;;  %v2301_v5 = vld [vmem:[%s2781_s30 + $0xd8] sm:$0xf0]  ;;  %v2219_v26 = vld [vmem:[%s2781_s30 + $0x30] sm:$0xf] }
 0x135   : > { %1443 = vmatpush.bf16.msrb.mxu2 %v2096_v56  ;;  %1043 = vmatmul.bf16.gmra.mxu3 %v3003_v4  ;;  %v2235_v56 = vld [vmem:[%s2781_s30 + $0x50] sm:$0xf]  ;;  %v2304_v21 = vor.u32 %v2422_v2, %v2301_v5  ;;  %v2403_v27 = vld [vmem:[%s2781_s30 + $0x34] sm:$0xf0]  ;;  %v2221_v9 = vld [vmem:[%s2781_s30 + $0x38] sm:$0xf0] }
 0x136   : > { %1462 = vmatpush.bf16.msrb.mxu3 %v2160_v61  ;;  %1405 = vmatpush.bf16.msrb.mxu0 %v2092_v10  ;;  %v2236_v59 = vor.u32 %v2407_v57, %v2235_v56  ;;  %v2227_v10 = vld [vmem:[%s2781_s30 + $0x40] sm:$0xf]  ;;  %v2220_v8 = vor.u32 %v2403_v27, %v2219_v26  ;;  %v2421_v37 = vld [vmem:[%s2781_s30 + $0xc4] sm:$0xf0]  ;;  %v2400_v41 = vld [vmem:[%s2781_s30 + $0x24] sm:$0xf] }
 0x137   : > { %1424 = vmatpush.bf16.msrb.mxu1 %v2156_v13  ;;  %v2405_v13 = vld [vmem:[%s2781_s30 + $0x44] sm:$0xf0]  ;;  %v2291_v33 = vld [vmem:[%s2781_s30 + $0xc0] sm:$0xf]  ;;  %v2285_v48 = vld [vmem:[%s2781_s30 + $0xb8] sm:$0xf0] }
 0x138   : > { %v2228_v17 = vor.u32 %v2405_v13, %v2227_v10  ;;  %v2283_v51 = vld [vmem:[%s2781_s30 + $0xb0] sm:$0xf]  ;;  %v2419_v52 = vld [vmem:[%s2781_s30 + $0xb4] sm:$0xf0]  ;;  %v2398_v56 = vld [vmem:[%s2781_s30 + $0x14] sm:$0xf] }
 0x139   : > { %1444 = vmatpush.bf16.msrb.mxu2 %v2088_v15  ;;  %v2404_v15 = vld [vmem:[%s2781_s30 + $0x44] sm:$0xf]  ;;  %v2203_v54 = vld [vmem:[%s2781_s30 + $0x10] sm:$0xf]  ;;  %v2277_v3 = vld [vmem:[%s2781_s30 + $0xa8] sm:$0xf0] }
 0x13a   : > { %1463 = vmatpush.bf16.msrb.mxu3 %v2152_v19  ;;  %1406 = vmatpush.bf16.msrb.mxu0 %v2084_v22  ;;  %v2232_v1 = vor.u32 %v2404_v15, %v2229_v18  ;;  %v2299_v22 = vld [vmem:[%s2781_s30 + $0xd0] sm:$0xf]  ;;  %v2417_v13 = vld [vmem:[%s2781_s30 + $0xa4] sm:$0xf0] }
 0x13b   : > { %1425 = vmatpush.bf16.msrb.mxu1 %v2148_v23  ;;  %v2423_v23 = vld [vmem:[%s2781_s30 + $0xd4] sm:$0xf0]  ;;  %v2397_v18 = vld [vmem:[%s2781_s30 + $0x4] sm:$0xf0] }
 0x13d   : > { %1445 = vmatpush.bf16.msrb.mxu2 %v2080_v24  ;;  %v2300_v24 = vor.u32 %v2423_v23, %v2299_v22 }
 0x13e   : > { %1464 = vmatpush.bf16.msrb.mxu3 %v2144_v28  ;;  %1407 = vmatpush.bf16.msrb.mxu0 %v2076_v30  ;;  %v2402_v28 = vld [vmem:[%s2781_s30 + $0x34] sm:$0xf] }
 0x13f   : > { %1426 = vmatpush.bf16.msrb.mxu1 %v2140_v31  ;;  %v2224_v30 = vor.u32 %v2402_v28, %v2221_v9  ;;  %v2420_v31 = vld [vmem:[%s2781_s30 + $0xc4] sm:$0xf]  ;;  %v2414_v28 = vld [vmem:[%s2781_s30 + $0x94] sm:$0xf] }
 0x141   : > { %1446 = vmatpush.bf16.msrb.mxu2 %v2072_v32  ;;  %v2293_v32 = vld [vmem:[%s2781_s30 + $0xc8] sm:$0xf0] }
 0x142   : > { %1465 = vmatpush.bf16.msrb.mxu3 %v2136_v35  ;;  %1408 = vmatpush.bf16.msrb.mxu0 %v2068_v38  ;;  %v2296_v36 = vor.u32 %v2420_v31, %v2293_v32  ;;  %v2415_v31 = vld [vmem:[%s2781_s30 + $0x94] sm:$0xf0]  ;;  %v2412_v32 = vld [vmem:[%s2781_s30 + $0x84] sm:$0xf] }
 0x143   : > { %1427 = vmatpush.bf16.msrb.mxu1 %v2132_v39  ;;  %v2292_v39 = vor.u32 %v2421_v37, %v2291_v33  ;;  %v2261_v37 = vld [vmem:[%s2781_s30 + $0x88] sm:$0xf0] }
 0x144   : > { %1447 = vmatmul.bf16.vlgmr.msrb.gmra.mxu2 %v2958_v14 }
 0x145   : > { %1409 = vmatmul.bf16.vlgmr.msrb.gmra.mxu0 %v2958_v14  ;;  %1466 = vmatmul.bf16.vlgmr.msrb.gmra.mxu3 %v2963_v0  ;;  %v2411_v14 = vld [vmem:[%s2781_s30 + $0x74] sm:$0xf0] }
 0x146   : > { %1428 = vmatmul.bf16.vlgmr.msrb.gmra.mxu1 %v2963_v0  ;;  %v2252_v42 = vor.u32 %v2411_v14, %v2251_v40  ;;  %1727 = vmatpush.bf16.msra.mxu2 %v2256_v44  ;;  %v2243_v0 = vld [vmem:[%s2781_s30 + $0x60] sm:$0xf]  ;;  %v2401_v14 = vld [vmem:[%s2781_s30 + $0x24] sm:$0xf0]  ;;  %v2213_v44 = vld [vmem:[%s2781_s30 + $0x28] sm:$0xf0] }
 0x147   : > { %v2244_v47 = vor.u32 %v2409_v45, %v2243_v0  ;;  %1746 = vmatpush.bf16.msra.mxu3 %v2320_v53  ;;  %1708 = vmatpush.bf16.msra.mxu1 %v2316_v55  ;;  %v2211_v40 = vld [vmem:[%s2781_s30 + $0x20] sm:$0xf]  ;;  %v2216_v46 = vor.u32 %v2400_v41, %v2213_v44  ;;  %v2284_v53 = vor.u32 %v2419_v52, %v2283_v51  ;;  %v2399_v55 = vld [vmem:[%s2781_s30 + $0x14] sm:$0xf0] }
 0x148   : > { %1689 = vmatpush.bf16.msra.mxu0 %v2252_v42  ;;  %v2212_v43 = vor.u32 %v2401_v14, %v2211_v40  ;;  %v2259_v40 = vld [vmem:[%s2781_s30 + $0x80] sm:$0xf]  ;;  %v2413_v14 = vld [vmem:[%s2781_s30 + $0x84] sm:$0xf0]  ;;  %v2264_v44 = vor.u32 %v2412_v32, %v2261_v37 }
 0x149   : > { %v2260_v51 = vor.u32 %v2413_v14, %v2259_v40 }
 0x14a   : > { %1728 = vmatpush.bf16.msra.mxu2 %v2248_v49 }
 0x14b   : > { %1709 = vmatpush.bf16.msra.mxu1 %v2308_v7 }
 0x14c   : > { %1690 = vmatpush.bf16.msra.mxu0 %v2244_v47  ;;  %v2418_v47 = vld [vmem:[%s2781_s30 + $0xb4] sm:$0xf] }
 0x14d   : > { %v2288_v50 = vor.u32 %v2418_v47, %v2285_v48 }
 0x14f   : > { %1710 = vmatpush.bf16.msra.mxu1 %v2300_v24 }
 0x150   : > { %1691 = vmatpush.bf16.msra.mxu0 %v2236_v59 }
 0x153   : > { %1711 = vmatpush.bf16.msra.mxu1 %v2292_v39 }
 0x154   : > { %1452 = vmatmul.bf16.gmra.mxu2 %v2998_v60  ;;  %1692 = vmatpush.bf16.msra.mxu0 %v2228_v17  ;;  %v2195_v17 = vld [vmem:[%s2781_s30] sm:$0xf] }
 0x155   : > { %1414 = vmatmul.bf16.gmra.mxu0 %v2998_v60  ;;  %1471 = vmatmul.bf16.gmra.mxu3 %v3003_v4  ;;  %v2237_v60 = vld [vmem:[%s2781_s30 + $0x58] sm:$0xf0]  ;;  %v2196_v5 = vor.u32 %v2397_v18, %v2195_v17 }
 0x156   : > { %1433 = vmatmul.bf16.gmra.mxu1 %v3003_v4  ;;  %v2240_v61 = vor.u32 %v2406_v58, %v2237_v60  ;;  %v2312_v4 = vor.u32 %v2424_v62, %v2309_v63  ;;  %v2205_v58 = vld [vmem:[%s2781_s30 + $0x18] sm:$0xf0]  ;;  %v2416_v63 = vld [vmem:[%s2781_s30 + $0xa4] sm:$0xf] }
 0x157   : > { %1712 = vmatpush.bf16.msra.mxu1 %v2284_v53  ;;  %v2208_v62 = vor.u32 %v2398_v56, %v2205_v58  ;;  %v2280_v10 = vor.u32 %v2416_v63, %v2277_v3 }
 0x158   : > { %1729 = vmatpush.bf16.msra.mxu2 %v2240_v61  ;;  %1747 = vmatpush.bf16.msra.mxu3 %v2312_v4  ;;  %v2204_v61 = vor.u32 %v2399_v55, %v2203_v54  ;;  %v2275_v4 = vld [vmem:[%s2781_s30 + $0xa0] sm:$0xf] }
 0x159   : > { %1693 = vmatpush.bf16.msra.mxu0 %v2220_v8 }
 0x15c   : > { %1730 = vmatpush.bf16.msra.mxu2 %v2232_v1  ;;  %1748 = vmatpush.bf16.msra.mxu3 %v2304_v21  ;;  %v2197_v21 = vld [vmem:[%s2781_s30 + $0x8] sm:$0xf0] }
 0x15d   : > { %1694 = vmatpush.bf16.msra.mxu0 %v2212_v43 }
 0x160   : > { %1731 = vmatpush.bf16.msra.mxu2 %v2224_v30  ;;  %1749 = vmatpush.bf16.msra.mxu3 %v2296_v36  ;;  %v2267_v30 = vld [vmem:[%s2781_s30 + $0x90] sm:$0xf] }
 0x161   : > { %1695 = vmatpush.bf16.msra.mxu0 %v2204_v61  ;;  %v2268_v43 = vor.u32 %v2415_v31, %v2267_v30 }
 0x164   : > { %1732 = vmatpush.bf16.msra.mxu2 %v2216_v46  ;;  %1750 = vmatpush.bf16.msra.mxu3 %v2288_v50 }
 0x165   : > { %1696 = vmatpush.bf16.msra.mxu0 %v2196_v5 }
 0x168   : > { %1733 = vmatpush.bf16.msra.mxu2 %v2208_v62  ;;  %1751 = vmatpush.bf16.msra.mxu3 %v2280_v10 }
 0x1a0   : > { %v982_v16 = vpop.f32.mrf.mxu0 }
 0x1a1   : > { %v1001_v19 = vpop.f32.mrf.mxu1 }
 0x1a2   : > { %v3065_v20 = vadd.f32 %v1001_v19, %v982_v16  ;;  %v2276_v16 = vor.u32 %v2417_v13, %v2275_v4  ;;  %v2396_v19 = vld [vmem:[%s2781_s30 + $0x4] sm:$0xf] }
 0x1a4   : > { %v2057_v25 = vmul.f32 -1.442695, %v3065_v20  ;;  %1713 = vmatpush.bf16.msra.mxu1 %v2276_v16 }
 0x1a6   : > { %2479 = vpow2.f32 %v2057_v25  ;;  %v2200_v25 = vor.u32 %v2396_v19, %v2197_v21 }
 0x1a7   : > { %v1020_v29 = vpop.f32.mrf.mxu2 }
 0x1a8   : > { %v1039_v11 = vpop.f32.mrf.mxu3  ;;  %v984_v12 = vpop.f32.mrf.mxu0  ;;  %1734 = vmatpush.bf16.msra.mxu2 %v2200_v25  ;;  %1714 = vmatpush.bf16.msra.mxu1 %v2268_v43 }
 0x1a9   : > { %v3077_v34 = vadd.f32 %v1039_v11, %v1020_v29  ;;  %v1003_v35 = vpop.f32.mrf.mxu1  ;;  %v2269_v29 = vld [vmem:[%s2781_s30 + $0x98] sm:$0xf0] }
 0x1aa   : > { %v3080_v38 = vadd.f32 %v1003_v35, %v984_v12  ;;  %v2272_v36 = vor.u32 %v2414_v28, %v2269_v29 }
 0x1ab   : > { %v2058_v42 = vmul.f32 -1.442695, %v3077_v34 }
 0x1ac   : > { %v2480_v0 = vpop.eup %2479  ;;  %v2059_v45 = vmul.f32 -1.442695, %v3080_v38  ;;  %1752 = vmatpush.bf16.msra.mxu3 %v2272_v36  ;;  %1715 = vmatpush.bf16.msra.mxu1 %v2260_v51 }
 0x1ad   : > { %v3090_v49 = vadd.f32 1.0, %v2480_v0  ;;  %2481 = vpow2.f32 %v2058_v42 }
 0x1ae   : > { %2483 = vpow2.f32 %v2059_v45 }
 0x1af   : > { %2485 = vrcp.f32 %v3090_v49  ;;  %v1022_v57 = vpop.f32.mrf.mxu2  ;;  %v1092_v63 = vand.u32 2147483648, %v3090_v49  ;;  %vm1086_vm13 = vweird.f32 %v3090_v49 }
 0x1b0   : > { %v1041_v59 = vpop.f32.mrf.mxu3  ;;  %v987_v60 = vpop.f32.mrf.mxu0  ;;  %1753 = vmatpush.bf16.msra.mxu3 %v2264_v44 }
 0x1b1   : > { %v3102_v6 = vadd.f32 %v1041_v59, %v1022_v57  ;;  %v1006_v7 = vpop.f32.mrf.mxu1  ;;  %v1090_v59 = vand.u32 2147483647, %v3090_v49  ;;  %v1093_v21 = vor.u32 1.1754944e-38, %v1092_v63 }
 0x1b2   : > { %v3105_v15 = vadd.f32 %v1006_v7, %v987_v60 }
 0x1b3   : > { %v2482_v1 = vpop.eup %2481  ;;  %v2060_v2 = vmul.f32 -1.442695, %v3102_v6  ;;  %vm3169_vm0 = vcmp.eq.f32.partialorder %v1090_v59, 8.507059e+37 }
 0x1b4   : > { %v2484_v22 = vpop.eup %2483  ;;  %v3112_v23 = vadd.f32 1.0, %v2482_v1  ;;  %v2061_v24 = vmul.f32 -1.442695, %v3105_v15 }
 0x1b5   : > { %v3115_v26 = vpop.eup %2485  ;;  %v3117_v27 = vadd.f32 1.0, %v2484_v22  ;;  %2487 = vpow2.f32 %v2060_v2 }
 0x1b6   : > { %2489 = vrcp.f32 %v3112_v23  ;;  %v1082_v9 = vmul.f32 %v3115_v26, %v3090_v49  ;;  %vm1087_vm14 = vweird.f32 %v3115_v26  ;;  %vm1101_vm3 = vweird.f32 %v3112_v23 }
 0x1b7   : > { %2491 = vrcp.f32 %v3117_v27  ;;  %v1025_v8 = vpop.f32.mrf.mxu2  ;;  %v1122_v10 = vand.u32 2147483648, %v3117_v27  ;;  %vm3177_vm1 = vmor %vm1086_vm13, %vm1087_vm14  ;;  %vm1116_vm2 = vweird.f32 %v3117_v27  ;;  %v1120_v22 = vand.u32 2147483647, %v3117_v27 }
 0x1b8   : > { %2493 = vpow2.f32 %v2061_v24  ;;  %v1044_v11 = vpop.f32.mrf.mxu3  ;;  %v989_v12 = vpop.f32.mrf.mxu0  ;;  %v1083_v45 = vsub.f32 1.0, %v1082_v9  ;;  %v1105_v25 = vand.u32 2147483647, %v3112_v23 }
 0x1b9   : > { %v3128_v33 = vadd.f32 %v1044_v11, %v1025_v8  ;;  %v1008_v35 = vpop.f32.mrf.mxu1  ;;  %v1123_v29 = vor.u32 1.1754944e-38, %v1122_v10  ;;  %vm1121_vm6 = vcmp.eq.f32.partialorder %v1120_v22, 8.507059e+37 }
 0x1ba   : > { %v3131_v39 = vadd.f32 %v1008_v35, %v989_v12  ;;  %v1084_v55 = vmul.f32 %v3115_v26, %v1083_v45  ;;  %vm1106_vm11 = vcmp.eq.f32.partialorder %v1105_v25, 8.507059e+37 }
 0x1bb   : > { %v2488_v41 = vpop.eup %2487  ;;  %v2062_v42 = vmul.f32 -1.442695, %v3128_v33 }
 0x1bc   : > { %v3136_v0 = vpop.eup %2489  ;;  %v3138_v46 = vadd.f32 1.0, %v2488_v41  ;;  %v2063_v50 = vmul.f32 -1.442695, %v3131_v39  ;;  %v1085_v16 = vadd.f32 %v3115_v26, %v1084_v55 }
 0x1bd   : > { %v3140_v47 = vpop.eup %2491  ;;  %v1097_v48 = vmul.f32 %v3136_v0, %v3112_v23  ;;  %2495 = vpow2.f32 %v2062_v42  ;;  %vm1102_vm5 = vweird.f32 %v3136_v0 }
 0x1be   : > { %v2494_v52 = vpop.eup %2493  ;;  %v1112_v53 = vmul.f32 %v3140_v47, %v3117_v27  ;;  %2497 = vrcp.f32 %v3138_v46  ;;  %vm1117_vm15 = vweird.f32 %v3140_v47  ;;  %v1089_v27 = vsel %vm3177_vm1, %v3115_v26, %v1085_v16  ;;  %vm3219_vm8 = vmor %vm1101_vm3, %vm1102_vm5 }
 0x1bf   : > { %v1027_v54 = vpop.f32.mrf.mxu2  ;;  %v3149_v57 = vadd.f32 1.0, %v2494_v52  ;;  %v1098_v60 = vsub.f32 1.0, %v1097_v48  ;;  %2499 = vpow2.f32 %v2063_v50  ;;  %vm3186_vm4 = vmor %vm1116_vm2, %vm1117_vm15  ;;  %v1107_v26 = vand.u32 2147483648, %v3112_v23 }
 0x1c0   : > { %v1113_v56 = vsub.f32 1.0, %v1112_v53  ;;  %v1046_v58 = vpop.f32.mrf.mxu3  ;;  %v1135_v42 = vand.u32 2147483647, %v3138_v46  ;;  %v1137_v43 = vand.u32 2147483648, %v3138_v46  ;;  %v1094_v45 = vsel %vm3169_vm0, %v1093_v21, %v1089_v27 }
 0x1c1   : > { %v3152_v61 = vadd.f32 %v1046_v58, %v1027_v54  ;;  %2501 = vrcp.f32 %v3149_v57  ;;  %v1099_v49 = vmul.f32 %v3136_v0, %v1098_v60  ;;  %vm1131_vm9 = vweird.f32 %v3138_v46 }
 0x1c2   : > { %v3154_v62 = vpop.f32.mrf.mxu0  ;;  %v1114_v3 = vmul.f32 %v3140_v47, %v1113_v56  ;;  %v1108_v23 = vor.u32 1.1754944e-38, %v1107_v26  ;;  %v1201_v58 = vmul.f32 %v1094_v45, %v3065_v20  ;;  %vm1136_vm12 = vcmp.eq.f32.partialorder %v1135_v42, 8.507059e+37 }
 0x1c3   : > { %v1429_v4 = vpop.f32.mrf.mxu1  ;;  %v2496_v7 = vpop.eup %2495  ;;  %v2064_v2 = vmul.f32 -1.442695, %v3152_v61  ;;  %v1100_v32 = vadd.f32 %v3136_v0, %v1099_v49  ;;  %vm1146_vm13 = vweird.f32 %v3149_v57  ;;  %v1152_v20 = vand.u32 2147483648, %v3149_v57 }
 0x1c4   : > { %v3162_v13 = vpop.eup %2497  ;;  %v1115_v17 = vadd.f32 %v3140_v47, %v1114_v3  ;;  %v3167_v18 = vadd.f32 1.0, %v2496_v7  ;;  %v1430_v55 = vadd.f32 %v1429_v4, %v3154_v62 }
 0x1c5   : > { %v1127_v1 = vmul.f32 %v3162_v13, %v3138_v46  ;;  %v2500_v24 = vpop.eup %2499  ;;  %vm1132_vm7 = vweird.f32 %v3162_v13  ;;  %v1104_v51 = vsel %vm3219_vm8, %v3136_v0, %v1100_v32  ;;  %v1138_v0 = vor.u32 1.1754944e-38, %v1137_v43 }
 0x1c6   : > { %2503 = vrcp.f32 %v3167_v18  ;;  %v1119_v12 = vsel %vm3186_vm4, %v3140_v47, %v1115_v17  ;;  %v3199_v30 = vadd.f32 1.0, %v2500_v24  ;;  %vm3227_vm10 = vmor %vm1131_vm9, %vm1132_vm7  ;;  %v1109_v63 = vsel %vm1106_vm11, %v1108_v23, %v1104_v51 }
 0x1c7   : > { %v1128_v8 = vsub.f32 1.0, %v1127_v1  ;;  %v1448_v9 = vpop.f32.mrf.mxu2  ;;  %v3190_v11 = vpop.eup %2501  ;;  %2505 = vpow2.f32 %v2064_v2  ;;  %v1124_v14 = vsel %vm1121_vm6, %v1123_v29, %v1119_v12  ;;  %v1477_v17 = vmul.f32 %v1430_v55, %v1201_v58 }
 0x1c8   : > { %v1467_v31 = vpop.f32.mrf.mxu3  ;;  %v1142_v36 = vmul.f32 %v3190_v11, %v3149_v57  ;;  %2507 = vrcp.f32 %v3199_v30  ;;  %v1203_v54 = vmul.f32 %v1124_v14, %v3080_v38  ;;  %v1202_v1 = vmul.f32 %v1109_v63, %v3077_v34 }
 0x1c9   : > { %v1129_v35 = vmul.f32 %v3162_v13, %v1128_v8  ;;  %v1468_v19 = vadd.f32 %v1467_v31, %v1448_v9  ;;  %vm1147_vm14 = vweird.f32 %v3190_v11  ;;  %v1182_v5 = vand.u32 2147483648, %v3199_v30 }
 0x1ca   : > { %v1412_v37 = vpop.f32.mrf.mxu0  ;;  %v1143_v48 = vsub.f32 1.0, %v1142_v36  ;;  %v1180_v8 = vand.u32 2147483647, %v3199_v30  ;;  %v1150_v9 = vand.u32 2147483647, %v3149_v57  ;;  %vm3258_vm0 = vmor %vm1146_vm13, %vm1147_vm14  ;;  %v1153_v12 = vor.u32 1.1754944e-38, %v1152_v20 }
 0x1cb   : > { %v1431_v40 = vpop.f32.mrf.mxu1  ;;  %v1130_v41 = vadd.f32 %v3162_v13, %v1129_v35  ;;  %v1478_v34 = vmul.f32 %v1468_v19, %v1202_v1  ;;  %vm1176_vm1 = vweird.f32 %v3199_v30  ;;  %vm1161_vm6 = vweird.f32 %v3167_v18  ;;  %v1485_v19 = vld [vmem:[%s3357_s5] sm:$0xff] }
 0x1cc   : > { %v3211_v44 = vpop.eup %2503  ;;  %v1432_v50 = vadd.f32 %v1431_v40, %v1412_v37  ;;  %v1144_v3 = vmul.f32 %v3190_v11, %v1143_v48  ;;  %v1183_v37 = vor.u32 1.1754944e-38, %v1182_v5  ;;  %vm1181_vm4 = vcmp.eq.f32.partialorder %v1180_v8, 8.507059e+37 }
 0x1cd   : > { %v1157_v53 = vmul.f32 %v3211_v44, %v3167_v18  ;;  %v1134_v46 = vsel %vm3227_vm10, %v3162_v13, %v1130_v41  ;;  %v2506_v56 = vpop.eup %2505  ;;  %vm1162_vm2 = vweird.f32 %v3211_v44  ;;  %vm1151_vm5 = vcmp.eq.f32.partialorder %v1150_v9, 8.507059e+37 }
 0x1ce   : > { %v2508_v60 = vpop.eup %2507  ;;  %v3240_v7 = vadd.f32 1.0, %v2506_v56  ;;  %v1479_v38 = vmul.f32 %v1432_v50, %v1203_v54  ;;  %v1139_v16 = vsel %vm1136_vm12, %v1138_v0, %v1134_v46  ;;  %v1145_v22 = vadd.f32 %v3190_v11, %v1144_v3  ;;  %vm3275_vm7 = vmor %vm1161_vm6, %vm1162_vm2 }
 0x1cf   : > { %v1450_v59 = vpop.f32.mrf.mxu2  ;;  %v1158_v13 = vsub.f32 1.0, %v1157_v53  ;;  %v1172_v62 = vmul.f32 %v2508_v60, %v3199_v30  ;;  %v1204_v21 = vmul.f32 %v1139_v16, %v3102_v6  ;;  %vm1177_vm15 = vweird.f32 %v2508_v60 }
 0x1d0   : > { %v1469_v10 = vpop.f32.mrf.mxu3  ;;  %2509 = vrcp.f32 %v3240_v7  ;;  %v1493_v24 = vpack.c.bf16 %v1479_v38, %v1477_v17  ;;  %v1149_v36 = vsel %vm3258_vm0, %v3190_v11, %v1145_v22  ;;  %vm1178_vm3 = vmor %vm1176_vm1, %vm1177_vm15  ;;  %v1167_v42 = vand.u32 2147483648, %v3167_v18 }
 0x1d1   : > { %v1173_v2 = vsub.f32 1.0, %v1172_v62  ;;  %v1470_v25 = vadd.f32 %v1469_v10, %v1450_v59  ;;  %v1159_v28 = vmul.f32 %v3211_v44, %v1158_v13  ;;  %v1154_v45 = vsel %vm1151_vm5, %v1153_v12, %v1149_v36 }
 0x1d2   : > { %v1415_v4 = vpop.f32.mrf.mxu0  ;;  %1697 = vmatmul.bf16.vlgmr.msra.gmra.mxu0 %v1493_v24  ;;  %1735 = vmatmul.bf16.vlgmr.msra.gmra.mxu2 %v1493_v24  ;;  %v1165_v47 = vand.u32 2147483647, %v3167_v18  ;;  %v1197_v53 = vand.u32 2147483648, %v3240_v7  ;;  %v1195_v18 = vand.u32 2147483647, %v3240_v7  ;;  %v1205_v55 = vmul.f32 %v1154_v45, %v3105_v15  ;;  %v1487_v24 = vld [vmem:[%s3357_s5 + $0x10] sm:$0xff] }
 0x1d3   : > { %v1434_v49 = vpop.f32.mrf.mxu1  ;;  %v1174_v29 = vmul.f32 %v2508_v60, %v1173_v2  ;;  %v1480_v27 = vmul.f32 %v1470_v25, %v1204_v21  ;;  %v1160_v40 = vadd.f32 %v3211_v44, %v1159_v28  ;;  %v1168_v56 = vor.u32 1.1754944e-38, %v1167_v42 }
 0x1d4   : > { %v1435_v23 = vadd.f32 %v1434_v49, %v1415_v4  ;;  %vm1166_vm9 = vcmp.eq.f32.partialorder %v1165_v47, 8.507059e+37  ;;  %vm1191_vm10 = vweird.f32 %v3240_v7  ;;  %vm1196_vm12 = vcmp.eq.f32.partialorder %v1195_v18, 8.507059e+37 }
 0x1d5   : > { %v1175_v31 = vadd.f32 %v2508_v60, %v1174_v29  ;;  %v1494_v57 = vpack.c.bf16 %v1480_v27, %v1478_v34  ;;  %v1164_v54 = vsel %vm3275_vm7, %v3211_v44, %v1160_v40  ;;  %v1488_v27 = vld [vmem:[%s3357_s5 + $0x18] sm:$0xff] }
 0x1d6   : > { %v2510_v35 = vpop.eup %2509  ;;  %v1169_v59 = vsel %vm1166_vm9, %v1168_v56, %v1164_v54  ;;  %v1481_v63 = vmul.f32 %v1435_v23, %v1205_v55 }
 0x1d7   : > { %v1453_v32 = vpop.f32.mrf.mxu2  ;;  %v1179_v14 = vsel %vm1178_vm3, %v2508_v60, %v1175_v31  ;;  %v1187_v41 = vmul.f32 %v2510_v35, %v3240_v7  ;;  %1716 = vmatmul.bf16.vlgmr.msra.gmra.mxu1 %v1494_v57  ;;  %1754 = vmatmul.bf16.vlgmr.msra.gmra.mxu3 %v1494_v57  ;;  %vm1192_vm8 = vweird.f32 %v2510_v35  ;;  %v1198_v60 = vor.u32 1.1754944e-38, %v1197_v53  ;;  %v1489_v31 = vld [vmem:[%s3357_s5 + $0x20] sm:$0xff] }
 0x1d8   : > { %v1472_v26 = vpop.f32.mrf.mxu3  ;;  %v1184_v11 = vsel %vm1181_vm4, %v1183_v37, %v1179_v14  ;;  %vm1193_vm11 = vmor %vm1191_vm10, %vm1192_vm8  ;;  %v1206_v15 = vmul.f32 %v1169_v59, %v3128_v33  ;;  %v1486_v33 = vld [vmem:[%s3357_s5 + $0x8] sm:$0xff] }
 0x1d9   : > { %v1188_v48 = vsub.f32 1.0, %v1187_v41  ;;  %v1207_v52 = vmul.f32 %v1184_v11, %v3131_v39  ;;  %v1473_v44 = vadd.f32 %v1472_v26, %v1453_v32  ;;  %v1490_v26 = vld [vmem:[%s3357_s5 + $0x28] sm:$0xff] }
 0x1da   : > { %v1417_v30 = vpop.f32.mrf.mxu0 }
 0x1db   : > { %v1436_v43 = vpop.f32.mrf.mxu1  ;;  %v1189_v46 = vmul.f32 %v2510_v35, %v1188_v48  ;;  %v1482_v4 = vmul.f32 %v1473_v44, %v1206_v15  ;;  %v1492_v48 = vld [vmem:[%s3357_s5 + $0x38] sm:$0xff] }
 0x1dc   : > { %v1437_v50 = vadd.f32 %v1436_v43, %v1417_v30  ;;  %v1491_v30 = vld [vmem:[%s3357_s5 + $0x30] sm:$0xff] }
 0x1dd   : > { %v1190_v0 = vadd.f32 %v2510_v35, %v1189_v46 }
 0x1de   : > { %v1483_v58 = vmul.f32 %v1437_v50, %v1207_v52 }
 0x1df   : > { %v1455_v39 = vpop.f32.mrf.mxu2  ;;  %v1194_v38 = vsel %vm1193_vm11, %v2510_v35, %v1190_v0 }
 0x1e0   : > { %v1474_v3 = vpop.f32.mrf.mxu3  ;;  %v1199_v16 = vsel %vm1196_vm12, %v1198_v60, %v1194_v38  ;;  %v1495_v13 = vpack.c.bf16 %v1483_v58, %v1481_v63 }
 0x1e1   : > { %v1475_v10 = vadd.f32 %v1474_v3, %v1455_v39  ;;  %v1208_v62 = vmul.f32 %v1199_v16, %v3152_v61 }
 0x1e2   : > { %1702 = vmatmul.bf16.gmra.mxu0 %v1495_v13  ;;  %1740 = vmatmul.bf16.gmra.mxu2 %v1495_v13 }
 0x1e3   : > { %v1484_v20 = vmul.f32 %v1475_v10, %v1208_v62 }
 0x1e5   : > { %v1496_v7 = vpack.c.bf16 %v1484_v20, %v1482_v4 }
 0x1e7   : > { %1721 = vmatmul.bf16.gmra.mxu1 %v1496_v7  ;;  %1759 = vmatmul.bf16.gmra.mxu3 %v1496_v7 }
 0x24f   : > { %v1698_v17 = vpop.f32.mrf.mxu0 }
 0x254   : > { %v1717_v49 = vpop.f32.mrf.mxu1 }
 0x255   : > { %v1718_v1 = vadd.f32 %v1717_v49, %v1698_v17  ;;  %v1736_v2 = vpop.f32.mrf.mxu2 }
 0x257   : > { %v1765_v5 = vadd.f32 %v1718_v1, %v1485_v19  ;;  %v1700_v21 = vpop.f32.mrf.mxu0 }
 0x259   : > { %1773 = vst [vmem:[%s3357_s5] sm:$0xff] %v1765_v5 }
 0x25a   : > { %v1755_v61 = vpop.f32.mrf.mxu3 }
 0x25b   : > { %v1756_v22 = vadd.f32 %v1755_v61, %v1736_v2 }
 0x25c   : > { %v1719_v25 = vpop.f32.mrf.mxu1 }
 0x25d   : > { %v1766_v28 = vadd.f32 %v1756_v22, %v1486_v33  ;;  %v1720_v29 = vadd.f32 %v1719_v25, %v1700_v21  ;;  %v1738_v8 = vpop.f32.mrf.mxu2 }
 0x25f   : > { %1774 = vst [vmem:[%s3357_s5 + $0x8] sm:$0xff] %v1766_v28  ;;  %v1767_v9 = vadd.f32 %v1720_v29, %v1487_v24  ;;  %v1703_v34 = vpop.f32.mrf.mxu0 }
 0x261   : > { %1775 = vst [vmem:[%s3357_s5 + $0x10] sm:$0xff] %v1767_v9 }
 0x262   : > { %v1757_v6 = vpop.f32.mrf.mxu3 }
 0x263   : > { %v1758_v12 = vadd.f32 %v1757_v6, %v1738_v8 }
 0x264   : > { %v1722_v32 = vpop.f32.mrf.mxu1 }
 0x265   : > { %v1768_v35 = vadd.f32 %v1758_v12, %v1488_v27  ;;  %v1723_v36 = vadd.f32 %v1722_v32, %v1703_v34  ;;  %v1741_v57 = vpop.f32.mrf.mxu2 }
 0x267   : > { %1776 = vst [vmem:[%s3357_s5 + $0x18] sm:$0xff] %v1768_v35  ;;  %v1769_v37 = vadd.f32 %v1723_v36, %v1489_v31  ;;  %v1705_v41 = vpop.f32.mrf.mxu0 }
 0x269   : > { %1777 = vst [vmem:[%s3357_s5 + $0x20] sm:$0xff] %v1769_v37 }
 0x26a   : > { %v1760_v40 = vpop.f32.mrf.mxu3 }
 0x26b   : > { %v1761_v14 = vadd.f32 %v1760_v40, %v1741_v57 }
 0x26c   : > { %v1724_v42 = vpop.f32.mrf.mxu1 }
 0x26d   : > { %v1770_v11 = vadd.f32 %v1761_v14, %v1490_v26  ;;  %v1725_v43 = vadd.f32 %v1724_v42, %v1705_v41  ;;  %v1743_v47 = vpop.f32.mrf.mxu2 }
 0x26f   : > { %1778 = vst [vmem:[%s3357_s5 + $0x28] sm:$0xff] %v1770_v11  ;;  %v1771_v45 = vadd.f32 %v1725_v43, %v1491_v30 }
 0x271   : > { %1779 = vst [vmem:[%s3357_s5 + $0x30] sm:$0xff] %v1771_v45 }
 0x272   : > { %v1762_v50 = vpop.f32.mrf.mxu3 }
 0x273   : > { %v1763_v51 = vadd.f32 %v1762_v50, %v1743_v47 }
 0x275   : > { %v1772_v52 = vadd.f32 %v1763_v51, %v1492_v48 }
 0x277   : > { %1780 = vst [vmem:[%s3357_s5 + $0x38] sm:$0xff] %v1772_v52 }
 0x278 PF: > { %s15_s22 = sadd.s32 1, %s2549_s22   ;;  %s3373_s18 = smov %s2537_s19 }
 0x279   : > { %p12_p11 = scmp.ge.s32.totalorder %s15_s22, 5   ;;  %s3374_s19 = smov %s2621_s27 }
 0x27a   : > { %s3375_s20 = smov %s2545_s21  ;;  %s3376_s21 = smov %s3378_s23 }
 0x27b   :  { %14 = sbr.rel (!%p12_p11) target bundleno = 3 (0x3), region = 169 }

</bundles_post_ra>
